<compile_context>
chip_gen: v6e
topology: v6e:2x2x1
jax: 0.10.0
libtpu: 0.0.40
codegen_flags: <defaults>
</compile_context>

<pallas_src>
import functools

import jax
import jax.numpy as jnp
from jax.experimental import pallas as pl
from jax.experimental.pallas import tpu as pltpu

F32 = jnp.float32
BF16 = jnp.bfloat16


def _silu(x):
    return x * jax.nn.sigmoid(x)


def _bn_affine(s, q, gamma, beta, count, eps=1e-5):
    """Training-mode BatchNorm affine params from per-channel sum / sum-of-squares."""
    mean = s / count
    var = jnp.maximum(q / count - mean * mean, 0.0)       # biased variance
    scale = gamma * jax.lax.rsqrt(var + eps)
    shift = beta - mean * scale
    return scale, shift


# -----------------------------------------------------------------------------
# Fused kernel: upsample + concat + BN1 + SiLU + conv1 + temb + BN2 + SiLU +
#               conv2 + 1x1 residual.  Activations are (channels, H*W) so the
#               lane axis (H*W = 256) is always fully dense.
# -----------------------------------------------------------------------------
def _up_doubleconv_kernel(
        x_ref, skip_ref, scat_ref, masks_ref,
        wup_ref, bup_ref,
        g1_ref, be1_ref, w1_ref, b1_ref, temb_ref,
        g2_ref, be2_ref, w2_ref, b2_ref,
        wr_ref, br_ref,
        out_ref,
        xcat_scr, x2_scr, act_scr,
        *, img_w):
    B, C, _ = x_ref.shape
    HW = skip_ref.shape[2]
    Cin = 2 * C
    Cout = out_ref.shape[1]
    count = B * HW

    def shifted(a, k):
        """Tap-k (3x3, padding=1) shifted view of `a` (ch, H*W); zero outside image."""
        dy, dx = k // 3 - 1, k % 3 - 1
        s = dy * img_w + dx
        r = a if s == 0 else pltpu.roll(a, shift=(-s) % HW, axis=1)   # lane-axis XLU roll
        return r * masks_ref[k]                                        # (1, HW) mask

    # ---------- phase 1: ConvTranspose2d(k=2,s=2) + concat + BN1 stats ----------
    s1u = jnp.zeros((C, 1), F32)
    q1u = jnp.zeros((C, 1), F32)
    s1s = jnp.zeros((C, 1), F32)
    q1s = jnp.zeros((C, 1), F32)
    for b in range(B):
        xb = x_ref[b].astype(BF16)                                     # (C, h*w)
        up = jnp.zeros((C, HW), F32)
        for t in range(scat_ref.shape[0]):                             # 4 taps (kh, kw)
            tap = jnp.dot(wup_ref[t], xb, preferred_element_type=F32)  # (C, h*w)
            # 0/1 scatter matmul places tap t's pixels on their interleaved lanes
            up = up + jnp.dot(tap, scat_ref[t], preferred_element_type=F32)
        up = up + bup_ref[...]                                         # bias, once/pixel
        sk = skip_ref[b]                                               # (C, HW) f32

        xcat_scr[b, 0:C, :] = up                                       # cat([up, skip])
        xcat_scr[b, C:Cin, :] = sk

        s1u += jnp.sum(up, axis=1, keepdims=True)
        q1u += jnp.sum(up * up, axis=1, keepdims=True)
        s1s += jnp.sum(sk, axis=1, keepdims=True)
        q1s += jnp.sum(sk * sk, axis=1, keepdims=True)

    sc1u, sh1u = _bn_affine(s1u, q1u, g1_ref[0:C, :], be1_ref[0:C, :], count)
    sc1s, sh1s = _bn_affine(s1s, q1s, g1_ref[C:Cin, :], be1_ref[C:Cin, :], count)

    # ---------- phase 2: BN1 + SiLU + conv1(3x3) + bias + time-embed + BN2 stats ----------
    s2 = jnp.zeros((Cout, 1), F32)
    q2 = jnp.zeros((Cout, 1), F32)
    for b in range(B):
        act_scr[0:C, :] = _silu(xcat_scr[b, 0:C, :] * sc1u + sh1u)
        act_scr[C:Cin, :] = _silu(xcat_scr[b, C:Cin, :] * sc1s + sh1s)
        a = act_scr[...]                                               # (Cin, HW) f32

        acc = jnp.zeros((Cout, HW), F32)
        for k in range(9):                                             # 9 accumulated taps
            acc = acc + jnp.dot(w1_ref[k], shifted(a, k).astype(BF16),
                                preferred_element_type=F32)
        acc = acc + b1_ref[...] + temb_ref[b]                          # (Cout, 1) adds
        x2_scr[b] = acc

        s2 += jnp.sum(acc, axis=1, keepdims=True)
        q2 += jnp.sum(acc * acc, axis=1, keepdims=True)

    sc2, sh2 = _bn_affine(s2, q2, g2_ref[...], be2_ref[...], count)

    # ---------- phase 3: BN2 + SiLU + conv2(3x3) + bias + 1x1-conv residual ----------
    for b in range(B):
        a2 = _silu(x2_scr[b] * sc2 + sh2)                              # (Cout, HW)
        acc = jnp.zeros((Cout, HW), F32)
        for k in range(9):
            acc = acc + jnp.dot(w2_ref[k], shifted(a2, k).astype(BF16),
                                preferred_element_type=F32)
        res = jnp.dot(wr_ref[...], xcat_scr[b].astype(BF16),
                      preferred_element_type=F32)                      # 1x1 conv residual
        out_ref[b] = acc + b2_ref[...] + res + br_ref[...]             # lane-dense store


def _full_spec(shape):
    zeros = (0,) * len(shape)
    return pl.BlockSpec(tuple(shape), lambda i: zeros)


# -----------------------------------------------------------------------------
# UpModule forward (NCHW in / NCHW out, matching the PyTorch reference)
# -----------------------------------------------------------------------------
def up_module_forward(params, x_nchw, x_skip_nchw, time_vec):
    B, C, h, w = x_nchw.shape
    H, W = 2 * h, 2 * w
    hw, HW = h * w, H * W
    Cin = 2 * C
    Cout = params['c1_w'].shape[0]

    # Channel-first layout: NCHW -> (B, C, H*W) is a pure reshape (no transpose).
    x = x_nchw.reshape(B, C, hw).astype(F32)
    skip = x_skip_nchw.reshape(B, C, HW).astype(F32)

    # ConvTranspose2d weight (Cin, Cout, kh, kw) -> (4, Cout, Cin), t = 2*kh + kw.
    wup = jnp.transpose(params['up_w'], (2, 3, 1, 0)).reshape(4, C, C).astype(BF16)
    bup = params['up_b'].reshape(C, 1).astype(F32)

    # 0/1 scatter matrices for the 2x2 stride-2 interleave: lane p=r*w+c -> (2r+kh)*W+2c+kw.
    p = jnp.arange(hw)
    r, c = p // w, p % w
    scat = jnp.stack([
        jax.nn.one_hot((2 * r + kh) * W + (2 * c + kw), HW, dtype=F32)
        for kh in range(2) for kw in range(2)])                        # (4, hw, HW)

    # 3x3 zero-padding masks per tap (k = 3*kh + kw), on the flattened H*W lane axis.
    L = jnp.arange(HW)
    R, Cc = L // W, L % W
    masks = jnp.stack([
        ((R + (kh - 1) >= 0) & (R + (kh - 1) < H) &
         (Cc + (kw - 1) >= 0) & (Cc + (kw - 1) < W)).astype(F32)
        for kh in range(3) for kw in range(3)]).reshape(9, 1, HW)

    # Conv weights arranged per-tap: (9, Cout, Cin_tap).
    w1 = jnp.transpose(params['c1_w'], (2, 3, 0, 1)).reshape(9, Cout, Cin).astype(BF16)
    b1 = params['c1_b'].reshape(Cout, 1).astype(F32)
    w2 = jnp.transpose(params['c2_w'], (2, 3, 0, 1)).reshape(9, Cout, Cout).astype(BF16)
    b2 = params['c2_b'].reshape(Cout, 1).astype(F32)
    wr = params['res_w'].reshape(Cout, Cin).astype(BF16)
    br = params['res_b'].reshape(Cout, 1).astype(F32)
    g1 = params['bn1_g'].reshape(Cin, 1).astype(F32)
    be1 = params['bn1_b'].reshape(Cin, 1).astype(F32)
    g2 = params['bn2_g'].reshape(Cout, 1).astype(F32)
    be2 = params['bn2_b'].reshape(Cout, 1).astype(F32)

    # Time embedding hoisted out of the kernel: Linear(SiLU(time_vec)) for the whole batch.
    tv = time_vec.astype(F32)
    temb = (jax.nn.silu(tv) @ params['emb_w'].T.astype(F32)
            + params['emb_b'].astype(F32)).reshape(B, Cout, 1)

    kernel = functools.partial(_up_doubleconv_kernel, img_w=W)

    ins = (x, skip, scat, masks, wup, bup, g1, be1, w1, b1, temb,
           g2, be2, w2, b2, wr, br)

    out = pl.pallas_call(
        kernel,
        out_shape=jax.ShapeDtypeStruct((B, Cout, HW), F32),
        grid=(1,),
        in_specs=[_full_spec(a.shape) for a in ins],
        out_specs=_full_spec((B, Cout, HW)),
        scratch_shapes=[pltpu.VMEM((B, Cin, HW), F32),    # raw concat (also residual input)
                        pltpu.VMEM((B, Cout, HW), F32),   # conv1 output (pre-BN2)
                        pltpu.VMEM((Cin, HW), F32)],      # per-batch activated concat
        compiler_params=pltpu.CompilerParams(dimension_semantics=("arbitrary",)),
    )(*ins)

    return out.reshape(B, Cout, H, W)                     # free reshape back to NCHW


# -----------------------------------------------------------------------------
# Main
# -----------------------------------------------------------------------------
if __name__ == "__main__":
    B, C, Cout, E, S = 2, 8, 8, 32, 8        # x is (B, C, S, S); skip is (B, C, 2S, 2S)

    key = jax.random.PRNGKey(0)
    ks = jax.random.split(key, 20)
    n = lambda k, shape, s=0.1: s * jax.random.normal(k, shape, dtype=jnp.float32)

    params = {
        # ConvTranspose2d(C, C, 2, 2): weight (Cin, Cout, kh, kw)
        'up_w': n(ks[0], (C, C, 2, 2)),
        'up_b': n(ks[1], (C,)),
        # DoubleConv(2C, Cout, E)
        'bn1_g': 1.0 + n(ks[2], (2 * C,)),
        'bn1_b': n(ks[3], (2 * C,)),
        'c1_w': n(ks[4], (Cout, 2 * C, 3, 3)),
        'c1_b': n(ks[5], (Cout,)),
        'bn2_g': 1.0 + n(ks[6], (Cout,)),
        'bn2_b': n(ks[7], (Cout,)),
        'c2_w': n(ks[8], (Cout, Cout, 3, 3)),
        'c2_b': n(ks[9], (Cout,)),
        'emb_w': n(ks[10], (Cout, E)),
        'emb_b': n(ks[11], (Cout,)),
        'res_w': n(ks[12], (Cout, 2 * C, 1, 1)),
        'res_b': n(ks[13], (Cout,)),
    }

    x = jax.random.normal(ks[14], (B, C, S, S), dtype=jnp.float32)
    x_skip = jax.random.normal(ks[15], (B, C, 2 * S, 2 * S), dtype=jnp.float32)
    time_vec = jax.random.normal(ks[16], (B, E), dtype=jnp.float32)

    out = jax.jit(up_module_forward)(params, x, x_skip, time_vec)
    out = jax.block_until_ready(out)
    assert out.shape == (B, Cout, 2 * S, 2 * S), out.shape
    assert jnp.all(jnp.isfinite(out))
    print("KERNEL_OK")
</pallas_src>

<mosaic_0001>
module attributes {stable_mosaic.version = 11 : i64} {
  func.func @_up_doubleconv_kernel(%arg0: i32, %arg1: memref<2x8x64xf32, #tpu.memory_space<vmem>>, %arg2: memref<2x8x256xf32, #tpu.memory_space<vmem>>, %arg3: memref<4x64x256xf32, #tpu.memory_space<vmem>>, %arg4: memref<9x1x256xf32, #tpu.memory_space<vmem>>, %arg5: memref<4x8x8xbf16, #tpu.memory_space<vmem>>, %arg6: memref<8x1xf32, #tpu.memory_space<vmem>>, %arg7: memref<16x1xf32, #tpu.memory_space<vmem>>, %arg8: memref<16x1xf32, #tpu.memory_space<vmem>>, %arg9: memref<9x8x16xbf16, #tpu.memory_space<vmem>>, %arg10: memref<8x1xf32, #tpu.memory_space<vmem>>, %arg11: memref<2x8x1xf32, #tpu.memory_space<vmem>>, %arg12: memref<8x1xf32, #tpu.memory_space<vmem>>, %arg13: memref<8x1xf32, #tpu.memory_space<vmem>>, %arg14: memref<9x8x8xbf16, #tpu.memory_space<vmem>>, %arg15: memref<8x1xf32, #tpu.memory_space<vmem>>, %arg16: memref<8x16xbf16, #tpu.memory_space<vmem>>, %arg17: memref<8x1xf32, #tpu.memory_space<vmem>>, %arg18: memref<2x8x256xf32, #tpu.memory_space<vmem>>, %arg19: memref<2x16x256xf32, #tpu.memory_space<vmem>>, %arg20: memref<2x8x256xf32, #tpu.memory_space<vmem>>, %arg21: memref<16x256xf32, #tpu.memory_space<vmem>>) attributes {dimension_semantics = [#tpu.dimension_semantics<arbitrary>], iteration_bounds = array<i64: 1>, scalar_prefetch = 0 : i64, scratch_operands = 3 : i64, tpu.core_type = #tpu.core_type<tc>, window_params = [{pipeline_mode = #tpu.pipeline_mode<synchronous>, transform_indices = @transform_0, window_bounds = array<i64: 2, 8, 64>}, {pipeline_mode = #tpu.pipeline_mode<synchronous>, transform_indices = @transform_1, window_bounds = array<i64: 2, 8, 256>}, {pipeline_mode = #tpu.pipeline_mode<synchronous>, transform_indices = @transform_2, window_bounds = array<i64: 4, 64, 256>}, {pipeline_mode = #tpu.pipeline_mode<synchronous>, transform_indices = @transform_3, window_bounds = array<i64: 9, 1, 256>}, {pipeline_mode = #tpu.pipeline_mode<synchronous>, transform_indices = @transform_4, window_bounds = array<i64: 4, 8, 8>}, {pipeline_mode = #tpu.pipeline_mode<synchronous>, transform_indices = @transform_5, window_bounds = array<i64: 8, 1>}, {pipeline_mode = #tpu.pipeline_mode<synchronous>, transform_indices = @transform_6, window_bounds = array<i64: 16, 1>}, {pipeline_mode = #tpu.pipeline_mode<synchronous>, transform_indices = @transform_7, window_bounds = array<i64: 16, 1>}, {pipeline_mode = #tpu.pipeline_mode<synchronous>, transform_indices = @transform_8, window_bounds = array<i64: 9, 8, 16>}, {pipeline_mode = #tpu.pipeline_mode<synchronous>, transform_indices = @transform_9, window_bounds = array<i64: 8, 1>}, {pipeline_mode = #tpu.pipeline_mode<synchronous>, transform_indices = @transform_10, window_bounds = array<i64: 2, 8, 1>}, {pipeline_mode = #tpu.pipeline_mode<synchronous>, transform_indices = @transform_11, window_bounds = array<i64: 8, 1>}, {pipeline_mode = #tpu.pipeline_mode<synchronous>, transform_indices = @transform_12, window_bounds = array<i64: 8, 1>}, {pipeline_mode = #tpu.pipeline_mode<synchronous>, transform_indices = @transform_13, window_bounds = array<i64: 9, 8, 8>}, {pipeline_mode = #tpu.pipeline_mode<synchronous>, transform_indices = @transform_14, window_bounds = array<i64: 8, 1>}, {pipeline_mode = #tpu.pipeline_mode<synchronous>, transform_indices = @transform_15, window_bounds = array<i64: 8, 16>}, {pipeline_mode = #tpu.pipeline_mode<synchronous>, transform_indices = @transform_16, window_bounds = array<i64: 8, 1>}, {pipeline_mode = #tpu.pipeline_mode<synchronous>, transform_indices = @transform_17, window_bounds = array<i64: 2, 8, 256>}]} {
    %cst = arith.constant 0.000000e+00 : f32
    %0 = vector.broadcast %cst : f32 to vector<8x1xf32>
    %cst_0 = arith.constant 0.000000e+00 : f32
    %1 = vector.broadcast %cst_0 : f32 to vector<8x1xf32>
    %cst_1 = arith.constant 0.000000e+00 : f32
    %2 = vector.broadcast %cst_1 : f32 to vector<8x1xf32>
    %cst_2 = arith.constant 0.000000e+00 : f32
    %3 = vector.broadcast %cst_2 : f32 to vector<8x1xf32>
    %c0 = arith.constant 0 : index
    %c0_3 = arith.constant 0 : index
    %c0_4 = arith.constant 0 : index
    %4 = vector.load %arg1[%c0, %c0_3, %c0_4] : memref<2x8x64xf32, #tpu.memory_space<vmem>>, vector<1x8x64xf32>
    %5 = vector.shape_cast %4 : vector<1x8x64xf32> to vector<8x64xf32>
    %6 = arith.truncf %5 : vector<8x64xf32> to vector<8x64xbf16>
    %cst_5 = arith.constant 0.000000e+00 : f32
    %7 = vector.broadcast %cst_5 : f32 to vector<8x256xf32>
    %c0_6 = arith.constant 0 : index
    %c0_7 = arith.constant 0 : index
    %c0_8 = arith.constant 0 : index
    %8 = vector.load %arg5[%c0_6, %c0_7, %c0_8] : memref<4x8x8xbf16, #tpu.memory_space<vmem>>, vector<1x8x8xbf16>
    %9 = vector.shape_cast %8 : vector<1x8x8xbf16> to vector<8x8xbf16>
    %cst_9 = arith.constant dense<0.000000e+00> : vector<8x64xf32>
    %10 = tpu.matmul %9, %6, %cst_9 {dimension_numbers = #tpu.dot_dimension_numbers<[1], [0], [0], [1], [0, 0, 1, 1], [], []>} : vector<8x8xbf16>, vector<8x64xbf16>, vector<8x64xf32> -> vector<8x64xf32>
    %c0_10 = arith.constant 0 : index
    %c0_11 = arith.constant 0 : index
    %c0_12 = arith.constant 0 : index
    %11 = vector.load %arg3[%c0_10, %c0_11, %c0_12] : memref<4x64x256xf32, #tpu.memory_space<vmem>>, vector<1x64x256xf32>
    %12 = vector.shape_cast %11 : vector<1x64x256xf32> to vector<64x256xf32>
    %cst_13 = arith.constant dense<0.000000e+00> : vector<8x256xf32>
    %13 = tpu.matmul %10, %12, %cst_13 {dimension_numbers = #tpu.dot_dimension_numbers<[1], [0], [0], [1], [0, 0, 1, 1], [], []>} : vector<8x64xf32>, vector<64x256xf32>, vector<8x256xf32> -> vector<8x256xf32>
    %14 = arith.addf %7, %13 : vector<8x256xf32>
    %c1 = arith.constant 1 : index
    %c0_14 = arith.constant 0 : index
    %c0_15 = arith.constant 0 : index
    %15 = vector.load %arg5[%c1, %c0_14, %c0_15] : memref<4x8x8xbf16, #tpu.memory_space<vmem>>, vector<1x8x8xbf16>
    %16 = vector.shape_cast %15 : vector<1x8x8xbf16> to vector<8x8xbf16>
    %cst_16 = arith.constant dense<0.000000e+00> : vector<8x64xf32>
    %17 = tpu.matmul %16, %6, %cst_16 {dimension_numbers = #tpu.dot_dimension_numbers<[1], [0], [0], [1], [0, 0, 1, 1], [], []>} : vector<8x8xbf16>, vector<8x64xbf16>, vector<8x64xf32> -> vector<8x64xf32>
    %c1_17 = arith.constant 1 : index
    %c0_18 = arith.constant 0 : index
    %c0_19 = arith.constant 0 : index
    %18 = vector.load %arg3[%c1_17, %c0_18, %c0_19] : memref<4x64x256xf32, #tpu.memory_space<vmem>>, vector<1x64x256xf32>
    %19 = vector.shape_cast %18 : vector<1x64x256xf32> to vector<64x256xf32>
    %cst_20 = arith.constant dense<0.000000e+00> : vector<8x256xf32>
    %20 = tpu.matmul %17, %19, %cst_20 {dimension_numbers = #tpu.dot_dimension_numbers<[1], [0], [0], [1], [0, 0, 1, 1], [], []>} : vector<8x64xf32>, vector<64x256xf32>, vector<8x256xf32> -> vector<8x256xf32>
    %21 = arith.addf %14, %20 : vector<8x256xf32>
    %c2 = arith.constant 2 : index
    %c0_21 = arith.constant 0 : index
    %c0_22 = arith.constant 0 : index
    %22 = vector.load %arg5[%c2, %c0_21, %c0_22] : memref<4x8x8xbf16, #tpu.memory_space<vmem>>, vector<1x8x8xbf16>
    %23 = vector.shape_cast %22 : vector<1x8x8xbf16> to vector<8x8xbf16>
    %cst_23 = arith.constant dense<0.000000e+00> : vector<8x64xf32>
    %24 = tpu.matmul %23, %6, %cst_23 {dimension_numbers = #tpu.dot_dimension_numbers<[1], [0], [0], [1], [0, 0, 1, 1], [], []>} : vector<8x8xbf16>, vector<8x64xbf16>, vector<8x64xf32> -> vector<8x64xf32>
    %c2_24 = arith.constant 2 : index
    %c0_25 = arith.constant 0 : index
    %c0_26 = arith.constant 0 : index
    %25 = vector.load %arg3[%c2_24, %c0_25, %c0_26] : memref<4x64x256xf32, #tpu.memory_space<vmem>>, vector<1x64x256xf32>
    %26 = vector.shape_cast %25 : vector<1x64x256xf32> to vector<64x256xf32>
    %cst_27 = arith.constant dense<0.000000e+00> : vector<8x256xf32>
    %27 = tpu.matmul %24, %26, %cst_27 {dimension_numbers = #tpu.dot_dimension_numbers<[1], [0], [0], [1], [0, 0, 1, 1], [], []>} : vector<8x64xf32>, vector<64x256xf32>, vector<8x256xf32> -> vector<8x256xf32>
    %28 = arith.addf %21, %27 : vector<8x256xf32>
    %c3 = arith.constant 3 : index
    %c0_28 = arith.constant 0 : index
    %c0_29 = arith.constant 0 : index
    %29 = vector.load %arg5[%c3, %c0_28, %c0_29] : memref<4x8x8xbf16, #tpu.memory_space<vmem>>, vector<1x8x8xbf16>
    %30 = vector.shape_cast %29 : vector<1x8x8xbf16> to vector<8x8xbf16>
    %cst_30 = arith.constant dense<0.000000e+00> : vector<8x64xf32>
    %31 = tpu.matmul %30, %6, %cst_30 {dimension_numbers = #tpu.dot_dimension_numbers<[1], [0], [0], [1], [0, 0, 1, 1], [], []>} : vector<8x8xbf16>, vector<8x64xbf16>, vector<8x64xf32> -> vector<8x64xf32>
    %c3_31 = arith.constant 3 : index
    %c0_32 = arith.constant 0 : index
    %c0_33 = arith.constant 0 : index
    %32 = vector.load %arg3[%c3_31, %c0_32, %c0_33] : memref<4x64x256xf32, #tpu.memory_space<vmem>>, vector<1x64x256xf32>
    %33 = vector.shape_cast %32 : vector<1x64x256xf32> to vector<64x256xf32>
    %cst_34 = arith.constant dense<0.000000e+00> : vector<8x256xf32>
    %34 = tpu.matmul %31, %33, %cst_34 {dimension_numbers = #tpu.dot_dimension_numbers<[1], [0], [0], [1], [0, 0, 1, 1], [], []>} : vector<8x64xf32>, vector<64x256xf32>, vector<8x256xf32> -> vector<8x256xf32>
    %35 = arith.addf %28, %34 : vector<8x256xf32>
    %c0_35 = arith.constant 0 : index
    %c0_36 = arith.constant 0 : index
    %36 = vector.load %arg6[%c0_35, %c0_36] : memref<8x1xf32, #tpu.memory_space<vmem>>, vector<8x1xf32>
    %37 = vector.broadcast %36 : vector<8x1xf32> to vector<8x256xf32>
    %38 = arith.addf %35, %37 : vector<8x256xf32>
    %c0_37 = arith.constant 0 : index
    %c0_38 = arith.constant 0 : index
    %c0_39 = arith.constant 0 : index
    %39 = vector.load %arg2[%c0_37, %c0_38, %c0_39] : memref<2x8x256xf32, #tpu.memory_space<vmem>>, vector<1x8x256xf32>
    %40 = vector.shape_cast %39 : vector<1x8x256xf32> to vector<8x256xf32>
    %c0_40 = arith.constant 0 : index
    %c0_41 = arith.constant 0 : index
    %c0_42 = arith.constant 0 : index
    %41 = vector.load %arg19[%c0_40, %c0_41, %c0_42] : memref<2x16x256xf32, #tpu.memory_space<vmem>>, vector<1x8x256xf32>
    %42 = vector.shape_cast %41 : vector<1x8x256xf32> to vector<8x256xf32>
    %43 = vector.shape_cast %38 : vector<8x256xf32> to vector<1x8x256xf32>
    tpu.vector_store %arg19[%c0_40, %c0_41, %c0_42], %43 {strides = array<i32>} : memref<2x16x256xf32, #tpu.memory_space<vmem>>, vector<1x8x256xf32>,
    %c0_43 = arith.constant 0 : index
    %c8 = arith.constant 8 : index
    %c0_44 = arith.constant 0 : index
    %44 = vector.load %arg19[%c0_43, %c8, %c0_44] : memref<2x16x256xf32, #tpu.memory_space<vmem>>, vector<1x8x256xf32>
    %45 = vector.shape_cast %44 : vector<1x8x256xf32> to vector<8x256xf32>
    %46 = vector.shape_cast %40 : vector<8x256xf32> to vector<1x8x256xf32>
    tpu.vector_store %arg19[%c0_43, %c8, %c0_44], %46 {strides = array<i32>} : memref<2x16x256xf32, #tpu.memory_space<vmem>>, vector<1x8x256xf32>,
    %cst_45 = arith.constant dense<0.000000e+00> : vector<8xf32>
    %47 = vector.multi_reduction <add>, %38, %cst_45 [1] : vector<8x256xf32> to vector<8xf32>
    %48 = vector.shape_cast %47 : vector<8xf32> to vector<8x1xf32>
    %49 = arith.addf %0, %48 : vector<8x1xf32>
    %50 = arith.mulf %38, %38 : vector<8x256xf32>
    %cst_46 = arith.constant dense<0.000000e+00> : vector<8xf32>
    %51 = vector.multi_reduction <add>, %50, %cst_46 [1] : vector<8x256xf32> to vector<8xf32>
    %52 = vector.shape_cast %51 : vector<8xf32> to vector<8x1xf32>
    %53 = arith.addf %1, %52 : vector<8x1xf32>
    %cst_47 = arith.constant dense<0.000000e+00> : vector<8xf32>
    %54 = vector.multi_reduction <add>, %40, %cst_47 [1] : vector<8x256xf32> to vector<8xf32>
    %55 = vector.shape_cast %54 : vector<8xf32> to vector<8x1xf32>
    %56 = arith.addf %2, %55 : vector<8x1xf32>
    %57 = arith.mulf %40, %40 : vector<8x256xf32>
    %cst_48 = arith.constant dense<0.000000e+00> : vector<8xf32>
    %58 = vector.multi_reduction <add>, %57, %cst_48 [1] : vector<8x256xf32> to vector<8xf32>
    %59 = vector.shape_cast %58 : vector<8xf32> to vector<8x1xf32>
    %60 = arith.addf %3, %59 : vector<8x1xf32>
    %c1_49 = arith.constant 1 : index
    %c0_50 = arith.constant 0 : index
    %c0_51 = arith.constant 0 : index
    %61 = vector.load %arg1[%c1_49, %c0_50, %c0_51] : memref<2x8x64xf32, #tpu.memory_space<vmem>>, vector<1x8x64xf32>
    %62 = vector.shape_cast %61 : vector<1x8x64xf32> to vector<8x64xf32>
    %63 = arith.truncf %62 : vector<8x64xf32> to vector<8x64xbf16>
    %cst_52 = arith.constant 0.000000e+00 : f32
    %64 = vector.broadcast %cst_52 : f32 to vector<8x256xf32>
    %c0_53 = arith.constant 0 : index
    %c0_54 = arith.constant 0 : index
    %c0_55 = arith.constant 0 : index
    %65 = vector.load %arg5[%c0_53, %c0_54, %c0_55] : memref<4x8x8xbf16, #tpu.memory_space<vmem>>, vector<1x8x8xbf16>
    %66 = vector.shape_cast %65 : vector<1x8x8xbf16> to vector<8x8xbf16>
    %cst_56 = arith.constant dense<0.000000e+00> : vector<8x64xf32>
    %67 = tpu.matmul %66, %63, %cst_56 {dimension_numbers = #tpu.dot_dimension_numbers<[1], [0], [0], [1], [0, 0, 1, 1], [], []>} : vector<8x8xbf16>, vector<8x64xbf16>, vector<8x64xf32> -> vector<8x64xf32>
    %c0_57 = arith.constant 0 : index
    %c0_58 = arith.constant 0 : index
    %c0_59 = arith.constant 0 : index
    %68 = vector.load %arg3[%c0_57, %c0_58, %c0_59] : memref<4x64x256xf32, #tpu.memory_space<vmem>>, vector<1x64x256xf32>
    %69 = vector.shape_cast %68 : vector<1x64x256xf32> to vector<64x256xf32>
    %cst_60 = arith.constant dense<0.000000e+00> : vector<8x256xf32>
    %70 = tpu.matmul %67, %69, %cst_60 {dimension_numbers = #tpu.dot_dimension_numbers<[1], [0], [0], [1], [0, 0, 1, 1], [], []>} : vector<8x64xf32>, vector<64x256xf32>, vector<8x256xf32> -> vector<8x256xf32>
    %71 = arith.addf %64, %70 : vector<8x256xf32>
    %c1_61 = arith.constant 1 : index
    %c0_62 = arith.constant 0 : index
    %c0_63 = arith.constant 0 : index
    %72 = vector.load %arg5[%c1_61, %c0_62, %c0_63] : memref<4x8x8xbf16, #tpu.memory_space<vmem>>, vector<1x8x8xbf16>
    %73 = vector.shape_cast %72 : vector<1x8x8xbf16> to vector<8x8xbf16>
    %cst_64 = arith.constant dense<0.000000e+00> : vector<8x64xf32>
    %74 = tpu.matmul %73, %63, %cst_64 {dimension_numbers = #tpu.dot_dimension_numbers<[1], [0], [0], [1], [0, 0, 1, 1], [], []>} : vector<8x8xbf16>, vector<8x64xbf16>, vector<8x64xf32> -> vector<8x64xf32>
    %c1_65 = arith.constant 1 : index
    %c0_66 = arith.constant 0 : index
    %c0_67 = arith.constant 0 : index
    %75 = vector.load %arg3[%c1_65, %c0_66, %c0_67] : memref<4x64x256xf32, #tpu.memory_space<vmem>>, vector<1x64x256xf32>
    %76 = vector.shape_cast %75 : vector<1x64x256xf32> to vector<64x256xf32>
    %cst_68 = arith.constant dense<0.000000e+00> : vector<8x256xf32>
    %77 = tpu.matmul %74, %76, %cst_68 {dimension_numbers = #tpu.dot_dimension_numbers<[1], [0], [0], [1], [0, 0, 1, 1], [], []>} : vector<8x64xf32>, vector<64x256xf32>, vector<8x256xf32> -> vector<8x256xf32>
    %78 = arith.addf %71, %77 : vector<8x256xf32>
    %c2_69 = arith.constant 2 : index
    %c0_70 = arith.constant 0 : index
    %c0_71 = arith.constant 0 : index
    %79 = vector.load %arg5[%c2_69, %c0_70, %c0_71] : memref<4x8x8xbf16, #tpu.memory_space<vmem>>, vector<1x8x8xbf16>
    %80 = vector.shape_cast %79 : vector<1x8x8xbf16> to vector<8x8xbf16>
    %cst_72 = arith.constant dense<0.000000e+00> : vector<8x64xf32>
    %81 = tpu.matmul %80, %63, %cst_72 {dimension_numbers = #tpu.dot_dimension_numbers<[1], [0], [0], [1], [0, 0, 1, 1], [], []>} : vector<8x8xbf16>, vector<8x64xbf16>, vector<8x64xf32> -> vector<8x64xf32>
    %c2_73 = arith.constant 2 : index
    %c0_74 = arith.constant 0 : index
    %c0_75 = arith.constant 0 : index
    %82 = vector.load %arg3[%c2_73, %c0_74, %c0_75] : memref<4x64x256xf32, #tpu.memory_space<vmem>>, vector<1x64x256xf32>
    %83 = vector.shape_cast %82 : vector<1x64x256xf32> to vector<64x256xf32>
    %cst_76 = arith.constant dense<0.000000e+00> : vector<8x256xf32>
    %84 = tpu.matmul %81, %83, %cst_76 {dimension_numbers = #tpu.dot_dimension_numbers<[1], [0], [0], [1], [0, 0, 1, 1], [], []>} : vector<8x64xf32>, vector<64x256xf32>, vector<8x256xf32> -> vector<8x256xf32>
    %85 = arith.addf %78, %84 : vector<8x256xf32>
    %c3_77 = arith.constant 3 : index
    %c0_78 = arith.constant 0 : index
    %c0_79 = arith.constant 0 : index
    %86 = vector.load %arg5[%c3_77, %c0_78, %c0_79] : memref<4x8x8xbf16, #tpu.memory_space<vmem>>, vector<1x8x8xbf16>
    %87 = vector.shape_cast %86 : vector<1x8x8xbf16> to vector<8x8xbf16>
    %cst_80 = arith.constant dense<0.000000e+00> : vector<8x64xf32>
    %88 = tpu.matmul %87, %63, %cst_80 {dimension_numbers = #tpu.dot_dimension_numbers<[1], [0], [0], [1], [0, 0, 1, 1], [], []>} : vector<8x8xbf16>, vector<8x64xbf16>, vector<8x64xf32> -> vector<8x64xf32>
    %c3_81 = arith.constant 3 : index
    %c0_82 = arith.constant 0 : index
    %c0_83 = arith.constant 0 : index
    %89 = vector.load %arg3[%c3_81, %c0_82, %c0_83] : memref<4x64x256xf32, #tpu.memory_space<vmem>>, vector<1x64x256xf32>
    %90 = vector.shape_cast %89 : vector<1x64x256xf32> to vector<64x256xf32>
    %cst_84 = arith.constant dense<0.000000e+00> : vector<8x256xf32>
    %91 = tpu.matmul %88, %90, %cst_84 {dimension_numbers = #tpu.dot_dimension_numbers<[1], [0], [0], [1], [0, 0, 1, 1], [], []>} : vector<8x64xf32>, vector<64x256xf32>, vector<8x256xf32> -> vector<8x256xf32>
    %92 = arith.addf %85, %91 : vector<8x256xf32>
    %c0_85 = arith.constant 0 : index
    %c0_86 = arith.constant 0 : index
    %93 = vector.load %arg6[%c0_85, %c0_86] : memref<8x1xf32, #tpu.memory_space<vmem>>, vector<8x1xf32>
    %94 = vector.broadcast %93 : vector<8x1xf32> to vector<8x256xf32>
    %95 = arith.addf %92, %94 : vector<8x256xf32>
    %c1_87 = arith.constant 1 : index
    %c0_88 = arith.constant 0 : index
    %c0_89 = arith.constant 0 : index
    %96 = vector.load %arg2[%c1_87, %c0_88, %c0_89] : memref<2x8x256xf32, #tpu.memory_space<vmem>>, vector<1x8x256xf32>
    %97 = vector.shape_cast %96 : vector<1x8x256xf32> to vector<8x256xf32>
    %c1_90 = arith.constant 1 : index
    %c0_91 = arith.constant 0 : index
    %c0_92 = arith.constant 0 : index
    %98 = vector.load %arg19[%c1_90, %c0_91, %c0_92] : memref<2x16x256xf32, #tpu.memory_space<vmem>>, vector<1x8x256xf32>
    %99 = vector.shape_cast %98 : vector<1x8x256xf32> to vector<8x256xf32>
    %100 = vector.shape_cast %95 : vector<8x256xf32> to vector<1x8x256xf32>
    tpu.vector_store %arg19[%c1_90, %c0_91, %c0_92], %100 {strides = array<i32>} : memref<2x16x256xf32, #tpu.memory_space<vmem>>, vector<1x8x256xf32>,
    %c1_93 = arith.constant 1 : index
    %c8_94 = arith.constant 8 : index
    %c0_95 = arith.constant 0 : index
    %101 = vector.load %arg19[%c1_93, %c8_94, %c0_95] : memref<2x16x256xf32, #tpu.memory_space<vmem>>, vector<1x8x256xf32>
    %102 = vector.shape_cast %101 : vector<1x8x256xf32> to vector<8x256xf32>
    %103 = vector.shape_cast %97 : vector<8x256xf32> to vector<1x8x256xf32>
    tpu.vector_store %arg19[%c1_93, %c8_94, %c0_95], %103 {strides = array<i32>} : memref<2x16x256xf32, #tpu.memory_space<vmem>>, vector<1x8x256xf32>,
    %cst_96 = arith.constant dense<0.000000e+00> : vector<8xf32>
    %104 = vector.multi_reduction <add>, %95, %cst_96 [1] : vector<8x256xf32> to vector<8xf32>
    %105 = vector.shape_cast %104 : vector<8xf32> to vector<8x1xf32>
    %106 = arith.addf %49, %105 : vector<8x1xf32>
    %107 = arith.mulf %95, %95 : vector<8x256xf32>
    %cst_97 = arith.constant dense<0.000000e+00> : vector<8xf32>
    %108 = vector.multi_reduction <add>, %107, %cst_97 [1] : vector<8x256xf32> to vector<8xf32>
    %109 = vector.shape_cast %108 : vector<8xf32> to vector<8x1xf32>
    %110 = arith.addf %53, %109 : vector<8x1xf32>
    %cst_98 = arith.constant dense<0.000000e+00> : vector<8xf32>
    %111 = vector.multi_reduction <add>, %97, %cst_98 [1] : vector<8x256xf32> to vector<8xf32>
    %112 = vector.shape_cast %111 : vector<8xf32> to vector<8x1xf32>
    %113 = arith.addf %56, %112 : vector<8x1xf32>
    %114 = arith.mulf %97, %97 : vector<8x256xf32>
    %cst_99 = arith.constant dense<0.000000e+00> : vector<8xf32>
    %115 = vector.multi_reduction <add>, %114, %cst_99 [1] : vector<8x256xf32> to vector<8xf32>
    %116 = vector.shape_cast %115 : vector<8xf32> to vector<8x1xf32>
    %117 = arith.addf %60, %116 : vector<8x1xf32>
    %c0_100 = arith.constant 0 : index
    %c0_101 = arith.constant 0 : index
    %118 = vector.load %arg7[%c0_100, %c0_101] : memref<16x1xf32, #tpu.memory_space<vmem>>, vector<8x1xf32>
    %c0_102 = arith.constant 0 : index
    %c0_103 = arith.constant 0 : index
    %119 = vector.load %arg8[%c0_102, %c0_103] : memref<16x1xf32, #tpu.memory_space<vmem>>, vector<8x1xf32>
    %cst_104 = arith.constant 5.120000e+02 : f32
    %120 = vector.broadcast %cst_104 : f32 to vector<8x1xf32>
    %121 = arith.divf %106, %120 : vector<8x1xf32>
    %cst_105 = arith.constant 5.120000e+02 : f32
    %122 = vector.broadcast %cst_105 : f32 to vector<8x1xf32>
    %123 = arith.divf %110, %122 : vector<8x1xf32>
    %124 = arith.mulf %121, %121 : vector<8x1xf32>
    %125 = arith.subf %123, %124 : vector<8x1xf32>
    %cst_106 = arith.constant 0.000000e+00 : f32
    %126 = vector.broadcast %cst_106 : f32 to vector<8x1xf32>
    %127 = arith.maximumf %125, %126 : vector<8x1xf32>
    %cst_107 = arith.constant 9.99999974E-6 : f32
    %128 = vector.broadcast %cst_107 : f32 to vector<8x1xf32>
    %129 = arith.addf %127, %128 : vector<8x1xf32>
    %130 = math.rsqrt %129 : vector<8x1xf32>
    %131 = arith.mulf %118, %130 : vector<8x1xf32>
    %132 = arith.mulf %121, %131 : vector<8x1xf32>
    %133 = arith.subf %119, %132 : vector<8x1xf32>
    %c8_108 = arith.constant 8 : index
    %c0_109 = arith.constant 0 : index
    %134 = vector.load %arg7[%c8_108, %c0_109] : memref<16x1xf32, #tpu.memory_space<vmem>>, vector<8x1xf32>
    %c8_110 = arith.constant 8 : index
    %c0_111 = arith.constant 0 : index
    %135 = vector.load %arg8[%c8_110, %c0_111] : memref<16x1xf32, #tpu.memory_space<vmem>>, vector<8x1xf32>
    %cst_112 = arith.constant 5.120000e+02 : f32
    %136 = vector.broadcast %cst_112 : f32 to vector<8x1xf32>
    %137 = arith.divf %113, %136 : vector<8x1xf32>
    %cst_113 = arith.constant 5.120000e+02 : f32
    %138 = vector.broadcast %cst_113 : f32 to vector<8x1xf32>
    %139 = arith.divf %117, %138 : vector<8x1xf32>
    %140 = arith.mulf %137, %137 : vector<8x1xf32>
    %141 = arith.subf %139, %140 : vector<8x1xf32>
    %cst_114 = arith.constant 0.000000e+00 : f32
    %142 = vector.broadcast %cst_114 : f32 to vector<8x1xf32>
    %143 = arith.maximumf %141, %142 : vector<8x1xf32>
    %cst_115 = arith.constant 9.99999974E-6 : f32
    %144 = vector.broadcast %cst_115 : f32 to vector<8x1xf32>
    %145 = arith.addf %143, %144 : vector<8x1xf32>
    %146 = math.rsqrt %145 : vector<8x1xf32>
    %147 = arith.mulf %134, %146 : vector<8x1xf32>
    %148 = arith.mulf %137, %147 : vector<8x1xf32>
    %149 = arith.subf %135, %148 : vector<8x1xf32>
    %cst_116 = arith.constant 0.000000e+00 : f32
    %150 = vector.broadcast %cst_116 : f32 to vector<8x1xf32>
    %cst_117 = arith.constant 0.000000e+00 : f32
    %151 = vector.broadcast %cst_117 : f32 to vector<8x1xf32>
    %c0_118 = arith.constant 0 : index
    %c0_119 = arith.constant 0 : index
    %c0_120 = arith.constant 0 : index
    %152 = vector.load %arg19[%c0_118, %c0_119, %c0_120] : memref<2x16x256xf32, #tpu.memory_space<vmem>>, vector<1x8x256xf32>
    %153 = vector.shape_cast %152 : vector<1x8x256xf32> to vector<8x256xf32>
    %154 = vector.broadcast %131 : vector<8x1xf32> to vector<8x256xf32>
    %155 = arith.mulf %153, %154 : vector<8x256xf32>
    %156 = vector.broadcast %133 : vector<8x1xf32> to vector<8x256xf32>
    %157 = arith.addf %155, %156 : vector<8x256xf32>
    %158 = arith.negf %157 : vector<8x256xf32>
    %159 = math.exp %158 : vector<8x256xf32>
    %cst_121 = arith.constant 1.000000e+00 : f32
    %160 = vector.broadcast %cst_121 : f32 to vector<8x256xf32>
    %161 = arith.addf %160, %159 : vector<8x256xf32>
    %162 = arith.divf %160, %161 : vector<8x256xf32>
    %163 = arith.mulf %157, %162 : vector<8x256xf32>
    %c0_122 = arith.constant 0 : index
    %c0_123 = arith.constant 0 : index
    %164 = vector.load %arg21[%c0_122, %c0_123] : memref<16x256xf32, #tpu.memory_space<vmem>>, vector<8x256xf32>
    tpu.vector_store %arg21[%c0_122, %c0_123], %163 {strides = array<i32>} : memref<16x256xf32, #tpu.memory_space<vmem>>, vector<8x256xf32>,
    %c0_124 = arith.constant 0 : index
    %c8_125 = arith.constant 8 : index
    %c0_126 = arith.constant 0 : index
    %165 = vector.load %arg19[%c0_124, %c8_125, %c0_126] : memref<2x16x256xf32, #tpu.memory_space<vmem>>, vector<1x8x256xf32>
    %166 = vector.shape_cast %165 : vector<1x8x256xf32> to vector<8x256xf32>
    %167 = vector.broadcast %147 : vector<8x1xf32> to vector<8x256xf32>
    %168 = arith.mulf %166, %167 : vector<8x256xf32>
    %169 = vector.broadcast %149 : vector<8x1xf32> to vector<8x256xf32>
    %170 = arith.addf %168, %169 : vector<8x256xf32>
    %171 = arith.negf %170 : vector<8x256xf32>
    %172 = math.exp %171 : vector<8x256xf32>
    %cst_127 = arith.constant 1.000000e+00 : f32
    %173 = vector.broadcast %cst_127 : f32 to vector<8x256xf32>
    %174 = arith.addf %173, %172 : vector<8x256xf32>
    %175 = arith.divf %173, %174 : vector<8x256xf32>
    %176 = arith.mulf %170, %175 : vector<8x256xf32>
    %c8_128 = arith.constant 8 : index
    %c0_129 = arith.constant 0 : index
    %177 = vector.load %arg21[%c8_128, %c0_129] : memref<16x256xf32, #tpu.memory_space<vmem>>, vector<8x256xf32>
    tpu.vector_store %arg21[%c8_128, %c0_129], %176 {strides = array<i32>} : memref<16x256xf32, #tpu.memory_space<vmem>>, vector<8x256xf32>,
    %c0_130 = arith.constant 0 : index
    %c0_131 = arith.constant 0 : index
    %178 = vector.load %arg21[%c0_130, %c0_131] : memref<16x256xf32, #tpu.memory_space<vmem>>, vector<16x256xf32>
    %cst_132 = arith.constant 0.000000e+00 : f32
    %179 = vector.broadcast %cst_132 : f32 to vector<8x256xf32>
    %c0_133 = arith.constant 0 : index
    %c0_134 = arith.constant 0 : index
    %c0_135 = arith.constant 0 : index
    %180 = vector.load %arg9[%c0_133, %c0_134, %c0_135] : memref<9x8x16xbf16, #tpu.memory_space<vmem>>, vector<1x8x16xbf16>
    %181 = vector.shape_cast %180 : vector<1x8x16xbf16> to vector<8x16xbf16>
    %c17_i32 = arith.constant 17 : i32
    %182 = tpu.dynamic_rotate %178 by %c17_i32 dim 1 : vector<16x256xf32>, i32 -> vector<16x256xf32>
    %c0_136 = arith.constant 0 : index
    %c0_137 = arith.constant 0 : index
    %c0_138 = arith.constant 0 : index
    %183 = vector.load %arg4[%c0_136, %c0_137, %c0_138] : memref<9x1x256xf32, #tpu.memory_space<vmem>>, vector<1x1x256xf32>
    %184 = vector.shape_cast %183 : vector<1x1x256xf32> to vector<1x256xf32>
    %185 = vector.broadcast %184 : vector<1x256xf32> to vector<16x256xf32>
    %186 = arith.mulf %182, %185 : vector<16x256xf32>
    %187 = arith.truncf %186 : vector<16x256xf32> to vector<16x256xbf16>
    %cst_139 = arith.constant dense<0.000000e+00> : vector<8x256xf32>
    %188 = tpu.matmul %181, %187, %cst_139 {dimension_numbers = #tpu.dot_dimension_numbers<[1], [0], [0], [1], [0, 0, 1, 1], [], []>} : vector<8x16xbf16>, vector<16x256xbf16>, vector<8x256xf32> -> vector<8x256xf32>
    %189 = arith.addf %179, %188 : vector<8x256xf32>
    %c1_140 = arith.constant 1 : index
    %c0_141 = arith.constant 0 : index
    %c0_142 = arith.constant 0 : index
    %190 = vector.load %arg9[%c1_140, %c0_141, %c0_142] : memref<9x8x16xbf16, #tpu.memory_space<vmem>>, vector<1x8x16xbf16>
    %191 = vector.shape_cast %190 : vector<1x8x16xbf16> to vector<8x16xbf16>
    %c16_i32 = arith.constant 16 : i32
    %192 = tpu.dynamic_rotate %178 by %c16_i32 dim 1 : vector<16x256xf32>, i32 -> vector<16x256xf32>
    %c1_143 = arith.constant 1 : index
    %c0_144 = arith.constant 0 : index
    %c0_145 = arith.constant 0 : index
    %193 = vector.load %arg4[%c1_143, %c0_144, %c0_145] : memref<9x1x256xf32, #tpu.memory_space<vmem>>, vector<1x1x256xf32>
    %194 = vector.shape_cast %193 : vector<1x1x256xf32> to vector<1x256xf32>
    %195 = vector.broadcast %194 : vector<1x256xf32> to vector<16x256xf32>
    %196 = arith.mulf %192, %195 : vector<16x256xf32>
    %197 = arith.truncf %196 : vector<16x256xf32> to vector<16x256xbf16>
    %cst_146 = arith.constant dense<0.000000e+00> : vector<8x256xf32>
    %198 = tpu.matmul %191, %197, %cst_146 {dimension_numbers = #tpu.dot_dimension_numbers<[1], [0], [0], [1], [0, 0, 1, 1], [], []>} : vector<8x16xbf16>, vector<16x256xbf16>, vector<8x256xf32> -> vector<8x256xf32>
    %199 = arith.addf %189, %198 : vector<8x256xf32>
    %c2_147 = arith.constant 2 : index
    %c0_148 = arith.constant 0 : index
    %c0_149 = arith.constant 0 : index
    %200 = vector.load %arg9[%c2_147, %c0_148, %c0_149] : memref<9x8x16xbf16, #tpu.memory_space<vmem>>, vector<1x8x16xbf16>
    %201 = vector.shape_cast %200 : vector<1x8x16xbf16> to vector<8x16xbf16>
    %c15_i32 = arith.constant 15 : i32
    %202 = tpu.dynamic_rotate %178 by %c15_i32 dim 1 : vector<16x256xf32>, i32 -> vector<16x256xf32>
    %c2_150 = arith.constant 2 : index
    %c0_151 = arith.constant 0 : index
    %c0_152 = arith.constant 0 : index
    %203 = vector.load %arg4[%c2_150, %c0_151, %c0_152] : memref<9x1x256xf32, #tpu.memory_space<vmem>>, vector<1x1x256xf32>
    %204 = vector.shape_cast %203 : vector<1x1x256xf32> to vector<1x256xf32>
    %205 = vector.broadcast %204 : vector<1x256xf32> to vector<16x256xf32>
    %206 = arith.mulf %202, %205 : vector<16x256xf32>
    %207 = arith.truncf %206 : vector<16x256xf32> to vector<16x256xbf16>
    %cst_153 = arith.constant dense<0.000000e+00> : vector<8x256xf32>
    %208 = tpu.matmul %201, %207, %cst_153 {dimension_numbers = #tpu.dot_dimension_numbers<[1], [0], [0], [1], [0, 0, 1, 1], [], []>} : vector<8x16xbf16>, vector<16x256xbf16>, vector<8x256xf32> -> vector<8x256xf32>
    %209 = arith.addf %199, %208 : vector<8x256xf32>
    %c3_154 = arith.constant 3 : index
    %c0_155 = arith.constant 0 : index
    %c0_156 = arith.constant 0 : index
    %210 = vector.load %arg9[%c3_154, %c0_155, %c0_156] : memref<9x8x16xbf16, #tpu.memory_space<vmem>>, vector<1x8x16xbf16>
    %211 = vector.shape_cast %210 : vector<1x8x16xbf16> to vector<8x16xbf16>
    %c1_i32 = arith.constant 1 : i32
    %212 = tpu.dynamic_rotate %178 by %c1_i32 dim 1 : vector<16x256xf32>, i32 -> vector<16x256xf32>
    %c3_157 = arith.constant 3 : index
    %c0_158 = arith.constant 0 : index
    %c0_159 = arith.constant 0 : index
    %213 = vector.load %arg4[%c3_157, %c0_158, %c0_159] : memref<9x1x256xf32, #tpu.memory_space<vmem>>, vector<1x1x256xf32>
    %214 = vector.shape_cast %213 : vector<1x1x256xf32> to vector<1x256xf32>
    %215 = vector.broadcast %214 : vector<1x256xf32> to vector<16x256xf32>
    %216 = arith.mulf %212, %215 : vector<16x256xf32>
    %217 = arith.truncf %216 : vector<16x256xf32> to vector<16x256xbf16>
    %cst_160 = arith.constant dense<0.000000e+00> : vector<8x256xf32>
    %218 = tpu.matmul %211, %217, %cst_160 {dimension_numbers = #tpu.dot_dimension_numbers<[1], [0], [0], [1], [0, 0, 1, 1], [], []>} : vector<8x16xbf16>, vector<16x256xbf16>, vector<8x256xf32> -> vector<8x256xf32>
    %219 = arith.addf %209, %218 : vector<8x256xf32>
    %c4 = arith.constant 4 : index
    %c0_161 = arith.constant 0 : index
    %c0_162 = arith.constant 0 : index
    %220 = vector.load %arg9[%c4, %c0_161, %c0_162] : memref<9x8x16xbf16, #tpu.memory_space<vmem>>, vector<1x8x16xbf16>
    %221 = vector.shape_cast %220 : vector<1x8x16xbf16> to vector<8x16xbf16>
    %c4_163 = arith.constant 4 : index
    %c0_164 = arith.constant 0 : index
    %c0_165 = arith.constant 0 : index
    %222 = vector.load %arg4[%c4_163, %c0_164, %c0_165] : memref<9x1x256xf32, #tpu.memory_space<vmem>>, vector<1x1x256xf32>
    %223 = vector.shape_cast %222 : vector<1x1x256xf32> to vector<1x256xf32>
    %224 = vector.broadcast %223 : vector<1x256xf32> to vector<16x256xf32>
    %225 = arith.mulf %178, %224 : vector<16x256xf32>
    %226 = arith.truncf %225 : vector<16x256xf32> to vector<16x256xbf16>
    %cst_166 = arith.constant dense<0.000000e+00> : vector<8x256xf32>
    %227 = tpu.matmul %221, %226, %cst_166 {dimension_numbers = #tpu.dot_dimension_numbers<[1], [0], [0], [1], [0, 0, 1, 1], [], []>} : vector<8x16xbf16>, vector<16x256xbf16>, vector<8x256xf32> -> vector<8x256xf32>
    %228 = arith.addf %219, %227 : vector<8x256xf32>
    %c5 = arith.constant 5 : index
    %c0_167 = arith.constant 0 : index
    %c0_168 = arith.constant 0 : index
    %229 = vector.load %arg9[%c5, %c0_167, %c0_168] : memref<9x8x16xbf16, #tpu.memory_space<vmem>>, vector<1x8x16xbf16>
    %230 = vector.shape_cast %229 : vector<1x8x16xbf16> to vector<8x16xbf16>
    %c255_i32 = arith.constant 255 : i32
    %231 = tpu.dynamic_rotate %178 by %c255_i32 dim 1 : vector<16x256xf32>, i32 -> vector<16x256xf32>
    %c5_169 = arith.constant 5 : index
    %c0_170 = arith.constant 0 : index
    %c0_171 = arith.constant 0 : index
    %232 = vector.load %arg4[%c5_169, %c0_170, %c0_171] : memref<9x1x256xf32, #tpu.memory_space<vmem>>, vector<1x1x256xf32>
    %233 = vector.shape_cast %232 : vector<1x1x256xf32> to vector<1x256xf32>
    %234 = vector.broadcast %233 : vector<1x256xf32> to vector<16x256xf32>
    %235 = arith.mulf %231, %234 : vector<16x256xf32>
    %236 = arith.truncf %235 : vector<16x256xf32> to vector<16x256xbf16>
    %cst_172 = arith.constant dense<0.000000e+00> : vector<8x256xf32>
    %237 = tpu.matmul %230, %236, %cst_172 {dimension_numbers = #tpu.dot_dimension_numbers<[1], [0], [0], [1], [0, 0, 1, 1], [], []>} : vector<8x16xbf16>, vector<16x256xbf16>, vector<8x256xf32> -> vector<8x256xf32>
    %238 = arith.addf %228, %237 : vector<8x256xf32>
    %c6 = arith.constant 6 : index
    %c0_173 = arith.constant 0 : index
    %c0_174 = arith.constant 0 : index
    %239 = vector.load %arg9[%c6, %c0_173, %c0_174] : memref<9x8x16xbf16, #tpu.memory_space<vmem>>, vector<1x8x16xbf16>
    %240 = vector.shape_cast %239 : vector<1x8x16xbf16> to vector<8x16xbf16>
    %c241_i32 = arith.constant 241 : i32
    %241 = tpu.dynamic_rotate %178 by %c241_i32 dim 1 : vector<16x256xf32>, i32 -> vector<16x256xf32>
    %c6_175 = arith.constant 6 : index
    %c0_176 = arith.constant 0 : index
    %c0_177 = arith.constant 0 : index
    %242 = vector.load %arg4[%c6_175, %c0_176, %c0_177] : memref<9x1x256xf32, #tpu.memory_space<vmem>>, vector<1x1x256xf32>
    %243 = vector.shape_cast %242 : vector<1x1x256xf32> to vector<1x256xf32>
    %244 = vector.broadcast %243 : vector<1x256xf32> to vector<16x256xf32>
    %245 = arith.mulf %241, %244 : vector<16x256xf32>
    %246 = arith.truncf %245 : vector<16x256xf32> to vector<16x256xbf16>
    %cst_178 = arith.constant dense<0.000000e+00> : vector<8x256xf32>
    %247 = tpu.matmul %240, %246, %cst_178 {dimension_numbers = #tpu.dot_dimension_numbers<[1], [0], [0], [1], [0, 0, 1, 1], [], []>} : vector<8x16xbf16>, vector<16x256xbf16>, vector<8x256xf32> -> vector<8x256xf32>
    %248 = arith.addf %238, %247 : vector<8x256xf32>
    %c7 = arith.constant 7 : index
    %c0_179 = arith.constant 0 : index
    %c0_180 = arith.constant 0 : index
    %249 = vector.load %arg9[%c7, %c0_179, %c0_180] : memref<9x8x16xbf16, #tpu.memory_space<vmem>>, vector<1x8x16xbf16>
    %250 = vector.shape_cast %249 : vector<1x8x16xbf16> to vector<8x16xbf16>
    %c240_i32 = arith.constant 240 : i32
    %251 = tpu.dynamic_rotate %178 by %c240_i32 dim 1 : vector<16x256xf32>, i32 -> vector<16x256xf32>
    %c7_181 = arith.constant 7 : index
    %c0_182 = arith.constant 0 : index
    %c0_183 = arith.constant 0 : index
    %252 = vector.load %arg4[%c7_181, %c0_182, %c0_183] : memref<9x1x256xf32, #tpu.memory_space<vmem>>, vector<1x1x256xf32>
    %253 = vector.shape_cast %252 : vector<1x1x256xf32> to vector<1x256xf32>
    %254 = vector.broadcast %253 : vector<1x256xf32> to vector<16x256xf32>
    %255 = arith.mulf %251, %254 : vector<16x256xf32>
    %256 = arith.truncf %255 : vector<16x256xf32> to vector<16x256xbf16>
    %cst_184 = arith.constant dense<0.000000e+00> : vector<8x256xf32>
    %257 = tpu.matmul %250, %256, %cst_184 {dimension_numbers = #tpu.dot_dimension_numbers<[1], [0], [0], [1], [0, 0, 1, 1], [], []>} : vector<8x16xbf16>, vector<16x256xbf16>, vector<8x256xf32> -> vector<8x256xf32>
    %258 = arith.addf %248, %257 : vector<8x256xf32>
    %c8_185 = arith.constant 8 : index
    %c0_186 = arith.constant 0 : index
    %c0_187 = arith.constant 0 : index
    %259 = vector.load %arg9[%c8_185, %c0_186, %c0_187] : memref<9x8x16xbf16, #tpu.memory_space<vmem>>, vector<1x8x16xbf16>
    %260 = vector.shape_cast %259 : vector<1x8x16xbf16> to vector<8x16xbf16>
    %c239_i32 = arith.constant 239 : i32
    %261 = tpu.dynamic_rotate %178 by %c239_i32 dim 1 : vector<16x256xf32>, i32 -> vector<16x256xf32>
    %c8_188 = arith.constant 8 : index
    %c0_189 = arith.constant 0 : index
    %c0_190 = arith.constant 0 : index
    %262 = vector.load %arg4[%c8_188, %c0_189, %c0_190] : memref<9x1x256xf32, #tpu.memory_space<vmem>>, vector<1x1x256xf32>
    %263 = vector.shape_cast %262 : vector<1x1x256xf32> to vector<1x256xf32>
    %264 = vector.broadcast %263 : vector<1x256xf32> to vector<16x256xf32>
    %265 = arith.mulf %261, %264 : vector<16x256xf32>
    %266 = arith.truncf %265 : vector<16x256xf32> to vector<16x256xbf16>
    %cst_191 = arith.constant dense<0.000000e+00> : vector<8x256xf32>
    %267 = tpu.matmul %260, %266, %cst_191 {dimension_numbers = #tpu.dot_dimension_numbers<[1], [0], [0], [1], [0, 0, 1, 1], [], []>} : vector<8x16xbf16>, vector<16x256xbf16>, vector<8x256xf32> -> vector<8x256xf32>
    %268 = arith.addf %258, %267 : vector<8x256xf32>
    %c0_192 = arith.constant 0 : index
    %c0_193 = arith.constant 0 : index
    %269 = vector.load %arg10[%c0_192, %c0_193] : memref<8x1xf32, #tpu.memory_space<vmem>>, vector<8x1xf32>
    %270 = vector.broadcast %269 : vector<8x1xf32> to vector<8x256xf32>
    %271 = arith.addf %268, %270 : vector<8x256xf32>
    %c0_194 = arith.constant 0 : index
    %c0_195 = arith.constant 0 : index
    %c0_196 = arith.constant 0 : index
    %272 = vector.load %arg11[%c0_194, %c0_195, %c0_196] : memref<2x8x1xf32, #tpu.memory_space<vmem>>, vector<1x8x1xf32>
    %273 = vector.shape_cast %272 : vector<1x8x1xf32> to vector<8x1xf32>
    %274 = vector.broadcast %273 : vector<8x1xf32> to vector<8x256xf32>
    %275 = arith.addf %271, %274 : vector<8x256xf32>
    %c0_197 = arith.constant 0 : index
    %c0_198 = arith.constant 0 : index
    %c0_199 = arith.constant 0 : index
    %276 = vector.load %arg20[%c0_197, %c0_198, %c0_199] : memref<2x8x256xf32, #tpu.memory_space<vmem>>, vector<1x8x256xf32>
    %277 = vector.shape_cast %276 : vector<1x8x256xf32> to vector<8x256xf32>
    %278 = vector.shape_cast %275 : vector<8x256xf32> to vector<1x8x256xf32>
    tpu.vector_store %arg20[%c0_197, %c0_198, %c0_199], %278 {strides = array<i32>} : memref<2x8x256xf32, #tpu.memory_space<vmem>>, vector<1x8x256xf32>,
    %cst_200 = arith.constant dense<0.000000e+00> : vector<8xf32>
    %279 = vector.multi_reduction <add>, %275, %cst_200 [1] : vector<8x256xf32> to vector<8xf32>
    %280 = vector.shape_cast %279 : vector<8xf32> to vector<8x1xf32>
    %281 = arith.addf %150, %280 : vector<8x1xf32>
    %282 = arith.mulf %275, %275 : vector<8x256xf32>
    %cst_201 = arith.constant dense<0.000000e+00> : vector<8xf32>
    %283 = vector.multi_reduction <add>, %282, %cst_201 [1] : vector<8x256xf32> to vector<8xf32>
    %284 = vector.shape_cast %283 : vector<8xf32> to vector<8x1xf32>
    %285 = arith.addf %151, %284 : vector<8x1xf32>
    %c1_202 = arith.constant 1 : index
    %c0_203 = arith.constant 0 : index
    %c0_204 = arith.constant 0 : index
    %286 = vector.load %arg19[%c1_202, %c0_203, %c0_204] : memref<2x16x256xf32, #tpu.memory_space<vmem>>, vector<1x8x256xf32>
    %287 = vector.shape_cast %286 : vector<1x8x256xf32> to vector<8x256xf32>
    %288 = vector.broadcast %131 : vector<8x1xf32> to vector<8x256xf32>
    %289 = arith.mulf %287, %288 : vector<8x256xf32>
    %290 = vector.broadcast %133 : vector<8x1xf32> to vector<8x256xf32>
    %291 = arith.addf %289, %290 : vector<8x256xf32>
    %292 = arith.negf %291 : vector<8x256xf32>
    %293 = math.exp %292 : vector<8x256xf32>
    %cst_205 = arith.constant 1.000000e+00 : f32
    %294 = vector.broadcast %cst_205 : f32 to vector<8x256xf32>
    %295 = arith.addf %294, %293 : vector<8x256xf32>
    %296 = arith.divf %294, %295 : vector<8x256xf32>
    %297 = arith.mulf %291, %296 : vector<8x256xf32>
    %c0_206 = arith.constant 0 : index
    %c0_207 = arith.constant 0 : index
    %298 = vector.load %arg21[%c0_206, %c0_207] : memref<16x256xf32, #tpu.memory_space<vmem>>, vector<8x256xf32>
    tpu.vector_store %arg21[%c0_206, %c0_207], %297 {strides = array<i32>} : memref<16x256xf32, #tpu.memory_space<vmem>>, vector<8x256xf32>,
    %c1_208 = arith.constant 1 : index
    %c8_209 = arith.constant 8 : index
    %c0_210 = arith.constant 0 : index
    %299 = vector.load %arg19[%c1_208, %c8_209, %c0_210] : memref<2x16x256xf32, #tpu.memory_space<vmem>>, vector<1x8x256xf32>
    %300 = vector.shape_cast %299 : vector<1x8x256xf32> to vector<8x256xf32>
    %301 = vector.broadcast %147 : vector<8x1xf32> to vector<8x256xf32>
    %302 = arith.mulf %300, %301 : vector<8x256xf32>
    %303 = vector.broadcast %149 : vector<8x1xf32> to vector<8x256xf32>
    %304 = arith.addf %302, %303 : vector<8x256xf32>
    %305 = arith.negf %304 : vector<8x256xf32>
    %306 = math.exp %305 : vector<8x256xf32>
    %cst_211 = arith.constant 1.000000e+00 : f32
    %307 = vector.broadcast %cst_211 : f32 to vector<8x256xf32>
    %308 = arith.addf %307, %306 : vector<8x256xf32>
    %309 = arith.divf %307, %308 : vector<8x256xf32>
    %310 = arith.mulf %304, %309 : vector<8x256xf32>
    %c8_212 = arith.constant 8 : index
    %c0_213 = arith.constant 0 : index
    %311 = vector.load %arg21[%c8_212, %c0_213] : memref<16x256xf32, #tpu.memory_space<vmem>>, vector<8x256xf32>
    tpu.vector_store %arg21[%c8_212, %c0_213], %310 {strides = array<i32>} : memref<16x256xf32, #tpu.memory_space<vmem>>, vector<8x256xf32>,
    %c0_214 = arith.constant 0 : index
    %c0_215 = arith.constant 0 : index
    %312 = vector.load %arg21[%c0_214, %c0_215] : memref<16x256xf32, #tpu.memory_space<vmem>>, vector<16x256xf32>
    %cst_216 = arith.constant 0.000000e+00 : f32
    %313 = vector.broadcast %cst_216 : f32 to vector<8x256xf32>
    %c0_217 = arith.constant 0 : index
    %c0_218 = arith.constant 0 : index
    %c0_219 = arith.constant 0 : index
    %314 = vector.load %arg9[%c0_217, %c0_218, %c0_219] : memref<9x8x16xbf16, #tpu.memory_space<vmem>>, vector<1x8x16xbf16>
    %315 = vector.shape_cast %314 : vector<1x8x16xbf16> to vector<8x16xbf16>
    %c17_i32_220 = arith.constant 17 : i32
    %316 = tpu.dynamic_rotate %312 by %c17_i32_220 dim 1 : vector<16x256xf32>, i32 -> vector<16x256xf32>
    %c0_221 = arith.constant 0 : index
    %c0_222 = arith.constant 0 : index
    %c0_223 = arith.constant 0 : index
    %317 = vector.load %arg4[%c0_221, %c0_222, %c0_223] : memref<9x1x256xf32, #tpu.memory_space<vmem>>, vector<1x1x256xf32>
    %318 = vector.shape_cast %317 : vector<1x1x256xf32> to vector<1x256xf32>
    %319 = vector.broadcast %318 : vector<1x256xf32> to vector<16x256xf32>
    %320 = arith.mulf %316, %319 : vector<16x256xf32>
    %321 = arith.truncf %320 : vector<16x256xf32> to vector<16x256xbf16>
    %cst_224 = arith.constant dense<0.000000e+00> : vector<8x256xf32>
    %322 = tpu.matmul %315, %321, %cst_224 {dimension_numbers = #tpu.dot_dimension_numbers<[1], [0], [0], [1], [0, 0, 1, 1], [], []>} : vector<8x16xbf16>, vector<16x256xbf16>, vector<8x256xf32> -> vector<8x256xf32>
    %323 = arith.addf %313, %322 : vector<8x256xf32>
    %c1_225 = arith.constant 1 : index
    %c0_226 = arith.constant 0 : index
    %c0_227 = arith.constant 0 : index
    %324 = vector.load %arg9[%c1_225, %c0_226, %c0_227] : memref<9x8x16xbf16, #tpu.memory_space<vmem>>, vector<1x8x16xbf16>
    %325 = vector.shape_cast %324 : vector<1x8x16xbf16> to vector<8x16xbf16>
    %c16_i32_228 = arith.constant 16 : i32
    %326 = tpu.dynamic_rotate %312 by %c16_i32_228 dim 1 : vector<16x256xf32>, i32 -> vector<16x256xf32>
    %c1_229 = arith.constant 1 : index
    %c0_230 = arith.constant 0 : index
    %c0_231 = arith.constant 0 : index
    %327 = vector.load %arg4[%c1_229, %c0_230, %c0_231] : memref<9x1x256xf32, #tpu.memory_space<vmem>>, vector<1x1x256xf32>
    %328 = vector.shape_cast %327 : vector<1x1x256xf32> to vector<1x256xf32>
    %329 = vector.broadcast %328 : vector<1x256xf32> to vector<16x256xf32>
    %330 = arith.mulf %326, %329 : vector<16x256xf32>
    %331 = arith.truncf %330 : vector<16x256xf32> to vector<16x256xbf16>
    %cst_232 = arith.constant dense<0.000000e+00> : vector<8x256xf32>
    %332 = tpu.matmul %325, %331, %cst_232 {dimension_numbers = #tpu.dot_dimension_numbers<[1], [0], [0], [1], [0, 0, 1, 1], [], []>} : vector<8x16xbf16>, vector<16x256xbf16>, vector<8x256xf32> -> vector<8x256xf32>
    %333 = arith.addf %323, %332 : vector<8x256xf32>
    %c2_233 = arith.constant 2 : index
    %c0_234 = arith.constant 0 : index
    %c0_235 = arith.constant 0 : index
    %334 = vector.load %arg9[%c2_233, %c0_234, %c0_235] : memref<9x8x16xbf16, #tpu.memory_space<vmem>>, vector<1x8x16xbf16>
    %335 = vector.shape_cast %334 : vector<1x8x16xbf16> to vector<8x16xbf16>
    %c15_i32_236 = arith.constant 15 : i32
    %336 = tpu.dynamic_rotate %312 by %c15_i32_236 dim 1 : vector<16x256xf32>, i32 -> vector<16x256xf32>
    %c2_237 = arith.constant 2 : index
    %c0_238 = arith.constant 0 : index
    %c0_239 = arith.constant 0 : index
    %337 = vector.load %arg4[%c2_237, %c0_238, %c0_239] : memref<9x1x256xf32, #tpu.memory_space<vmem>>, vector<1x1x256xf32>
    %338 = vector.shape_cast %337 : vector<1x1x256xf32> to vector<1x256xf32>
    %339 = vector.broadcast %338 : vector<1x256xf32> to vector<16x256xf32>
    %340 = arith.mulf %336, %339 : vector<16x256xf32>
    %341 = arith.truncf %340 : vector<16x256xf32> to vector<16x256xbf16>
    %cst_240 = arith.constant dense<0.000000e+00> : vector<8x256xf32>
    %342 = tpu.matmul %335, %341, %cst_240 {dimension_numbers = #tpu.dot_dimension_numbers<[1], [0], [0], [1], [0, 0, 1, 1], [], []>} : vector<8x16xbf16>, vector<16x256xbf16>, vector<8x256xf32> -> vector<8x256xf32>
    %343 = arith.addf %333, %342 : vector<8x256xf32>
    %c3_241 = arith.constant 3 : index
    %c0_242 = arith.constant 0 : index
    %c0_243 = arith.constant 0 : index
    %344 = vector.load %arg9[%c3_241, %c0_242, %c0_243] : memref<9x8x16xbf16, #tpu.memory_space<vmem>>, vector<1x8x16xbf16>
    %345 = vector.shape_cast %344 : vector<1x8x16xbf16> to vector<8x16xbf16>
    %c1_i32_244 = arith.constant 1 : i32
    %346 = tpu.dynamic_rotate %312 by %c1_i32_244 dim 1 : vector<16x256xf32>, i32 -> vector<16x256xf32>
    %c3_245 = arith.constant 3 : index
    %c0_246 = arith.constant 0 : index
    %c0_247 = arith.constant 0 : index
    %347 = vector.load %arg4[%c3_245, %c0_246, %c0_247] : memref<9x1x256xf32, #tpu.memory_space<vmem>>, vector<1x1x256xf32>
    %348 = vector.shape_cast %347 : vector<1x1x256xf32> to vector<1x256xf32>
    %349 = vector.broadcast %348 : vector<1x256xf32> to vector<16x256xf32>
    %350 = arith.mulf %346, %349 : vector<16x256xf32>
    %351 = arith.truncf %350 : vector<16x256xf32> to vector<16x256xbf16>
    %cst_248 = arith.constant dense<0.000000e+00> : vector<8x256xf32>
    %352 = tpu.matmul %345, %351, %cst_248 {dimension_numbers = #tpu.dot_dimension_numbers<[1], [0], [0], [1], [0, 0, 1, 1], [], []>} : vector<8x16xbf16>, vector<16x256xbf16>, vector<8x256xf32> -> vector<8x256xf32>
    %353 = arith.addf %343, %352 : vector<8x256xf32>
    %c4_249 = arith.constant 4 : index
    %c0_250 = arith.constant 0 : index
    %c0_251 = arith.constant 0 : index
    %354 = vector.load %arg9[%c4_249, %c0_250, %c0_251] : memref<9x8x16xbf16, #tpu.memory_space<vmem>>, vector<1x8x16xbf16>
    %355 = vector.shape_cast %354 : vector<1x8x16xbf16> to vector<8x16xbf16>
    %c4_252 = arith.constant 4 : index
    %c0_253 = arith.constant 0 : index
    %c0_254 = arith.constant 0 : index
    %356 = vector.load %arg4[%c4_252, %c0_253, %c0_254] : memref<9x1x256xf32, #tpu.memory_space<vmem>>, vector<1x1x256xf32>
    %357 = vector.shape_cast %356 : vector<1x1x256xf32> to vector<1x256xf32>
    %358 = vector.broadcast %357 : vector<1x256xf32> to vector<16x256xf32>
    %359 = arith.mulf %312, %358 : vector<16x256xf32>
    %360 = arith.truncf %359 : vector<16x256xf32> to vector<16x256xbf16>
    %cst_255 = arith.constant dense<0.000000e+00> : vector<8x256xf32>
    %361 = tpu.matmul %355, %360, %cst_255 {dimension_numbers = #tpu.dot_dimension_numbers<[1], [0], [0], [1], [0, 0, 1, 1], [], []>} : vector<8x16xbf16>, vector<16x256xbf16>, vector<8x256xf32> -> vector<8x256xf32>
    %362 = arith.addf %353, %361 : vector<8x256xf32>
    %c5_256 = arith.constant 5 : index
    %c0_257 = arith.constant 0 : index
    %c0_258 = arith.constant 0 : index
    %363 = vector.load %arg9[%c5_256, %c0_257, %c0_258] : memref<9x8x16xbf16, #tpu.memory_space<vmem>>, vector<1x8x16xbf16>
    %364 = vector.shape_cast %363 : vector<1x8x16xbf16> to vector<8x16xbf16>
    %c255_i32_259 = arith.constant 255 : i32
    %365 = tpu.dynamic_rotate %312 by %c255_i32_259 dim 1 : vector<16x256xf32>, i32 -> vector<16x256xf32>
    %c5_260 = arith.constant 5 : index
    %c0_261 = arith.constant 0 : index
    %c0_262 = arith.constant 0 : index
    %366 = vector.load %arg4[%c5_260, %c0_261, %c0_262] : memref<9x1x256xf32, #tpu.memory_space<vmem>>, vector<1x1x256xf32>
    %367 = vector.shape_cast %366 : vector<1x1x256xf32> to vector<1x256xf32>
    %368 = vector.broadcast %367 : vector<1x256xf32> to vector<16x256xf32>
    %369 = arith.mulf %365, %368 : vector<16x256xf32>
    %370 = arith.truncf %369 : vector<16x256xf32> to vector<16x256xbf16>
    %cst_263 = arith.constant dense<0.000000e+00> : vector<8x256xf32>
    %371 = tpu.matmul %364, %370, %cst_263 {dimension_numbers = #tpu.dot_dimension_numbers<[1], [0], [0], [1], [0, 0, 1, 1], [], []>} : vector<8x16xbf16>, vector<16x256xbf16>, vector<8x256xf32> -> vector<8x256xf32>
    %372 = arith.addf %362, %371 : vector<8x256xf32>
    %c6_264 = arith.constant 6 : index
    %c0_265 = arith.constant 0 : index
    %c0_266 = arith.constant 0 : index
    %373 = vector.load %arg9[%c6_264, %c0_265, %c0_266] : memref<9x8x16xbf16, #tpu.memory_space<vmem>>, vector<1x8x16xbf16>
    %374 = vector.shape_cast %373 : vector<1x8x16xbf16> to vector<8x16xbf16>
    %c241_i32_267 = arith.constant 241 : i32
    %375 = tpu.dynamic_rotate %312 by %c241_i32_267 dim 1 : vector<16x256xf32>, i32 -> vector<16x256xf32>
    %c6_268 = arith.constant 6 : index
    %c0_269 = arith.constant 0 : index
    %c0_270 = arith.constant 0 : index
    %376 = vector.load %arg4[%c6_268, %c0_269, %c0_270] : memref<9x1x256xf32, #tpu.memory_space<vmem>>, vector<1x1x256xf32>
    %377 = vector.shape_cast %376 : vector<1x1x256xf32> to vector<1x256xf32>
    %378 = vector.broadcast %377 : vector<1x256xf32> to vector<16x256xf32>
    %379 = arith.mulf %375, %378 : vector<16x256xf32>
    %380 = arith.truncf %379 : vector<16x256xf32> to vector<16x256xbf16>
    %cst_271 = arith.constant dense<0.000000e+00> : vector<8x256xf32>
    %381 = tpu.matmul %374, %380, %cst_271 {dimension_numbers = #tpu.dot_dimension_numbers<[1], [0], [0], [1], [0, 0, 1, 1], [], []>} : vector<8x16xbf16>, vector<16x256xbf16>, vector<8x256xf32> -> vector<8x256xf32>
    %382 = arith.addf %372, %381 : vector<8x256xf32>
    %c7_272 = arith.constant 7 : index
    %c0_273 = arith.constant 0 : index
    %c0_274 = arith.constant 0 : index
    %383 = vector.load %arg9[%c7_272, %c0_273, %c0_274] : memref<9x8x16xbf16, #tpu.memory_space<vmem>>, vector<1x8x16xbf16>
    %384 = vector.shape_cast %383 : vector<1x8x16xbf16> to vector<8x16xbf16>
    %c240_i32_275 = arith.constant 240 : i32
    %385 = tpu.dynamic_rotate %312 by %c240_i32_275 dim 1 : vector<16x256xf32>, i32 -> vector<16x256xf32>
    %c7_276 = arith.constant 7 : index
    %c0_277 = arith.constant 0 : index
    %c0_278 = arith.constant 0 : index
    %386 = vector.load %arg4[%c7_276, %c0_277, %c0_278] : memref<9x1x256xf32, #tpu.memory_space<vmem>>, vector<1x1x256xf32>
    %387 = vector.shape_cast %386 : vector<1x1x256xf32> to vector<1x256xf32>
    %388 = vector.broadcast %387 : vector<1x256xf32> to vector<16x256xf32>
    %389 = arith.mulf %385, %388 : vector<16x256xf32>
    %390 = arith.truncf %389 : vector<16x256xf32> to vector<16x256xbf16>
    %cst_279 = arith.constant dense<0.000000e+00> : vector<8x256xf32>
    %391 = tpu.matmul %384, %390, %cst_279 {dimension_numbers = #tpu.dot_dimension_numbers<[1], [0], [0], [1], [0, 0, 1, 1], [], []>} : vector<8x16xbf16>, vector<16x256xbf16>, vector<8x256xf32> -> vector<8x256xf32>
    %392 = arith.addf %382, %391 : vector<8x256xf32>
    %c8_280 = arith.constant 8 : index
    %c0_281 = arith.constant 0 : index
    %c0_282 = arith.constant 0 : index
    %393 = vector.load %arg9[%c8_280, %c0_281, %c0_282] : memref<9x8x16xbf16, #tpu.memory_space<vmem>>, vector<1x8x16xbf16>
    %394 = vector.shape_cast %393 : vector<1x8x16xbf16> to vector<8x16xbf16>
    %c239_i32_283 = arith.constant 239 : i32
    %395 = tpu.dynamic_rotate %312 by %c239_i32_283 dim 1 : vector<16x256xf32>, i32 -> vector<16x256xf32>
    %c8_284 = arith.constant 8 : index
    %c0_285 = arith.constant 0 : index
    %c0_286 = arith.constant 0 : index
    %396 = vector.load %arg4[%c8_284, %c0_285, %c0_286] : memref<9x1x256xf32, #tpu.memory_space<vmem>>, vector<1x1x256xf32>
    %397 = vector.shape_cast %396 : vector<1x1x256xf32> to vector<1x256xf32>
    %398 = vector.broadcast %397 : vector<1x256xf32> to vector<16x256xf32>
    %399 = arith.mulf %395, %398 : vector<16x256xf32>
    %400 = arith.truncf %399 : vector<16x256xf32> to vector<16x256xbf16>
    %cst_287 = arith.constant dense<0.000000e+00> : vector<8x256xf32>
    %401 = tpu.matmul %394, %400, %cst_287 {dimension_numbers = #tpu.dot_dimension_numbers<[1], [0], [0], [1], [0, 0, 1, 1], [], []>} : vector<8x16xbf16>, vector<16x256xbf16>, vector<8x256xf32> -> vector<8x256xf32>
    %402 = arith.addf %392, %401 : vector<8x256xf32>
    %c0_288 = arith.constant 0 : index
    %c0_289 = arith.constant 0 : index
    %403 = vector.load %arg10[%c0_288, %c0_289] : memref<8x1xf32, #tpu.memory_space<vmem>>, vector<8x1xf32>
    %404 = vector.broadcast %403 : vector<8x1xf32> to vector<8x256xf32>
    %405 = arith.addf %402, %404 : vector<8x256xf32>
    %c1_290 = arith.constant 1 : index
    %c0_291 = arith.constant 0 : index
    %c0_292 = arith.constant 0 : index
    %406 = vector.load %arg11[%c1_290, %c0_291, %c0_292] : memref<2x8x1xf32, #tpu.memory_space<vmem>>, vector<1x8x1xf32>
    %407 = vector.shape_cast %406 : vector<1x8x1xf32> to vector<8x1xf32>
    %408 = vector.broadcast %407 : vector<8x1xf32> to vector<8x256xf32>
    %409 = arith.addf %405, %408 : vector<8x256xf32>
    %c1_293 = arith.constant 1 : index
    %c0_294 = arith.constant 0 : index
    %c0_295 = arith.constant 0 : index
    %410 = vector.load %arg20[%c1_293, %c0_294, %c0_295] : memref<2x8x256xf32, #tpu.memory_space<vmem>>, vector<1x8x256xf32>
    %411 = vector.shape_cast %410 : vector<1x8x256xf32> to vector<8x256xf32>
    %412 = vector.shape_cast %409 : vector<8x256xf32> to vector<1x8x256xf32>
    tpu.vector_store %arg20[%c1_293, %c0_294, %c0_295], %412 {strides = array<i32>} : memref<2x8x256xf32, #tpu.memory_space<vmem>>, vector<1x8x256xf32>,
    %cst_296 = arith.constant dense<0.000000e+00> : vector<8xf32>
    %413 = vector.multi_reduction <add>, %409, %cst_296 [1] : vector<8x256xf32> to vector<8xf32>
    %414 = vector.shape_cast %413 : vector<8xf32> to vector<8x1xf32>
    %415 = arith.addf %281, %414 : vector<8x1xf32>
    %416 = arith.mulf %409, %409 : vector<8x256xf32>
    %cst_297 = arith.constant dense<0.000000e+00> : vector<8xf32>
    %417 = vector.multi_reduction <add>, %416, %cst_297 [1] : vector<8x256xf32> to vector<8xf32>
    %418 = vector.shape_cast %417 : vector<8xf32> to vector<8x1xf32>
    %419 = arith.addf %285, %418 : vector<8x1xf32>
    %c0_298 = arith.constant 0 : index
    %c0_299 = arith.constant 0 : index
    %420 = vector.load %arg12[%c0_298, %c0_299] : memref<8x1xf32, #tpu.memory_space<vmem>>, vector<8x1xf32>
    %c0_300 = arith.constant 0 : index
    %c0_301 = arith.constant 0 : index
    %421 = vector.load %arg13[%c0_300, %c0_301] : memref<8x1xf32, #tpu.memory_space<vmem>>, vector<8x1xf32>
    %cst_302 = arith.constant 5.120000e+02 : f32
    %422 = vector.broadcast %cst_302 : f32 to vector<8x1xf32>
    %423 = arith.divf %415, %422 : vector<8x1xf32>
    %cst_303 = arith.constant 5.120000e+02 : f32
    %424 = vector.broadcast %cst_303 : f32 to vector<8x1xf32>
    %425 = arith.divf %419, %424 : vector<8x1xf32>
    %426 = arith.mulf %423, %423 : vector<8x1xf32>
    %427 = arith.subf %425, %426 : vector<8x1xf32>
    %cst_304 = arith.constant 0.000000e+00 : f32
    %428 = vector.broadcast %cst_304 : f32 to vector<8x1xf32>
    %429 = arith.maximumf %427, %428 : vector<8x1xf32>
    %cst_305 = arith.constant 9.99999974E-6 : f32
    %430 = vector.broadcast %cst_305 : f32 to vector<8x1xf32>
    %431 = arith.addf %429, %430 : vector<8x1xf32>
    %432 = math.rsqrt %431 : vector<8x1xf32>
    %433 = arith.mulf %420, %432 : vector<8x1xf32>
    %434 = arith.mulf %423, %433 : vector<8x1xf32>
    %435 = arith.subf %421, %434 : vector<8x1xf32>
    %c0_306 = arith.constant 0 : index
    %c0_307 = arith.constant 0 : index
    %c0_308 = arith.constant 0 : index
    %436 = vector.load %arg20[%c0_306, %c0_307, %c0_308] : memref<2x8x256xf32, #tpu.memory_space<vmem>>, vector<1x8x256xf32>
    %437 = vector.shape_cast %436 : vector<1x8x256xf32> to vector<8x256xf32>
    %438 = vector.broadcast %433 : vector<8x1xf32> to vector<8x256xf32>
    %439 = arith.mulf %437, %438 : vector<8x256xf32>
    %440 = vector.broadcast %435 : vector<8x1xf32> to vector<8x256xf32>
    %441 = arith.addf %439, %440 : vector<8x256xf32>
    %442 = arith.negf %441 : vector<8x256xf32>
    %443 = math.exp %442 : vector<8x256xf32>
    %cst_309 = arith.constant 1.000000e+00 : f32
    %444 = vector.broadcast %cst_309 : f32 to vector<8x256xf32>
    %445 = arith.addf %444, %443 : vector<8x256xf32>
    %446 = arith.divf %444, %445 : vector<8x256xf32>
    %447 = arith.mulf %441, %446 : vector<8x256xf32>
    %cst_310 = arith.constant 0.000000e+00 : f32
    %448 = vector.broadcast %cst_310 : f32 to vector<8x256xf32>
    %c0_311 = arith.constant 0 : index
    %c0_312 = arith.constant 0 : index
    %c0_313 = arith.constant 0 : index
    %449 = vector.load %arg14[%c0_311, %c0_312, %c0_313] : memref<9x8x8xbf16, #tpu.memory_space<vmem>>, vector<1x8x8xbf16>
    %450 = vector.shape_cast %449 : vector<1x8x8xbf16> to vector<8x8xbf16>
    %c17_i32_314 = arith.constant 17 : i32
    %451 = tpu.dynamic_rotate %447 by %c17_i32_314 dim 1 : vector<8x256xf32>, i32 -> vector<8x256xf32>
    %c0_315 = arith.constant 0 : index
    %c0_316 = arith.constant 0 : index
    %c0_317 = arith.constant 0 : index
    %452 = vector.load %arg4[%c0_315, %c0_316, %c0_317] : memref<9x1x256xf32, #tpu.memory_space<vmem>>, vector<1x1x256xf32>
    %453 = vector.shape_cast %452 : vector<1x1x256xf32> to vector<1x256xf32>
    %454 = vector.broadcast %453 : vector<1x256xf32> to vector<8x256xf32>
    %455 = arith.mulf %451, %454 : vector<8x256xf32>
    %456 = arith.truncf %455 : vector<8x256xf32> to vector<8x256xbf16>
    %cst_318 = arith.constant dense<0.000000e+00> : vector<8x256xf32>
    %457 = tpu.matmul %450, %456, %cst_318 {dimension_numbers = #tpu.dot_dimension_numbers<[1], [0], [0], [1], [0, 0, 1, 1], [], []>} : vector<8x8xbf16>, vector<8x256xbf16>, vector<8x256xf32> -> vector<8x256xf32>
    %458 = arith.addf %448, %457 : vector<8x256xf32>
    %c1_319 = arith.constant 1 : index
    %c0_320 = arith.constant 0 : index
    %c0_321 = arith.constant 0 : index
    %459 = vector.load %arg14[%c1_319, %c0_320, %c0_321] : memref<9x8x8xbf16, #tpu.memory_space<vmem>>, vector<1x8x8xbf16>
    %460 = vector.shape_cast %459 : vector<1x8x8xbf16> to vector<8x8xbf16>
    %c16_i32_322 = arith.constant 16 : i32
    %461 = tpu.dynamic_rotate %447 by %c16_i32_322 dim 1 : vector<8x256xf32>, i32 -> vector<8x256xf32>
    %c1_323 = arith.constant 1 : index
    %c0_324 = arith.constant 0 : index
    %c0_325 = arith.constant 0 : index
    %462 = vector.load %arg4[%c1_323, %c0_324, %c0_325] : memref<9x1x256xf32, #tpu.memory_space<vmem>>, vector<1x1x256xf32>
    %463 = vector.shape_cast %462 : vector<1x1x256xf32> to vector<1x256xf32>
    %464 = vector.broadcast %463 : vector<1x256xf32> to vector<8x256xf32>
    %465 = arith.mulf %461, %464 : vector<8x256xf32>
    %466 = arith.truncf %465 : vector<8x256xf32> to vector<8x256xbf16>
    %cst_326 = arith.constant dense<0.000000e+00> : vector<8x256xf32>
    %467 = tpu.matmul %460, %466, %cst_326 {dimension_numbers = #tpu.dot_dimension_numbers<[1], [0], [0], [1], [0, 0, 1, 1], [], []>} : vector<8x8xbf16>, vector<8x256xbf16>, vector<8x256xf32> -> vector<8x256xf32>
    %468 = arith.addf %458, %467 : vector<8x256xf32>
    %c2_327 = arith.constant 2 : index
    %c0_328 = arith.constant 0 : index
    %c0_329 = arith.constant 0 : index
    %469 = vector.load %arg14[%c2_327, %c0_328, %c0_329] : memref<9x8x8xbf16, #tpu.memory_space<vmem>>, vector<1x8x8xbf16>
    %470 = vector.shape_cast %469 : vector<1x8x8xbf16> to vector<8x8xbf16>
    %c15_i32_330 = arith.constant 15 : i32
    %471 = tpu.dynamic_rotate %447 by %c15_i32_330 dim 1 : vector<8x256xf32>, i32 -> vector<8x256xf32>
    %c2_331 = arith.constant 2 : index
    %c0_332 = arith.constant 0 : index
    %c0_333 = arith.constant 0 : index
    %472 = vector.load %arg4[%c2_331, %c0_332, %c0_333] : memref<9x1x256xf32, #tpu.memory_space<vmem>>, vector<1x1x256xf32>
    %473 = vector.shape_cast %472 : vector<1x1x256xf32> to vector<1x256xf32>
    %474 = vector.broadcast %473 : vector<1x256xf32> to vector<8x256xf32>
    %475 = arith.mulf %471, %474 : vector<8x256xf32>
    %476 = arith.truncf %475 : vector<8x256xf32> to vector<8x256xbf16>
    %cst_334 = arith.constant dense<0.000000e+00> : vector<8x256xf32>
    %477 = tpu.matmul %470, %476, %cst_334 {dimension_numbers = #tpu.dot_dimension_numbers<[1], [0], [0], [1], [0, 0, 1, 1], [], []>} : vector<8x8xbf16>, vector<8x256xbf16>, vector<8x256xf32> -> vector<8x256xf32>
    %478 = arith.addf %468, %477 : vector<8x256xf32>
    %c3_335 = arith.constant 3 : index
    %c0_336 = arith.constant 0 : index
    %c0_337 = arith.constant 0 : index
    %479 = vector.load %arg14[%c3_335, %c0_336, %c0_337] : memref<9x8x8xbf16, #tpu.memory_space<vmem>>, vector<1x8x8xbf16>
    %480 = vector.shape_cast %479 : vector<1x8x8xbf16> to vector<8x8xbf16>
    %c1_i32_338 = arith.constant 1 : i32
    %481 = tpu.dynamic_rotate %447 by %c1_i32_338 dim 1 : vector<8x256xf32>, i32 -> vector<8x256xf32>
    %c3_339 = arith.constant 3 : index
    %c0_340 = arith.constant 0 : index
    %c0_341 = arith.constant 0 : index
    %482 = vector.load %arg4[%c3_339, %c0_340, %c0_341] : memref<9x1x256xf32, #tpu.memory_space<vmem>>, vector<1x1x256xf32>
    %483 = vector.shape_cast %482 : vector<1x1x256xf32> to vector<1x256xf32>
    %484 = vector.broadcast %483 : vector<1x256xf32> to vector<8x256xf32>
    %485 = arith.mulf %481, %484 : vector<8x256xf32>
    %486 = arith.truncf %485 : vector<8x256xf32> to vector<8x256xbf16>
    %cst_342 = arith.constant dense<0.000000e+00> : vector<8x256xf32>
    %487 = tpu.matmul %480, %486, %cst_342 {dimension_numbers = #tpu.dot_dimension_numbers<[1], [0], [0], [1], [0, 0, 1, 1], [], []>} : vector<8x8xbf16>, vector<8x256xbf16>, vector<8x256xf32> -> vector<8x256xf32>
    %488 = arith.addf %478, %487 : vector<8x256xf32>
    %c4_343 = arith.constant 4 : index
    %c0_344 = arith.constant 0 : index
    %c0_345 = arith.constant 0 : index
    %489 = vector.load %arg14[%c4_343, %c0_344, %c0_345] : memref<9x8x8xbf16, #tpu.memory_space<vmem>>, vector<1x8x8xbf16>
    %490 = vector.shape_cast %489 : vector<1x8x8xbf16> to vector<8x8xbf16>
    %c4_346 = arith.constant 4 : index
    %c0_347 = arith.constant 0 : index
    %c0_348 = arith.constant 0 : index
    %491 = vector.load %arg4[%c4_346, %c0_347, %c0_348] : memref<9x1x256xf32, #tpu.memory_space<vmem>>, vector<1x1x256xf32>
    %492 = vector.shape_cast %491 : vector<1x1x256xf32> to vector<1x256xf32>
    %493 = vector.broadcast %492 : vector<1x256xf32> to vector<8x256xf32>
    %494 = arith.mulf %447, %493 : vector<8x256xf32>
    %495 = arith.truncf %494 : vector<8x256xf32> to vector<8x256xbf16>
    %cst_349 = arith.constant dense<0.000000e+00> : vector<8x256xf32>
    %496 = tpu.matmul %490, %495, %cst_349 {dimension_numbers = #tpu.dot_dimension_numbers<[1], [0], [0], [1], [0, 0, 1, 1], [], []>} : vector<8x8xbf16>, vector<8x256xbf16>, vector<8x256xf32> -> vector<8x256xf32>
    %497 = arith.addf %488, %496 : vector<8x256xf32>
    %c5_350 = arith.constant 5 : index
    %c0_351 = arith.constant 0 : index
    %c0_352 = arith.constant 0 : index
    %498 = vector.load %arg14[%c5_350, %c0_351, %c0_352] : memref<9x8x8xbf16, #tpu.memory_space<vmem>>, vector<1x8x8xbf16>
    %499 = vector.shape_cast %498 : vector<1x8x8xbf16> to vector<8x8xbf16>
    %c255_i32_353 = arith.constant 255 : i32
    %500 = tpu.dynamic_rotate %447 by %c255_i32_353 dim 1 : vector<8x256xf32>, i32 -> vector<8x256xf32>
    %c5_354 = arith.constant 5 : index
    %c0_355 = arith.constant 0 : index
    %c0_356 = arith.constant 0 : index
    %501 = vector.load %arg4[%c5_354, %c0_355, %c0_356] : memref<9x1x256xf32, #tpu.memory_space<vmem>>, vector<1x1x256xf32>
    %502 = vector.shape_cast %501 : vector<1x1x256xf32> to vector<1x256xf32>
    %503 = vector.broadcast %502 : vector<1x256xf32> to vector<8x256xf32>
    %504 = arith.mulf %500, %503 : vector<8x256xf32>
    %505 = arith.truncf %504 : vector<8x256xf32> to vector<8x256xbf16>
    %cst_357 = arith.constant dense<0.000000e+00> : vector<8x256xf32>
    %506 = tpu.matmul %499, %505, %cst_357 {dimension_numbers = #tpu.dot_dimension_numbers<[1], [0], [0], [1], [0, 0, 1, 1], [], []>} : vector<8x8xbf16>, vector<8x256xbf16>, vector<8x256xf32> -> vector<8x256xf32>
    %507 = arith.addf %497, %506 : vector<8x256xf32>
    %c6_358 = arith.constant 6 : index
    %c0_359 = arith.constant 0 : index
    %c0_360 = arith.constant 0 : index
    %508 = vector.load %arg14[%c6_358, %c0_359, %c0_360] : memref<9x8x8xbf16, #tpu.memory_space<vmem>>, vector<1x8x8xbf16>
    %509 = vector.shape_cast %508 : vector<1x8x8xbf16> to vector<8x8xbf16>
    %c241_i32_361 = arith.constant 241 : i32
    %510 = tpu.dynamic_rotate %447 by %c241_i32_361 dim 1 : vector<8x256xf32>, i32 -> vector<8x256xf32>
    %c6_362 = arith.constant 6 : index
    %c0_363 = arith.constant 0 : index
    %c0_364 = arith.constant 0 : index
    %511 = vector.load %arg4[%c6_362, %c0_363, %c0_364] : memref<9x1x256xf32, #tpu.memory_space<vmem>>, vector<1x1x256xf32>
    %512 = vector.shape_cast %511 : vector<1x1x256xf32> to vector<1x256xf32>
    %513 = vector.broadcast %512 : vector<1x256xf32> to vector<8x256xf32>
    %514 = arith.mulf %510, %513 : vector<8x256xf32>
    %515 = arith.truncf %514 : vector<8x256xf32> to vector<8x256xbf16>
    %cst_365 = arith.constant dense<0.000000e+00> : vector<8x256xf32>
    %516 = tpu.matmul %509, %515, %cst_365 {dimension_numbers = #tpu.dot_dimension_numbers<[1], [0], [0], [1], [0, 0, 1, 1], [], []>} : vector<8x8xbf16>, vector<8x256xbf16>, vector<8x256xf32> -> vector<8x256xf32>
    %517 = arith.addf %507, %516 : vector<8x256xf32>
    %c7_366 = arith.constant 7 : index
    %c0_367 = arith.constant 0 : index
    %c0_368 = arith.constant 0 : index
    %518 = vector.load %arg14[%c7_366, %c0_367, %c0_368] : memref<9x8x8xbf16, #tpu.memory_space<vmem>>, vector<1x8x8xbf16>
    %519 = vector.shape_cast %518 : vector<1x8x8xbf16> to vector<8x8xbf16>
    %c240_i32_369 = arith.constant 240 : i32
    %520 = tpu.dynamic_rotate %447 by %c240_i32_369 dim 1 : vector<8x256xf32>, i32 -> vector<8x256xf32>
    %c7_370 = arith.constant 7 : index
    %c0_371 = arith.constant 0 : index
    %c0_372 = arith.constant 0 : index
    %521 = vector.load %arg4[%c7_370, %c0_371, %c0_372] : memref<9x1x256xf32, #tpu.memory_space<vmem>>, vector<1x1x256xf32>
    %522 = vector.shape_cast %521 : vector<1x1x256xf32> to vector<1x256xf32>
    %523 = vector.broadcast %522 : vector<1x256xf32> to vector<8x256xf32>
    %524 = arith.mulf %520, %523 : vector<8x256xf32>
    %525 = arith.truncf %524 : vector<8x256xf32> to vector<8x256xbf16>
    %cst_373 = arith.constant dense<0.000000e+00> : vector<8x256xf32>
    %526 = tpu.matmul %519, %525, %cst_373 {dimension_numbers = #tpu.dot_dimension_numbers<[1], [0], [0], [1], [0, 0, 1, 1], [], []>} : vector<8x8xbf16>, vector<8x256xbf16>, vector<8x256xf32> -> vector<8x256xf32>
    %527 = arith.addf %517, %526 : vector<8x256xf32>
    %c8_374 = arith.constant 8 : index
    %c0_375 = arith.constant 0 : index
    %c0_376 = arith.constant 0 : index
    %528 = vector.load %arg14[%c8_374, %c0_375, %c0_376] : memref<9x8x8xbf16, #tpu.memory_space<vmem>>, vector<1x8x8xbf16>
    %529 = vector.shape_cast %528 : vector<1x8x8xbf16> to vector<8x8xbf16>
    %c239_i32_377 = arith.constant 239 : i32
    %530 = tpu.dynamic_rotate %447 by %c239_i32_377 dim 1 : vector<8x256xf32>, i32 -> vector<8x256xf32>
    %c8_378 = arith.constant 8 : index
    %c0_379 = arith.constant 0 : index
    %c0_380 = arith.constant 0 : index
    %531 = vector.load %arg4[%c8_378, %c0_379, %c0_380] : memref<9x1x256xf32, #tpu.memory_space<vmem>>, vector<1x1x256xf32>
    %532 = vector.shape_cast %531 : vector<1x1x256xf32> to vector<1x256xf32>
    %533 = vector.broadcast %532 : vector<1x256xf32> to vector<8x256xf32>
    %534 = arith.mulf %530, %533 : vector<8x256xf32>
    %535 = arith.truncf %534 : vector<8x256xf32> to vector<8x256xbf16>
    %cst_381 = arith.constant dense<0.000000e+00> : vector<8x256xf32>
    %536 = tpu.matmul %529, %535, %cst_381 {dimension_numbers = #tpu.dot_dimension_numbers<[1], [0], [0], [1], [0, 0, 1, 1], [], []>} : vector<8x8xbf16>, vector<8x256xbf16>, vector<8x256xf32> -> vector<8x256xf32>
    %537 = arith.addf %527, %536 : vector<8x256xf32>
    %c0_382 = arith.constant 0 : index
    %c0_383 = arith.constant 0 : index
    %538 = vector.load %arg16[%c0_382, %c0_383] : memref<8x16xbf16, #tpu.memory_space<vmem>>, vector<8x16xbf16>
    %c0_384 = arith.constant 0 : index
    %c0_385 = arith.constant 0 : index
    %c0_386 = arith.constant 0 : index
    %539 = vector.load %arg19[%c0_384, %c0_385, %c0_386] : memref<2x16x256xf32, #tpu.memory_space<vmem>>, vector<1x16x256xf32>
    %540 = vector.shape_cast %539 : vector<1x16x256xf32> to vector<16x256xf32>
    %541 = arith.truncf %540 : vector<16x256xf32> to vector<16x256xbf16>
    %cst_387 = arith.constant dense<0.000000e+00> : vector<8x256xf32>
    %542 = tpu.matmul %538, %541, %cst_387 {dimension_numbers = #tpu.dot_dimension_numbers<[1], [0], [0], [1], [0, 0, 1, 1], [], []>} : vector<8x16xbf16>, vector<16x256xbf16>, vector<8x256xf32> -> vector<8x256xf32>
    %c0_388 = arith.constant 0 : index
    %c0_389 = arith.constant 0 : index
    %543 = vector.load %arg15[%c0_388, %c0_389] : memref<8x1xf32, #tpu.memory_space<vmem>>, vector<8x1xf32>
    %544 = vector.broadcast %543 : vector<8x1xf32> to vector<8x256xf32>
    %545 = arith.addf %537, %544 : vector<8x256xf32>
    %546 = arith.addf %545, %542 : vector<8x256xf32>
    %c0_390 = arith.constant 0 : index
    %c0_391 = arith.constant 0 : index
    %547 = vector.load %arg17[%c0_390, %c0_391] : memref<8x1xf32, #tpu.memory_space<vmem>>, vector<8x1xf32>
    %548 = vector.broadcast %547 : vector<8x1xf32> to vector<8x256xf32>
    %549 = arith.addf %546, %548 : vector<8x256xf32>
    %c0_392 = arith.constant 0 : index
    %c0_393 = arith.constant 0 : index
    %c0_394 = arith.constant 0 : index
    %550 = vector.load %arg18[%c0_392, %c0_393, %c0_394] : memref<2x8x256xf32, #tpu.memory_space<vmem>>, vector<1x8x256xf32>
    %551 = vector.shape_cast %550 : vector<1x8x256xf32> to vector<8x256xf32>
    %552 = vector.shape_cast %549 : vector<8x256xf32> to vector<1x8x256xf32>
    tpu.vector_store %arg18[%c0_392, %c0_393, %c0_394], %552 {strides = array<i32>} : memref<2x8x256xf32, #tpu.memory_space<vmem>>, vector<1x8x256xf32>,
    %c1_395 = arith.constant 1 : index
    %c0_396 = arith.constant 0 : index
    %c0_397 = arith.constant 0 : index
    %553 = vector.load %arg20[%c1_395, %c0_396, %c0_397] : memref<2x8x256xf32, #tpu.memory_space<vmem>>, vector<1x8x256xf32>
    %554 = vector.shape_cast %553 : vector<1x8x256xf32> to vector<8x256xf32>
    %555 = vector.broadcast %433 : vector<8x1xf32> to vector<8x256xf32>
    %556 = arith.mulf %554, %555 : vector<8x256xf32>
    %557 = vector.broadcast %435 : vector<8x1xf32> to vector<8x256xf32>
    %558 = arith.addf %556, %557 : vector<8x256xf32>
    %559 = arith.negf %558 : vector<8x256xf32>
    %560 = math.exp %559 : vector<8x256xf32>
    %cst_398 = arith.constant 1.000000e+00 : f32
    %561 = vector.broadcast %cst_398 : f32 to vector<8x256xf32>
    %562 = arith.addf %561, %560 : vector<8x256xf32>
    %563 = arith.divf %561, %562 : vector<8x256xf32>
    %564 = arith.mulf %558, %563 : vector<8x256xf32>
    %cst_399 = arith.constant 0.000000e+00 : f32
    %565 = vector.broadcast %cst_399 : f32 to vector<8x256xf32>
    %c0_400 = arith.constant 0 : index
    %c0_401 = arith.constant 0 : index
    %c0_402 = arith.constant 0 : index
    %566 = vector.load %arg14[%c0_400, %c0_401, %c0_402] : memref<9x8x8xbf16, #tpu.memory_space<vmem>>, vector<1x8x8xbf16>
    %567 = vector.shape_cast %566 : vector<1x8x8xbf16> to vector<8x8xbf16>
    %c17_i32_403 = arith.constant 17 : i32
    %568 = tpu.dynamic_rotate %564 by %c17_i32_403 dim 1 : vector<8x256xf32>, i32 -> vector<8x256xf32>
    %c0_404 = arith.constant 0 : index
    %c0_405 = arith.constant 0 : index
    %c0_406 = arith.constant 0 : index
    %569 = vector.load %arg4[%c0_404, %c0_405, %c0_406] : memref<9x1x256xf32, #tpu.memory_space<vmem>>, vector<1x1x256xf32>
    %570 = vector.shape_cast %569 : vector<1x1x256xf32> to vector<1x256xf32>
    %571 = vector.broadcast %570 : vector<1x256xf32> to vector<8x256xf32>
    %572 = arith.mulf %568, %571 : vector<8x256xf32>
    %573 = arith.truncf %572 : vector<8x256xf32> to vector<8x256xbf16>
    %cst_407 = arith.constant dense<0.000000e+00> : vector<8x256xf32>
    %574 = tpu.matmul %567, %573, %cst_407 {dimension_numbers = #tpu.dot_dimension_numbers<[1], [0], [0], [1], [0, 0, 1, 1], [], []>} : vector<8x8xbf16>, vector<8x256xbf16>, vector<8x256xf32> -> vector<8x256xf32>
    %575 = arith.addf %565, %574 : vector<8x256xf32>
    %c1_408 = arith.constant 1 : index
    %c0_409 = arith.constant 0 : index
    %c0_410 = arith.constant 0 : index
    %576 = vector.load %arg14[%c1_408, %c0_409, %c0_410] : memref<9x8x8xbf16, #tpu.memory_space<vmem>>, vector<1x8x8xbf16>
    %577 = vector.shape_cast %576 : vector<1x8x8xbf16> to vector<8x8xbf16>
    %c16_i32_411 = arith.constant 16 : i32
    %578 = tpu.dynamic_rotate %564 by %c16_i32_411 dim 1 : vector<8x256xf32>, i32 -> vector<8x256xf32>
    %c1_412 = arith.constant 1 : index
    %c0_413 = arith.constant 0 : index
    %c0_414 = arith.constant 0 : index
    %579 = vector.load %arg4[%c1_412, %c0_413, %c0_414] : memref<9x1x256xf32, #tpu.memory_space<vmem>>, vector<1x1x256xf32>
    %580 = vector.shape_cast %579 : vector<1x1x256xf32> to vector<1x256xf32>
    %581 = vector.broadcast %580 : vector<1x256xf32> to vector<8x256xf32>
    %582 = arith.mulf %578, %581 : vector<8x256xf32>
    %583 = arith.truncf %582 : vector<8x256xf32> to vector<8x256xbf16>
    %cst_415 = arith.constant dense<0.000000e+00> : vector<8x256xf32>
    %584 = tpu.matmul %577, %583, %cst_415 {dimension_numbers = #tpu.dot_dimension_numbers<[1], [0], [0], [1], [0, 0, 1, 1], [], []>} : vector<8x8xbf16>, vector<8x256xbf16>, vector<8x256xf32> -> vector<8x256xf32>
    %585 = arith.addf %575, %584 : vector<8x256xf32>
    %c2_416 = arith.constant 2 : index
    %c0_417 = arith.constant 0 : index
    %c0_418 = arith.constant 0 : index
    %586 = vector.load %arg14[%c2_416, %c0_417, %c0_418] : memref<9x8x8xbf16, #tpu.memory_space<vmem>>, vector<1x8x8xbf16>
    %587 = vector.shape_cast %586 : vector<1x8x8xbf16> to vector<8x8xbf16>
    %c15_i32_419 = arith.constant 15 : i32
    %588 = tpu.dynamic_rotate %564 by %c15_i32_419 dim 1 : vector<8x256xf32>, i32 -> vector<8x256xf32>
    %c2_420 = arith.constant 2 : index
    %c0_421 = arith.constant 0 : index
    %c0_422 = arith.constant 0 : index
    %589 = vector.load %arg4[%c2_420, %c0_421, %c0_422] : memref<9x1x256xf32, #tpu.memory_space<vmem>>, vector<1x1x256xf32>
    %590 = vector.shape_cast %589 : vector<1x1x256xf32> to vector<1x256xf32>
    %591 = vector.broadcast %590 : vector<1x256xf32> to vector<8x256xf32>
    %592 = arith.mulf %588, %591 : vector<8x256xf32>
    %593 = arith.truncf %592 : vector<8x256xf32> to vector<8x256xbf16>
    %cst_423 = arith.constant dense<0.000000e+00> : vector<8x256xf32>
    %594 = tpu.matmul %587, %593, %cst_423 {dimension_numbers = #tpu.dot_dimension_numbers<[1], [0], [0], [1], [0, 0, 1, 1], [], []>} : vector<8x8xbf16>, vector<8x256xbf16>, vector<8x256xf32> -> vector<8x256xf32>
    %595 = arith.addf %585, %594 : vector<8x256xf32>
    %c3_424 = arith.constant 3 : index
    %c0_425 = arith.constant 0 : index
    %c0_426 = arith.constant 0 : index
    %596 = vector.load %arg14[%c3_424, %c0_425, %c0_426] : memref<9x8x8xbf16, #tpu.memory_space<vmem>>, vector<1x8x8xbf16>
    %597 = vector.shape_cast %596 : vector<1x8x8xbf16> to vector<8x8xbf16>
    %c1_i32_427 = arith.constant 1 : i32
    %598 = tpu.dynamic_rotate %564 by %c1_i32_427 dim 1 : vector<8x256xf32>, i32 -> vector<8x256xf32>
    %c3_428 = arith.constant 3 : index
    %c0_429 = arith.constant 0 : index
    %c0_430 = arith.constant 0 : index
    %599 = vector.load %arg4[%c3_428, %c0_429, %c0_430] : memref<9x1x256xf32, #tpu.memory_space<vmem>>, vector<1x1x256xf32>
    %600 = vector.shape_cast %599 : vector<1x1x256xf32> to vector<1x256xf32>
    %601 = vector.broadcast %600 : vector<1x256xf32> to vector<8x256xf32>
    %602 = arith.mulf %598, %601 : vector<8x256xf32>
    %603 = arith.truncf %602 : vector<8x256xf32> to vector<8x256xbf16>
    %cst_431 = arith.constant dense<0.000000e+00> : vector<8x256xf32>
    %604 = tpu.matmul %597, %603, %cst_431 {dimension_numbers = #tpu.dot_dimension_numbers<[1], [0], [0], [1], [0, 0, 1, 1], [], []>} : vector<8x8xbf16>, vector<8x256xbf16>, vector<8x256xf32> -> vector<8x256xf32>
    %605 = arith.addf %595, %604 : vector<8x256xf32>
    %c4_432 = arith.constant 4 : index
    %c0_433 = arith.constant 0 : index
    %c0_434 = arith.constant 0 : index
    %606 = vector.load %arg14[%c4_432, %c0_433, %c0_434] : memref<9x8x8xbf16, #tpu.memory_space<vmem>>, vector<1x8x8xbf16>
    %607 = vector.shape_cast %606 : vector<1x8x8xbf16> to vector<8x8xbf16>
    %c4_435 = arith.constant 4 : index
    %c0_436 = arith.constant 0 : index
    %c0_437 = arith.constant 0 : index
    %608 = vector.load %arg4[%c4_435, %c0_436, %c0_437] : memref<9x1x256xf32, #tpu.memory_space<vmem>>, vector<1x1x256xf32>
    %609 = vector.shape_cast %608 : vector<1x1x256xf32> to vector<1x256xf32>
    %610 = vector.broadcast %609 : vector<1x256xf32> to vector<8x256xf32>
    %611 = arith.mulf %564, %610 : vector<8x256xf32>
    %612 = arith.truncf %611 : vector<8x256xf32> to vector<8x256xbf16>
    %cst_438 = arith.constant dense<0.000000e+00> : vector<8x256xf32>
    %613 = tpu.matmul %607, %612, %cst_438 {dimension_numbers = #tpu.dot_dimension_numbers<[1], [0], [0], [1], [0, 0, 1, 1], [], []>} : vector<8x8xbf16>, vector<8x256xbf16>, vector<8x256xf32> -> vector<8x256xf32>
    %614 = arith.addf %605, %613 : vector<8x256xf32>
    %c5_439 = arith.constant 5 : index
    %c0_440 = arith.constant 0 : index
    %c0_441 = arith.constant 0 : index
    %615 = vector.load %arg14[%c5_439, %c0_440, %c0_441] : memref<9x8x8xbf16, #tpu.memory_space<vmem>>, vector<1x8x8xbf16>
    %616 = vector.shape_cast %615 : vector<1x8x8xbf16> to vector<8x8xbf16>
    %c255_i32_442 = arith.constant 255 : i32
    %617 = tpu.dynamic_rotate %564 by %c255_i32_442 dim 1 : vector<8x256xf32>, i32 -> vector<8x256xf32>
    %c5_443 = arith.constant 5 : index
    %c0_444 = arith.constant 0 : index
    %c0_445 = arith.constant 0 : index
    %618 = vector.load %arg4[%c5_443, %c0_444, %c0_445] : memref<9x1x256xf32, #tpu.memory_space<vmem>>, vector<1x1x256xf32>
    %619 = vector.shape_cast %618 : vector<1x1x256xf32> to vector<1x256xf32>
    %620 = vector.broadcast %619 : vector<1x256xf32> to vector<8x256xf32>
    %621 = arith.mulf %617, %620 : vector<8x256xf32>
    %622 = arith.truncf %621 : vector<8x256xf32> to vector<8x256xbf16>
    %cst_446 = arith.constant dense<0.000000e+00> : vector<8x256xf32>
    %623 = tpu.matmul %616, %622, %cst_446 {dimension_numbers = #tpu.dot_dimension_numbers<[1], [0], [0], [1], [0, 0, 1, 1], [], []>} : vector<8x8xbf16>, vector<8x256xbf16>, vector<8x256xf32> -> vector<8x256xf32>
    %624 = arith.addf %614, %623 : vector<8x256xf32>
    %c6_447 = arith.constant 6 : index
    %c0_448 = arith.constant 0 : index
    %c0_449 = arith.constant 0 : index
    %625 = vector.load %arg14[%c6_447, %c0_448, %c0_449] : memref<9x8x8xbf16, #tpu.memory_space<vmem>>, vector<1x8x8xbf16>
    %626 = vector.shape_cast %625 : vector<1x8x8xbf16> to vector<8x8xbf16>
    %c241_i32_450 = arith.constant 241 : i32
    %627 = tpu.dynamic_rotate %564 by %c241_i32_450 dim 1 : vector<8x256xf32>, i32 -> vector<8x256xf32>
    %c6_451 = arith.constant 6 : index
    %c0_452 = arith.constant 0 : index
    %c0_453 = arith.constant 0 : index
    %628 = vector.load %arg4[%c6_451, %c0_452, %c0_453] : memref<9x1x256xf32, #tpu.memory_space<vmem>>, vector<1x1x256xf32>
    %629 = vector.shape_cast %628 : vector<1x1x256xf32> to vector<1x256xf32>
    %630 = vector.broadcast %629 : vector<1x256xf32> to vector<8x256xf32>
    %631 = arith.mulf %627, %630 : vector<8x256xf32>
    %632 = arith.truncf %631 : vector<8x256xf32> to vector<8x256xbf16>
    %cst_454 = arith.constant dense<0.000000e+00> : vector<8x256xf32>
    %633 = tpu.matmul %626, %632, %cst_454 {dimension_numbers = #tpu.dot_dimension_numbers<[1], [0], [0], [1], [0, 0, 1, 1], [], []>} : vector<8x8xbf16>, vector<8x256xbf16>, vector<8x256xf32> -> vector<8x256xf32>
    %634 = arith.addf %624, %633 : vector<8x256xf32>
    %c7_455 = arith.constant 7 : index
    %c0_456 = arith.constant 0 : index
    %c0_457 = arith.constant 0 : index
    %635 = vector.load %arg14[%c7_455, %c0_456, %c0_457] : memref<9x8x8xbf16, #tpu.memory_space<vmem>>, vector<1x8x8xbf16>
    %636 = vector.shape_cast %635 : vector<1x8x8xbf16> to vector<8x8xbf16>
    %c240_i32_458 = arith.constant 240 : i32
    %637 = tpu.dynamic_rotate %564 by %c240_i32_458 dim 1 : vector<8x256xf32>, i32 -> vector<8x256xf32>
    %c7_459 = arith.constant 7 : index
    %c0_460 = arith.constant 0 : index
    %c0_461 = arith.constant 0 : index
    %638 = vector.load %arg4[%c7_459, %c0_460, %c0_461] : memref<9x1x256xf32, #tpu.memory_space<vmem>>, vector<1x1x256xf32>
    %639 = vector.shape_cast %638 : vector<1x1x256xf32> to vector<1x256xf32>
    %640 = vector.broadcast %639 : vector<1x256xf32> to vector<8x256xf32>
    %641 = arith.mulf %637, %640 : vector<8x256xf32>
    %642 = arith.truncf %641 : vector<8x256xf32> to vector<8x256xbf16>
    %cst_462 = arith.constant dense<0.000000e+00> : vector<8x256xf32>
    %643 = tpu.matmul %636, %642, %cst_462 {dimension_numbers = #tpu.dot_dimension_numbers<[1], [0], [0], [1], [0, 0, 1, 1], [], []>} : vector<8x8xbf16>, vector<8x256xbf16>, vector<8x256xf32> -> vector<8x256xf32>
    %644 = arith.addf %634, %643 : vector<8x256xf32>
    %c8_463 = arith.constant 8 : index
    %c0_464 = arith.constant 0 : index
    %c0_465 = arith.constant 0 : index
    %645 = vector.load %arg14[%c8_463, %c0_464, %c0_465] : memref<9x8x8xbf16, #tpu.memory_space<vmem>>, vector<1x8x8xbf16>
    %646 = vector.shape_cast %645 : vector<1x8x8xbf16> to vector<8x8xbf16>
    %c239_i32_466 = arith.constant 239 : i32
    %647 = tpu.dynamic_rotate %564 by %c239_i32_466 dim 1 : vector<8x256xf32>, i32 -> vector<8x256xf32>
    %c8_467 = arith.constant 8 : index
    %c0_468 = arith.constant 0 : index
    %c0_469 = arith.constant 0 : index
    %648 = vector.load %arg4[%c8_467, %c0_468, %c0_469] : memref<9x1x256xf32, #tpu.memory_space<vmem>>, vector<1x1x256xf32>
    %649 = vector.shape_cast %648 : vector<1x1x256xf32> to vector<1x256xf32>
    %650 = vector.broadcast %649 : vector<1x256xf32> to vector<8x256xf32>
    %651 = arith.mulf %647, %650 : vector<8x256xf32>
    %652 = arith.truncf %651 : vector<8x256xf32> to vector<8x256xbf16>
    %cst_470 = arith.constant dense<0.000000e+00> : vector<8x256xf32>
    %653 = tpu.matmul %646, %652, %cst_470 {dimension_numbers = #tpu.dot_dimension_numbers<[1], [0], [0], [1], [0, 0, 1, 1], [], []>} : vector<8x8xbf16>, vector<8x256xbf16>, vector<8x256xf32> -> vector<8x256xf32>
    %654 = arith.addf %644, %653 : vector<8x256xf32>
    %c0_471 = arith.constant 0 : index
    %c0_472 = arith.constant 0 : index
    %655 = vector.load %arg16[%c0_471, %c0_472] : memref<8x16xbf16, #tpu.memory_space<vmem>>, vector<8x16xbf16>
    %c1_473 = arith.constant 1 : index
    %c0_474 = arith.constant 0 : index
    %c0_475 = arith.constant 0 : index
    %656 = vector.load %arg19[%c1_473, %c0_474, %c0_475] : memref<2x16x256xf32, #tpu.memory_space<vmem>>, vector<1x16x256xf32>
    %657 = vector.shape_cast %656 : vector<1x16x256xf32> to vector<16x256xf32>
    %658 = arith.truncf %657 : vector<16x256xf32> to vector<16x256xbf16>
    %cst_476 = arith.constant dense<0.000000e+00> : vector<8x256xf32>
    %659 = tpu.matmul %655, %658, %cst_476 {dimension_numbers = #tpu.dot_dimension_numbers<[1], [0], [0], [1], [0, 0, 1, 1], [], []>} : vector<8x16xbf16>, vector<16x256xbf16>, vector<8x256xf32> -> vector<8x256xf32>
    %c0_477 = arith.constant 0 : index
    %c0_478 = arith.constant 0 : index
    %660 = vector.load %arg15[%c0_477, %c0_478] : memref<8x1xf32, #tpu.memory_space<vmem>>, vector<8x1xf32>
    %661 = vector.broadcast %660 : vector<8x1xf32> to vector<8x256xf32>
    %662 = arith.addf %654, %661 : vector<8x256xf32>
    %663 = arith.addf %662, %659 : vector<8x256xf32>
    %c0_479 = arith.constant 0 : index
    %c0_480 = arith.constant 0 : index
    %664 = vector.load %arg17[%c0_479, %c0_480] : memref<8x1xf32, #tpu.memory_space<vmem>>, vector<8x1xf32>
    %665 = vector.broadcast %664 : vector<8x1xf32> to vector<8x256xf32>
    %666 = arith.addf %663, %665 : vector<8x256xf32>
    %c1_481 = arith.constant 1 : index
    %c0_482 = arith.constant 0 : index
    %c0_483 = arith.constant 0 : index
    %667 = vector.load %arg18[%c1_481, %c0_482, %c0_483] : memref<2x8x256xf32, #tpu.memory_space<vmem>>, vector<1x8x256xf32>
    %668 = vector.shape_cast %667 : vector<1x8x256xf32> to vector<8x256xf32>
    %669 = vector.shape_cast %666 : vector<8x256xf32> to vector<1x8x256xf32>
    tpu.vector_store %arg18[%c1_481, %c0_482, %c0_483], %669 {strides = array<i32>} : memref<2x8x256xf32, #tpu.memory_space<vmem>>, vector<1x8x256xf32>,
    return
  }
  func.func @transform_0(%arg0: i32) -> (i32, i32, i32) {
    %c0_i32 = arith.constant 0 : i32
    %c0_i32_0 = arith.constant 0 : i32
    %c0_i32_1 = arith.constant 0 : i32
    %c0_i32_2 = arith.constant 0 : i32
    return %c0_i32, %c0_i32_0, %c0_i32_1 : i32, i32, i32
  }
  func.func @transform_1(%arg0: i32) -> (i32, i32, i32) {
    %c0_i32 = arith.constant 0 : i32
    %c0_i32_0 = arith.constant 0 : i32
    %c0_i32_1 = arith.constant 0 : i32
    %c0_i32_2 = arith.constant 0 : i32
    return %c0_i32, %c0_i32_0, %c0_i32_1 : i32, i32, i32
  }
  func.func @transform_2(%arg0: i32) -> (i32, i32, i32) {
    %c0_i32 = arith.constant 0 : i32
    %c0_i32_0 = arith.constant 0 : i32
    %c0_i32_1 = arith.constant 0 : i32
    %c0_i32_2 = arith.constant 0 : i32
    return %c0_i32, %c0_i32_0, %c0_i32_1 : i32, i32, i32
  }
  func.func @transform_3(%arg0: i32) -> (i32, i32, i32) {
    %c0_i32 = arith.constant 0 : i32
    %c0_i32_0 = arith.constant 0 : i32
    %c0_i32_1 = arith.constant 0 : i32
    %c0_i32_2 = arith.constant 0 : i32
    return %c0_i32, %c0_i32_0, %c0_i32_1 : i32, i32, i32
  }
  func.func @transform_4(%arg0: i32) -> (i32, i32, i32) {
    %c0_i32 = arith.constant 0 : i32
    %c0_i32_0 = arith.constant 0 : i32
    %c0_i32_1 = arith.constant 0 : i32
    %c0_i32_2 = arith.constant 0 : i32
    return %c0_i32, %c0_i32_0, %c0_i32_1 : i32, i32, i32
  }
  func.func @transform_5(%arg0: i32) -> (i32, i32) {
    %c0_i32 = arith.constant 0 : i32
    %c0_i32_0 = arith.constant 0 : i32
    %c0_i32_1 = arith.constant 0 : i32
    return %c0_i32, %c0_i32_0 : i32, i32
  }
  func.func @transform_6(%arg0: i32) -> (i32, i32) {
    %c0_i32 = arith.constant 0 : i32
    %c0_i32_0 = arith.constant 0 : i32
    %c0_i32_1 = arith.constant 0 : i32
    return %c0_i32, %c0_i32_0 : i32, i32
  }
  func.func @transform_7(%arg0: i32) -> (i32, i32) {
    %c0_i32 = arith.constant 0 : i32
    %c0_i32_0 = arith.constant 0 : i32
    %c0_i32_1 = arith.constant 0 : i32
    return %c0_i32, %c0_i32_0 : i32, i32
  }
  func.func @transform_8(%arg0: i32) -> (i32, i32, i32) {
    %c0_i32 = arith.constant 0 : i32
    %c0_i32_0 = arith.constant 0 : i32
    %c0_i32_1 = arith.constant 0 : i32
    %c0_i32_2 = arith.constant 0 : i32
    return %c0_i32, %c0_i32_0, %c0_i32_1 : i32, i32, i32
  }
  func.func @transform_9(%arg0: i32) -> (i32, i32) {
    %c0_i32 = arith.constant 0 : i32
    %c0_i32_0 = arith.constant 0 : i32
    %c0_i32_1 = arith.constant 0 : i32
    return %c0_i32, %c0_i32_0 : i32, i32
  }
  func.func @transform_10(%arg0: i32) -> (i32, i32, i32) {
    %c0_i32 = arith.constant 0 : i32
    %c0_i32_0 = arith.constant 0 : i32
    %c0_i32_1 = arith.constant 0 : i32
    %c0_i32_2 = arith.constant 0 : i32
    return %c0_i32, %c0_i32_0, %c0_i32_1 : i32, i32, i32
  }
  func.func @transform_11(%arg0: i32) -> (i32, i32) {
    %c0_i32 = arith.constant 0 : i32
    %c0_i32_0 = arith.constant 0 : i32
    %c0_i32_1 = arith.constant 0 : i32
    return %c0_i32, %c0_i32_0 : i32, i32
  }
  func.func @transform_12(%arg0: i32) -> (i32, i32) {
    %c0_i32 = arith.constant 0 : i32
    %c0_i32_0 = arith.constant 0 : i32
    %c0_i32_1 = arith.constant 0 : i32
    return %c0_i32, %c0_i32_0 : i32, i32
  }
  func.func @transform_13(%arg0: i32) -> (i32, i32, i32) {
    %c0_i32 = arith.constant 0 : i32
    %c0_i32_0 = arith.constant 0 : i32
    %c0_i32_1 = arith.constant 0 : i32
    %c0_i32_2 = arith.constant 0 : i32
    return %c0_i32, %c0_i32_0, %c0_i32_1 : i32, i32, i32
  }
  func.func @transform_14(%arg0: i32) -> (i32, i32) {
    %c0_i32 = arith.constant 0 : i32
    %c0_i32_0 = arith.constant 0 : i32
    %c0_i32_1 = arith.constant 0 : i32
    return %c0_i32, %c0_i32_0 : i32, i32
  }
  func.func @transform_15(%arg0: i32) -> (i32, i32) {
    %c0_i32 = arith.constant 0 : i32
    %c0_i32_0 = arith.constant 0 : i32
    %c0_i32_1 = arith.constant 0 : i32
    return %c0_i32, %c0_i32_0 : i32, i32
  }
  func.func @transform_16(%arg0: i32) -> (i32, i32) {
    %c0_i32 = arith.constant 0 : i32
    %c0_i32_0 = arith.constant 0 : i32
    %c0_i32_1 = arith.constant 0 : i32
    return %c0_i32, %c0_i32_0 : i32, i32
  }
  func.func @transform_17(%arg0: i32) -> (i32, i32, i32) {
    %c0_i32 = arith.constant 0 : i32
    %c0_i32_0 = arith.constant 0 : i32
    %c0_i32_1 = arith.constant 0 : i32
    %c0_i32_2 = arith.constant 0 : i32
    return %c0_i32, %c0_i32_0, %c0_i32_1 : i32, i32, i32
  }
}

</mosaic_0001>

<bundles_post_ra>
// kernel: up_module_forward.1
= control target key start
LH: loop header
LB: loop body
LE: loop exit
PB: predicated region body
PF: predicated region fallthrough
CT: control target
= control target key end

     0   :  { %v6538_v0 = vmov 0.0   ;;  %vm64_vm0 = vcmask 1043456   ;;  %vm4746_vm1 = vmmov 0   ;;  %vm60_vm2 = vcmask 64512   ;;  %s4748_s28 = smov 16   ;;  %s4750_s30 = smov 15   ;;  %s6518_s0 = inlined_call_operand.vmem [shape: f32[2,8,64], index: 0, kind: input, shape index: {}]   ;;  %s6519_s2 = inlined_call_operand.vmem [shape: f32[4,64,256], index: 2, kind: input, shape index: {}]   ;;  %s6520_s4 = inlined_call_operand.vmem [shape: bf16[4,8,8], index: 4, kind: input, shape index: {}]   ;;  %s6521_s5 = inlined_call_operand.vmem [shape: f32[8,1], index: 5, kind: input, shape index: {}]   ;;  %s6522_s1 = inlined_call_operand.vmem [shape: f32[2,8,256], index: 1, kind: input, shape index: {}]   ;;  %s6523_s6 = inlined_call_operand.vmem [shape: f32[16,1], index: 6, kind: input, shape index: {}]   ;;  %s6524_s7 = inlined_call_operand.vmem [shape: f32[16,1], index: 7, kind: input, shape index: {}]   ;;  %s6525_s3 = inlined_call_operand.vmem [shape: f32[9,1,256], index: 3, kind: input, shape index: {}]   ;;  %s6526_s9 = inlined_call_operand.vmem [shape: f32[8,1], index: 9, kind: input, shape index: {}]   ;;  %s6527_s10 = inlined_call_operand.vmem [shape: f32[2,8,1], index: 10, kind: input, shape index: {}]   ;;  %s6528_s8 = inlined_call_operand.vmem [shape: bf16[9,8,16], index: 8, kind: input, shape index: {}]   ;;  %s6529_s11 = inlined_call_operand.vmem [shape: f32[8,1], index: 11, kind: input, shape index: {}]   ;;  %s6530_s12 = inlined_call_operand.vmem [shape: f32[8,1], index: 12, kind: input, shape index: {}]   ;;  %s6531_s14 = inlined_call_operand.vmem [shape: f32[8,1], index: 14, kind: input, shape index: {}]   ;;  %s6532_s16 = inlined_call_operand.vmem [shape: f32[8,1], index: 16, kind: input, shape index: {}]   ;;  %s6533_s13 = inlined_call_operand.vmem [shape: bf16[9,8,8], index: 13, kind: input, shape index: {}]   ;;  %s6534_s15 = inlined_call_operand.vmem [shape: bf16[8,16], index: 15, kind: input, shape index: {}]   ;;  %s6535_s17 = inlined_call_operand.vmem [shape: f32[2,8,256], index: 17, kind: output, shape index: {}]  }
   0x1   :  { %6551 = sst [smem:[#allocation14_spill]] %s6518_s0  ;;  %4626 = vmatprep.subr.bf16.mxu0 %v6538_v0  ;;  %4632 = vmatprep.subr.bf16.mxu1 %v6538_v0  ;;  %v59_v6 = vld [vmem:[%s6520_s4] sm:$0xf]  ;;  %v4355_v7 = vld [vmem:[%s6520_s4 + $0x4] sm:$0xf]  ;;  %vm186_vm3 = vcmask 523264  }
   0x2   :  { %6552 = sst [smem:[#allocation15_spill]] %s6519_s2  ;;  %4628 = vmatprep.mubr.msk.bf16.mxu0 %vm4746_vm1, %v6538_v0  ;;  %4634 = vmatprep.mubr.msk.bf16.mxu1 %vm4746_vm1, %v6538_v0  ;;  %v4375_v44 = vld [vmem:[%s6520_s4 + $0x8] sm:$0xf]  ;;  %v4394_v58 = vld [vmem:[%s6520_s4 + $0xc] sm:$0xf]  ;;  %s4749_s0 = smov 17  }
   0x3   :  { %s6553_s26 = sld [smem:[#allocation14_spill]]  ;;  %s4751_s18 = smov 1   ;;  %vm1388_vm5 = vcmask 130048  }
   0x4   :  { %s6554_s29 = sld [smem:[#allocation15_spill]]  ;;  %s4752_s19 = smov 127  }
   0x5   :  { %s4753_s2 = smov 113   ;;  %s4754_s20 = smov 112  }
   0x6   :  { %s4755_s21 = smov 111  }
   0x9   :  { %v57_v1 = vld [vmem:[%s6553_s26] sm:$0xff] }
   0xa   :  { %v58_v2 = vpack.c.bf16 %v57_v1, %v57_v1  ;;  %v4858_v3 = vld [vmem:[%s6554_s29 + $0xf8] sm:$0xff]  ;;  %v4881_v8 = vld [vmem:[%s6554_s29 + $0xf0] sm:$0xff]  ;;  %v4891_v10 = vld [vmem:[%s6554_s29 + $0xe8] sm:$0xff] }
   0xb   :  { %v4863_v4 = vld [vmem:[%s6554_s29 + $0x78] sm:$0xff]  ;;  %v4886_v9 = vld [vmem:[%s6554_s29 + $0x70] sm:$0xff]  ;;  %v4896_v11 = vld [vmem:[%s6554_s29 + $0x68] sm:$0xff] }
   0xc   :  { %v4866_v5 = vsel %vm64_vm0, %v58_v2, 0  ;;  %v4903_v12 = vld [vmem:[%s6554_s29 + $0xe0] sm:$0xff]  ;;  %v4915_v14 = vld [vmem:[%s6554_s29 + $0xd8] sm:$0xff]  ;;  %v4927_v16 = vld [vmem:[%s6554_s29 + $0xd0] sm:$0xff] }
   0xd   :  { %4627 = vmatpush3.bf16.msra.mxu0 %v4866_v5  ;;  %4633 = vmatpush3.bf16.msra.mxu1 %v4866_v5  ;;  %v4908_v13 = vld [vmem:[%s6554_s29 + $0x60] sm:$0xff]  ;;  %v4920_v15 = vld [vmem:[%s6554_s29 + $0x58] sm:$0xff]  ;;  %v4932_v17 = vld [vmem:[%s6554_s29 + $0x50] sm:$0xff] }
   0xe   :  { %206 = vmatprep.subr.mxu0 %v4858_v3  ;;  %280 = vmatprep.subr.mxu1 %v4863_v4  ;;  %v4939_v18 = vld [vmem:[%s6554_s29 + $0xc8] sm:$0xff]  ;;  %v4951_v20 = vld [vmem:[%s6554_s29 + $0xc0] sm:$0xff]  ;;  %v4963_v22 = vld [vmem:[%s6554_s29 + $0xb8] sm:$0xff] }
   0xf   :  { %v4944_v19 = vld [vmem:[%s6554_s29 + $0x48] sm:$0xff]  ;;  %v4956_v21 = vld [vmem:[%s6554_s29 + $0x40] sm:$0xff]  ;;  %v4968_v23 = vld [vmem:[%s6554_s29 + $0x38] sm:$0xff] }
  0x10   :  { %4629 = vmatmul.mubr.msk.bf16.vlgmr.msra.gmra.mxu0 %vm60_vm2, %v59_v6  ;;  %4635 = vmatmul.mubr.msk.bf16.vlgmr.msra.gmra.mxu1 %vm60_vm2, %v4355_v7  ;;  %v4975_v24 = vld [vmem:[%s6554_s29 + $0xb0] sm:$0xff]  ;;  %v4987_v26 = vld [vmem:[%s6554_s29 + $0xa8] sm:$0xff]  ;;  %v4999_v28 = vld [vmem:[%s6554_s29 + $0xa0] sm:$0xff] }
  0x11   :  { %207 = vmatpush1.msra.mxu0 %v4881_v8  ;;  %281 = vmatpush1.msra.mxu1 %v4886_v9  ;;  %v4980_v25 = vld [vmem:[%s6554_s29 + $0x30] sm:$0xff]  ;;  %v4992_v27 = vld [vmem:[%s6554_s29 + $0x28] sm:$0xff]  ;;  %v5004_v29 = vld [vmem:[%s6554_s29 + $0x20] sm:$0xff] }
  0x12   :  { %208 = vmatprep.subr.mxu0 %v4891_v10  ;;  %282 = vmatprep.subr.mxu1 %v4896_v11  ;;  %v5011_v30 = vld [vmem:[%s6554_s29 + $0x98] sm:$0xff]  ;;  %v5023_v32 = vld [vmem:[%s6554_s29 + $0x90] sm:$0xff]  ;;  %v5035_v34 = vld [vmem:[%s6554_s29 + $0x88] sm:$0xff] }
  0x13   :  { %209 = vmatpush1.msra.mxu0 %v4903_v12  ;;  %283 = vmatpush1.msra.mxu1 %v4908_v13  ;;  %v5016_v31 = vld [vmem:[%s6554_s29 + $0x18] sm:$0xff]  ;;  %v5028_v33 = vld [vmem:[%s6554_s29 + $0x10] sm:$0xff]  ;;  %v5040_v35 = vld [vmem:[%s6554_s29 + $0x8] sm:$0xff] }
  0x14   :  { %210 = vmatprep.subr.mxu0 %v4915_v14  ;;  %284 = vmatprep.subr.mxu1 %v4920_v15  ;;  %v5053_v36 = vld [vmem:[%s6554_s29 + $0x80] sm:$0xff]  ;;  %v5066_v38 = vld [vmem:[%s6554_s29 + $0x178] sm:$0xff]  ;;  %v5072_v41 = vld [vmem:[%s6554_s29 + $0x170] sm:$0xff] }
  0x15   :  { %211 = vmatpush1.msra.mxu0 %v4927_v16  ;;  %285 = vmatpush1.msra.mxu1 %v4932_v17  ;;  %v5058_v37 = vld [vmem:[%s6554_s29] sm:$0xff]  ;;  %v5079_v42 = vld [vmem:[%s6554_s29 + $0x168] sm:$0xff]  ;;  %v5098_v49 = vld [vmem:[%s6554_s29 + $0x158] sm:$0xff] }
  0x16   :  { %212 = vmatprep.subr.mxu0 %v4939_v18  ;;  %286 = vmatprep.subr.mxu1 %v4944_v19  ;;  %v5090_v46 = vld [vmem:[%s6554_s29 + $0x160] sm:$0xff]  ;;  %v5103_v50 = vld [vmem:[%s6554_s29 + $0x1f8] sm:$0xff]  ;;  %v5111_v51 = vld [vmem:[%s6554_s29 + $0x150] sm:$0xff] }
  0x17   :  { %213 = vmatpush1.msra.mxu0 %v4951_v20  ;;  %287 = vmatpush1.msra.mxu1 %v4956_v21  ;;  %v5119_v54 = vld [vmem:[%s6554_s29 + $0x148] sm:$0xff]  ;;  %v5125_v55 = vld [vmem:[%s6554_s29 + $0x140] sm:$0xff]  ;;  %v5132_v56 = vld [vmem:[%s6554_s29 + $0x138] sm:$0xff] }
  0x18   :  { %214 = vmatprep.subr.mxu0 %v4963_v22  ;;  %288 = vmatprep.subr.mxu1 %v4968_v23  ;;  %v5138_v57 = vld [vmem:[%s6554_s29 + $0x130] sm:$0xff]  ;;  %v5147_v59 = vld [vmem:[%s6554_s29 + $0x128] sm:$0xff]  ;;  %v5169_v62 = vld [vmem:[%s6554_s29 + $0x120] sm:$0xff] }
  0x19   :  { %215 = vmatpush1.msra.mxu0 %v4975_v24  ;;  %289 = vmatpush1.msra.mxu1 %v4980_v25  ;;  %v5153_v60 = vld [vmem:[%s6554_s29 + $0x1f0] sm:$0xff]  ;;  %v5159_v61 = vld [vmem:[%s6554_s29 + $0x1e8] sm:$0xff]  ;;  %v5174_v63 = vld [vmem:[%s6554_s29 + $0x1e0] sm:$0xff] }
  0x1a   :  { %216 = vmatprep.subr.mxu0 %v4987_v26  ;;  %290 = vmatprep.subr.mxu1 %v4992_v27  ;;  %v5181_v1 = vld [vmem:[%s6554_s29 + $0x118] sm:$0xff]  ;;  %v5198_v6 = vld [vmem:[%s6554_s29 + $0x1d0] sm:$0xff]  ;;  %v5205_v7 = vld [vmem:[%s6554_s29 + $0x108] sm:$0xff] }
  0x1b   :  { %217 = vmatpush1.msra.mxu0 %v4999_v28  ;;  %291 = vmatpush1.msra.mxu1 %v5004_v29  ;;  %v5186_v2 = vld [vmem:[%s6554_s29 + $0x1d8] sm:$0xff] }
  0x1c   :  { %218 = vmatprep.subr.mxu0 %v5011_v30  ;;  %292 = vmatprep.subr.mxu1 %v5016_v31 }
  0x1d   :  { %219 = vmatpush1.msra.mxu0 %v5023_v32  ;;  %293 = vmatpush1.msra.mxu1 %v5028_v33 }
  0x1e   :  { %220 = vmatprep.subr.mxu0 %v5035_v34  ;;  %294 = vmatprep.subr.mxu1 %v5040_v35 }
  0x1f   :  { %254 = vmatprep.mubr.f32.mxu0 %v6538_v0  ;;  %328 = vmatprep.mubr.f32.mxu1 %v6538_v0 }
  0x20   :  { %221 = vmatpush1.msra.mxu0 %v5053_v36  ;;  %295 = vmatpush1.msra.mxu1 %v5058_v37 }
  0x21   :  { %4638 = vmatprep.subr.bf16.mxu0 %v6538_v0  ;;  %416 = vmatprep.subr.mxu1 %v5066_v38 }
  0xd0   :  { %v102_v39 = vpop.f32.mrf.mxu0  ;;  %v163_v40 = vpop.f32.mrf.mxu1 }
  0xd1   :  { %4373 = vmatmul.mubr.msk.f32.vlgmr.msra.gmra.mxu0 %vm186_vm3, %v163_v40  ;;  %4374 = vmatmul.mubr.msk.f32.vlgmr.msra.gmra.mxu1 %vm186_vm3, %v102_v39  ;;  %v5210_v39 = vld [vmem:[%s6554_s29 + $0x1c8] sm:$0xff]  ;;  %v5217_v40 = vld [vmem:[%s6554_s29 + $0x100] sm:$0xff] }
  0xd2   :  { %v4636_v43 = vpop.f32.mrf.mxu1  ;;  %4639 = vmatpush3.bf16.msra.mxu0 %v4866_v5  ;;  %4640 = vmatprep.mubr.msk.bf16.mxu0 %vm4746_vm1, %v6538_v0  ;;  %v4630_v45 = vpop.f32.mrf.mxu0 }
  0xd3   :  { %4644 = vmatprep.subr.bf16.mxu0 %v6538_v0  ;;  %417 = vmatpush1.msra.mxu1 %v5072_v41  ;;  %v5222_v43 = vld [vmem:[%s6554_s29 + $0x1c0] sm:$0xff]  ;;  %v5236_v45 = vld [vmem:[%s6554_s29 + $0x1b0] sm:$0xff] }
  0xd4   :  { %v166_v47 = vpop.f32.mrf.mxu1  ;;  %v105_v48 = vpop.f32.mrf.mxu0  ;;  %418 = vmatprep.subr.mxu1 %v5079_v42  ;;  %464 = vmatprep.mubr.f32.mxu1 %v6538_v0  ;;  %6555 = vst [vmem:[#allocation5_spill] sm:$0xff] %v5222_v43  ;;  %6557 = vst [vmem:[#allocation7_spill] sm:$0xff] %v5236_v45 }
  0xd5   :  { %4641 = vmatmul.mubr.msk.bf16.vlgmr.msra.gmra.mxu0 %vm60_vm2, %v4375_v44  ;;  %419 = vmatpush1.msra.mxu1 %v5090_v46  ;;  %v5229_v44 = vld [vmem:[%s6554_s29 + $0x1b8] sm:$0xff]  ;;  %v5242_v47 = vld [vmem:[%s6554_s29 + $0x1a8] sm:$0xff]  ;;  %v5248_v48 = vld [vmem:[%s6554_s29 + $0x1a0] sm:$0xff] }
  0xd6   :  { %v4637_v52 = vpop.f32.mrf.mxu1  ;;  %4645 = vmatpush3.bf16.msra.mxu0 %v4866_v5  ;;  %4646 = vmatprep.mubr.msk.bf16.mxu0 %vm4746_vm1, %v6538_v0  ;;  %v4631_v53 = vpop.f32.mrf.mxu0  ;;  %v5193_v5 = vld [vmem:[%s6554_s29 + $0x110] sm:$0xff]  ;;  %6556 = vst [vmem:[#allocation6_spill] sm:$0xff] %v5229_v44  ;;  %6558 = vst [vmem:[#allocation8_spill] sm:$0xff] %v5242_v47 }
  0xd7   :  { %420 = vmatprep.subr.mxu1 %v5098_v49  ;;  %554 = vmatprep.subr.mxu0 %v5103_v50  ;;  %6559 = vst [vmem:[#allocation9_spill] sm:$0xff] %v5248_v48  ;;  %v5254_v52 = vld [vmem:[%s6554_s29 + $0x198] sm:$0xff]  ;;  %v5260_v53 = vld [vmem:[%s6554_s29 + $0x190] sm:$0xff] }
  0xd8   :  { %421 = vmatpush1.msra.mxu1 %v5111_v51  ;;  %6560 = vst [vmem:[#allocation10_spill] sm:$0xff] %v5254_v52  ;;  %6561 = vst [vmem:[#allocation11_spill] sm:$0xff] %v5260_v53 }
  0xd9   :  { %422 = vmatprep.subr.mxu1 %v5119_v54 }
  0xda   :  { %423 = vmatpush1.msra.mxu1 %v5125_v55 }
  0xdb   :  { %424 = vmatprep.subr.mxu1 %v5132_v56 }
  0xdc   :  { %425 = vmatpush1.msra.mxu1 %v5138_v57 }
  0xdd   :  { %4647 = vmatmul.mubr.msk.bf16.vlgmr.msra.gmra.mxu0 %vm60_vm2, %v4394_v58  ;;  %426 = vmatprep.subr.mxu1 %v5147_v59  ;;  %v5266_v58 = vld [vmem:[%s6554_s29 + $0x188] sm:$0xff] }
  0xde   :  { %555 = vmatpush1.msra.mxu0 %v5153_v60  ;;  %602 = vmatprep.mubr.f32.mxu0 %v6538_v0  ;;  %6562 = vst [vmem:[#allocation12_spill] sm:$0xff] %v5266_v58 }
  0xdf   :  { %556 = vmatprep.subr.mxu0 %v5159_v61  ;;  %427 = vmatpush1.msra.mxu1 %v5169_v62 }
  0xe0   :  { %557 = vmatpush1.msra.mxu0 %v5174_v63  ;;  %428 = vmatprep.subr.mxu1 %v5181_v1 }
  0xe1   :  { %558 = vmatprep.subr.mxu0 %v5186_v2  ;;  %429 = vmatpush1.msra.mxu1 %v5193_v5 }
  0xe2   :  { %559 = vmatpush1.msra.mxu0 %v5198_v6  ;;  %430 = vmatprep.subr.mxu1 %v5205_v7 }
  0xe3   :  { %560 = vmatprep.subr.mxu0 %v5210_v39  ;;  %431 = vmatpush1.msra.mxu1 %v5217_v40 }
  0xe4   :  { %561 = vmatpush1.msra.mxu0 %v5222_v43  ;;  %4650 = vmatprep.subr.bf16.mxu1 %v6538_v0  ;;  %v5272_v0 = vld [vmem:[%s6554_s29 + $0x180] sm:$0xff] }
  0xe5   :  { %562 = vmatprep.subr.mxu0 %v5229_v44  ;;  %6563 = vst [vmem:[#allocation13_spill] sm:$0xff] %v5272_v0 }
  0xe6   :  { %563 = vmatpush1.msra.mxu0 %v5236_v45 }
  0xe7   :  { %564 = vmatprep.subr.mxu0 %v5242_v47 }
  0xe8   :  { %565 = vmatpush1.msra.mxu0 %v5248_v48 }
  0xe9   :  { %566 = vmatprep.subr.mxu0 %v5254_v52  ;;  %v6548_v52 = vmov 0  }
  0xea   :  { %567 = vmatpush1.msra.mxu0 %v5260_v53  ;;  %4685 = vset.pattern.permute.xlu0 %v6548_v52  ;;  %v611_v53 = vld [vmem:[%s6521_s5] sm:$0xff] }
  0xeb   :  { %568 = vmatprep.subr.mxu0 %v5266_v58  ;;  %4686 = vset.pattern.permute.xlu1 %v6548_v52  ;;  %v4413_v58 = vld [vmem:[%s6553_s26 + $0x8] sm:$0xff]  ;;  %v6564_v52 = vmov 0.0  }
  0xec   :  { %569 = vmatpush1.msra.mxu0 %v5272_v0  ;;  %614 = vperm.xlu0 %4685, %v611_v53   ;;  %v647_v48 = vpack.c.bf16 %v4413_v58, %v4413_v58 }
  0xed   :  { %790 = vmatprep.subr.mxu0 %v4858_v3 }
  0xee   :  { %v5289_v3 = vsel %vm64_vm0, %v647_v48, 0 }
  0xf0   :  { %1194 = vperm.xlu0 %4685, %v611_v53   ;;  %v648_v53 = vld [vmem:[%s6520_s4] sm:$0xf] }
 0x191   :  { %v5284_v47 = vpop.f32.mrf.mxu0 }
 0x193   :  { %v5286_v0 = vpop.f32.mrf.mxu0 }
 0x195   :  { %v374_v45 = vpop.f32.mrf.mxu0 }
 0x196   :  { %4393 = vmatmul.mubr.msk.f32.vlgmr.msra.gmra.mxu1 %vm186_vm3, %v374_v45  ;;  %v4415_v45 = vld [vmem:[%s6520_s4 + $0x4] sm:$0xf] }
 0x197   :  { %v4642_v44 = vpop.f32.mrf.mxu0  ;;  %4651 = vmatpush3.bf16.msra.mxu1 %v5289_v3  ;;  %4652 = vmatprep.mubr.msk.bf16.mxu1 %vm4746_vm1, %v6564_v52 }
 0x198   :  { %4656 = vmatprep.subr.bf16.mxu1 %v6564_v52 }
 0x199   :  { %v377_v58 = vpop.f32.mrf.mxu0 }
 0x19a   :  { %4653 = vmatmul.mubr.msk.bf16.vlgmr.msra.gmra.mxu1 %vm60_vm2, %v648_v53 }
 0x19b   :  { %v4643_v48 = vpop.f32.mrf.mxu0  ;;  %4657 = vmatpush3.bf16.msra.mxu1 %v5289_v3  ;;  %4658 = vmatprep.mubr.msk.bf16.mxu1 %vm4746_vm1, %v6564_v52 }
 0x19c   :  { %864 = vmatprep.subr.mxu1 %v4863_v4 }
 0x19d   :  { %v512_v44 = vpop.f32.mrf.mxu0 }
 0x19e   :  { %4412 = vmatmul.mubr.msk.f32.vlgmr.msra.gmra.mxu0 %vm186_vm3, %v512_v44 }
 0x19f   :  { %v4648_v43 = vpop.f32.mrf.mxu0  ;;  %791 = vmatpush1.msra.mxu0 %v4881_v8  ;;  %838 = vmatprep.mubr.f32.mxu0 %v6564_v52  ;;  %v5346_v8 = vld [vmem:[%s6522_s1] sm:$0xff] }
 0x1a0   :  { %792 = vmatprep.subr.mxu0 %v4891_v10 }
 0x1a1   :  { %v515_v53 = vpop.f32.mrf.mxu0  ;;  %793 = vmatpush1.msra.mxu0 %v4903_v12 }
 0x1a2   :  { %4659 = vmatmul.mubr.msk.bf16.vlgmr.msra.gmra.mxu1 %vm60_vm2, %v4415_v45  ;;  %794 = vmatprep.subr.mxu0 %v4915_v14 }
 0x1a3   :  { %865 = vmatpush1.msra.mxu1 %v4886_v9  ;;  %v4649_v4 = vpop.f32.mrf.mxu0  ;;  %795 = vmatpush1.msra.mxu0 %v4927_v16  ;;  %v5351_v9 = vld [vmem:[%s6522_s1 + $0x8] sm:$0xff] }
 0x1a4   :  { %866 = vmatprep.subr.mxu1 %v4896_v11  ;;  %796 = vmatprep.subr.mxu0 %v4939_v18  ;;  %v635_v10 = vadd.f32 %v5351_v9, %v5346_v8  ;;  %v330_v11 = vpop.f32.mrf.mxu1 }
 0x1a5   :  { %867 = vmatpush1.msra.mxu1 %v4908_v13  ;;  %797 = vmatpush1.msra.mxu0 %v4951_v20  ;;  %v331_v16 = vadd.f32 %v330_v11, %v5284_v47  ;;  %v639_v47 = vmul.f32 %v5346_v8, %v5346_v8 }
 0x1a6   :  { %868 = vmatprep.subr.mxu1 %v4920_v15  ;;  %912 = vmatprep.mubr.f32.mxu1 %v6564_v52  ;;  %v332_v12 = vpop.f32.mrf.mxu1 }
 0x1a7   :  { %869 = vmatpush1.msra.mxu1 %v4932_v17  ;;  %798 = vmatprep.subr.mxu0 %v4963_v22  ;;  %v333_v18 = vadd.f32 %v332_v12, %v5286_v0 }
 0x1a8   :  { %870 = vmatprep.subr.mxu1 %v4944_v19  ;;  %799 = vmatpush1.msra.mxu0 %v4975_v24  ;;  %v615_v24 = vpop.permute.xlu0 %614 }
 0x1a9   :  { %871 = vmatpush1.msra.mxu1 %v4956_v21  ;;  %800 = vmatprep.subr.mxu0 %v4987_v26 }
 0x1aa   :  { %872 = vmatprep.subr.mxu1 %v4968_v23  ;;  %801 = vmatpush1.msra.mxu0 %v4999_v28 }
 0x1ab   :  { %873 = vmatpush1.msra.mxu1 %v4980_v25  ;;  %802 = vmatprep.subr.mxu0 %v5011_v30 }
 0x1ac   :  { %874 = vmatprep.subr.mxu1 %v4992_v27  ;;  %803 = vmatpush1.msra.mxu0 %v5023_v32  ;;  %v5381_v32 = vld [vmem:[%s6522_s1 + $0x10] sm:$0xff] }
 0x1ad   :  { %875 = vmatpush1.msra.mxu1 %v5004_v29  ;;  %804 = vmatprep.subr.mxu0 %v5035_v34 }
 0x1ae   :  { %876 = vmatprep.subr.mxu1 %v5016_v31  ;;  %805 = vmatpush1.msra.mxu0 %v5053_v36  ;;  %v4435_v31 = vld [vmem:[%s6520_s4 + $0x8] sm:$0xf] }
 0x1af   :  { %877 = vmatpush1.msra.mxu1 %v5028_v33  ;;  %4662 = vmatprep.subr.bf16.mxu0 %v6564_v52  ;;  %v5386_v33 = vld [vmem:[%s6522_s1 + $0x18] sm:$0xff] }
 0x1b0   :  { %878 = vmatprep.subr.mxu1 %v5040_v35  ;;  %636 = vadd.xlane.f32.xlu1 %v635_v10  ;;  %v1217_v36 = vadd.f32 %v5386_v33, %v5381_v32 }
 0x1b1   :  { %879 = vmatpush1.msra.mxu1 %v5058_v37 }
 0x1b2   :  { %998 = vmatprep.subr.mxu1 %v5066_v38 }
 0x256   :  { %v466_v13 = vpop.f32.mrf.mxu1 }
 0x257   :  { %v471_v19 = vadd.f32 %v466_v13, %v331_v16 }
 0x258   :  { %v468_v14 = vpop.f32.mrf.mxu1 }
 0x259   :  { %v472_v22 = vadd.f32 %v468_v14, %v333_v18  ;;  %v1195_v14 = vpop.permute.xlu0 %1194 }
 0x25a   :  { %v689_v15 = vpop.f32.mrf.mxu1 }
 0x25b   :  { %4434 = vmatmul.mubr.msk.f32.vlgmr.msra.gmra.mxu1 %vm186_vm3, %v689_v15 }
 0x25c   :  { %v4654_v17 = vpop.f32.mrf.mxu1  ;;  %999 = vmatpush1.msra.mxu1 %v5072_v41  ;;  %1046 = vmatprep.mubr.f32.mxu1 %v6564_v52 }
 0x25d   :  { %1000 = vmatprep.subr.mxu1 %v5079_v42  ;;  %v4454_v42 = vld [vmem:[%s6520_s4 + $0xc] sm:$0xf] }
 0x25e   :  { %v604_v20 = vpop.f32.mrf.mxu0  ;;  %v692_v21 = vpop.f32.mrf.mxu1  ;;  %1001 = vmatpush1.msra.mxu1 %v5090_v46 }
 0x25f   :  { %v609_v23 = vadd.f32 %v604_v20, %v471_v19  ;;  %1002 = vmatprep.subr.mxu1 %v5098_v49  ;;  %v6565_v49 = vld [vmem:[#allocation5_spill] sm:$0xff]  ;;  %v1221_v19 = vmul.f32 %v5381_v32, %v5381_v32 }
 0x260   :  { %v606_v25 = vpop.f32.mrf.mxu0  ;;  %v4655_v26 = vpop.f32.mrf.mxu1  ;;  %1003 = vmatpush1.msra.mxu1 %v5111_v51  ;;  %v6567_v51 = vld [vmem:[#allocation7_spill] sm:$0xff] }
 0x261   :  { %v610_v27 = vadd.f32 %v606_v25, %v472_v22  ;;  %1004 = vmatprep.subr.mxu1 %v5119_v54  ;;  %v5366_v28 = vadd.f32 %v615_v24, %v609_v23  ;;  %v6568_v54 = vld [vmem:[#allocation8_spill] sm:$0xff]  ;;  %v1222_v23 = vmul.f32 %v5386_v33, %v5386_v33  ;;  %v637_v26 = vpop.xlane.xlu1 %636 }
 0x262   :  { %v749_v0 = vpop.f32.mrf.mxu1  ;;  %1005 = vmatpush1.msra.mxu1 %v5125_v55  ;;  %v6569_v55 = vld [vmem:[#allocation9_spill] sm:$0xff] }
 0x263   :  { %v5368_v29 = vadd.f32 %v615_v24, %v610_v27  ;;  %4433 = vmatmul.mubr.msk.f32.vlgmr.msra.gmra.mxu0 %vm186_vm3, %v749_v0  ;;  %1006 = vmatprep.subr.mxu1 %v5132_v56  ;;  %v629_v41 = vmul.f32 %v5366_v28, %v5366_v28  ;;  %v6570_v56 = vld [vmem:[#allocation10_spill] sm:$0xff]  ;;  %v1223_v25 = vadd.f32 %v1222_v23, %v1221_v19 }
 0x264   :  { %v4660_v30 = vpop.f32.mrf.mxu1  ;;  %4663 = vmatpush3.bf16.msra.mxu0 %v5289_v3  ;;  %4664 = vmatprep.mubr.msk.bf16.mxu0 %vm4746_vm1, %v6564_v52 }
 0x265   :  { %v625_v34 = vadd.f32 %v5368_v29, %v5366_v28  ;;  %4668 = vmatprep.subr.bf16.mxu0 %v6564_v52  ;;  %1007 = vmatpush1.msra.mxu1 %v5138_v57  ;;  %v630_v38 = vmul.f32 %v5368_v29, %v5368_v29  ;;  %v6571_v57 = vld [vmem:[#allocation11_spill] sm:$0xff] }
 0x266   :  { %v752_v35 = vpop.f32.mrf.mxu1  ;;  %1008 = vmatprep.subr.mxu1 %v5147_v59  ;;  %v6572_v59 = vld [vmem:[#allocation12_spill] sm:$0xff] }
 0x267   :  { %4665 = vmatmul.mubr.msk.bf16.vlgmr.msra.gmra.mxu0 %vm60_vm2, %v4435_v31  ;;  %626 = vadd.xlane.f32.xlu1 %v625_v34  ;;  %v631_v46 = vadd.f32 %v630_v38, %v629_v41 }
 0x268   :  { %v4661_v37 = vpop.f32.mrf.mxu1  ;;  %4669 = vmatpush3.bf16.msra.mxu0 %v5289_v3  ;;  %4670 = vmatprep.mubr.msk.bf16.mxu0 %vm4746_vm1, %v6564_v52 }
 0x269   :  { %1134 = vmatprep.subr.mxu0 %v5103_v50  ;;  %1009 = vmatpush1.msra.mxu1 %v5169_v62  ;;  %v6566_v50 = vld [vmem:[#allocation6_spill] sm:$0xff] }
 0x26a   :  { %1010 = vmatprep.subr.mxu1 %v5181_v1 }
 0x26b   :  { %1218 = vadd.xlane.f32.xlu1 %v1217_v36  ;;  %1011 = vmatpush1.msra.mxu1 %v5193_v5 }
 0x26c   :  { %1012 = vmatprep.subr.mxu1 %v5205_v7 }
 0x26d   :  { %1013 = vmatpush1.msra.mxu1 %v5217_v40 }
 0x26f   :  { %4671 = vmatmul.mubr.msk.bf16.vlgmr.msra.gmra.mxu0 %vm60_vm2, %v4454_v42  ;;  %632 = vadd.xlane.f32.xlu1 %v631_v46 }
 0x270   :  { %1135 = vmatpush1.msra.mxu0 %v5153_v60  ;;  %1182 = vmatprep.mubr.f32.mxu0 %v6564_v52  ;;  %v6573_v60 = vld [vmem:[#allocation13_spill] sm:$0xff]  ;;  %v640_v52 = vmul.f32 %v5351_v9, %v5351_v9 }
 0x271   :  { %1136 = vmatprep.subr.mxu0 %v5159_v61 }
 0x272   :  { %1137 = vmatpush1.msra.mxu0 %v5174_v63  ;;  %v641_v3 = vadd.f32 %v640_v52, %v639_v47  ;;  %v1241_v52 = vld [vmem:[%s6524_s7 + $0x8] sm:$0xff] }
 0x273   :  { %1138 = vmatprep.subr.mxu0 %v5186_v2  ;;  %v6574_v2 = vmov 0  }
 0x274   :  { %1139 = vmatpush1.msra.mxu0 %v5198_v6  ;;  %642 = vadd.xlane.f32.xlu1 %v641_v3 }
 0x275   :  { %1140 = vmatprep.subr.mxu0 %v5210_v39 }
 0x276   :  { %1141 = vmatpush1.msra.mxu0 %v6565_v49 }
 0x277   :  { %1142 = vmatprep.subr.mxu0 %v6566_v50 }
 0x278   :  { %1143 = vmatpush1.msra.mxu0 %v6567_v51 }
 0x279   :  { %1144 = vmatprep.subr.mxu0 %v6568_v54 }
 0x27a   :  { %1145 = vmatpush1.msra.mxu0 %v6569_v55 }
 0x27b   :  { %1146 = vmatprep.subr.mxu0 %v6570_v56 }
 0x27c   :  { %1147 = vmatpush1.msra.mxu0 %v6571_v57 }
 0x27d   :  { %1148 = vmatprep.subr.mxu0 %v6572_v59 }
 0x27e   :  { %1149 = vmatpush1.msra.mxu0 %v6573_v60 }
 0x2f0   :  { %v627_v27 = vpop.xlane.xlu1 %626 }
 0x2f4   :  { %v1219_v0 = vpop.xlane.xlu1 %1218 }
 0x2f5   :  { %v1220_v35 = vadd.f32 %v1219_v0, %v637_v26 }
 0x2f7   :  { %v1242_v42 = vmul.f32 0.001953125, %v1220_v35 }
 0x2f8   :  { %v633_v30 = vpop.xlane.xlu1 %632 }
 0x2f9   :  { %v1244_v55 = vmul.f32 %v1242_v42, %v1242_v42 }
 0x2fd   :  { %v643_v31 = vpop.xlane.xlu1 %642 }
 0x31b   :  { %v914_v58 = vpop.f32.mrf.mxu1 }
 0x31d   :  { %v916_v48 = vpop.f32.mrf.mxu1 }
 0x323   :  { %v840_v61 = vpop.f32.mrf.mxu0 }
 0x324   :  { %v915_v45 = vadd.f32 %v914_v58, %v840_v61 }
 0x325   :  { %v842_v62 = vpop.f32.mrf.mxu0 }
 0x326   :  { %v917_v4 = vadd.f32 %v916_v48, %v842_v62 }
 0x327   :  { %v957_v63 = vpop.f32.mrf.mxu0 }
 0x328   :  { %4453 = vmatmul.mubr.msk.f32.vlgmr.msra.gmra.mxu1 %vm186_vm3, %v957_v63  ;;  %v1227_v63 = vld [vmem:[%s6523_s6] sm:$0xff] }
 0x329   :  { %v4666_v1 = vpop.f32.mrf.mxu0  ;;  %1424 = vmatprep.mubr.bf16.mxu1 %v6574_v2 }
 0x32b   :  { %v960_v5 = vpop.f32.mrf.mxu0 }
 0x32d   :  { %v4667_v6 = vpop.f32.mrf.mxu0 }
 0x32e   :  { %v1228_v6 = vld [vmem:[%s6524_s7] sm:$0xff] }
 0x32f   :  { %v1093_v7 = vpop.f32.mrf.mxu0 }
 0x330   :  { %4472 = vmatmul.mubr.msk.f32.vlgmr.msra.gmra.mxu0 %vm186_vm3, %v1093_v7  ;;  %v1240_v7 = vld [vmem:[%s6523_s6 + $0x8] sm:$0xff] }
 0x331   :  { %v4672_v39 = vpop.f32.mrf.mxu0  ;;  %1546 = vmatprep.mubr.bf16.mxu0 %v6574_v2 }
 0x333   :  { %v1096_v40 = vpop.f32.mrf.mxu0 }
 0x335   :  { %v4673_v43 = vpop.f32.mrf.mxu0 }
 0x3e8   :  { %v1048_v44 = vpop.f32.mrf.mxu1 }
 0x3e9   :  { %v1053_v10 = vadd.f32 %v1048_v44, %v915_v45 }
 0x3ea   :  { %v1050_v53 = vpop.f32.mrf.mxu1 }
 0x3eb   :  { %v1054_v12 = vadd.f32 %v1050_v53, %v917_v4 }
 0x3f0   :  { %v1184_v11 = vpop.f32.mrf.mxu0 }
 0x3f1   :  { %v1189_v13 = vadd.f32 %v1184_v11, %v1053_v10 }
 0x3f2   :  { %v1186_v15 = vpop.f32.mrf.mxu0 }
 0x3f3   :  { %v5437_v16 = vadd.f32 %v1195_v14, %v1189_v13  ;;  %v1190_v17 = vadd.f32 %v1186_v15, %v1054_v12 }
 0x3f5   :  { %v5439_v18 = vadd.f32 %v1195_v14, %v1190_v17  ;;  %v1211_v21 = vmul.f32 %v5437_v16, %v5437_v16 }
 0x3f7   :  { %v1207_v20 = vadd.f32 %v5439_v18, %v5437_v16  ;;  %v1212_v22 = vmul.f32 %v5439_v18, %v5439_v18 }
 0x3f9   :  { %1208 = vadd.xlane.f32.xlu0 %v1207_v20  ;;  %v1213_v24 = vadd.f32 %v1212_v22, %v1211_v21 }
 0x3fb   :  { %1214 = vadd.xlane.f32.xlu1 %v1213_v24 }
 0x3ff   :  { %1224 = vadd.xlane.f32.xlu1 %v1223_v25 }
 0x482   :  { %v1209_v34 = vpop.xlane.xlu0 %1208 }
 0x483   :  { %v1210_v36 = vadd.f32 %v1209_v34, %v627_v27 }
 0x484   :  { %v1215_v37 = vpop.xlane.xlu1 %1214 }
 0x485   :  { %v1230_v38 = vmul.f32 0.001953125, %v1210_v36  ;;  %v1216_v41 = vadd.f32 %v1215_v37, %v633_v30  ;;  %v1329_v30 = vlaneseq  ;;  %v4490_v37 = vld [vmem:[%s6525_s3 + $0x8] sm:$0x3] }
 0x487   :  { %v1232_v46 = vmul.f32 %v1230_v38, %v1230_v38  ;;  %v1231_v49 = vmul.f32 0.001953125, %v1216_v41 }
 0x488   :  { %v1225_v50 = vpop.xlane.xlu1 %1224 }
 0x489   :  { %v1233_v51 = vsub.f32 %v1231_v49, %v1232_v46  ;;  %v1226_v54 = vadd.f32 %v1225_v50, %v643_v31  ;;  %v1339_v31 = vshrl.u32 %v1329_v30, 7 }
 0x48b   :  { %v1234_v56 = vmax.f32 %v1233_v51, 0.0  ;;  %v1243_v57 = vmul.f32 0.001953125, %v1226_v54  ;;  %v5484_v34 = vsub.s32 0, %v1339_v31  ;;  %v5486_v36 = vsub.s32 1, %v1339_v31 }
 0x48d   :  { %v1235_v59 = vadd.f32 1e-05, %v1234_v56  ;;  %v1245_v60 = vsub.f32 %v1243_v57, %v1244_v55  ;;  %v1645_v46 = vrot.slane %v4490_v37, %v5484_v34  ;;  %v1649_v50 = vrot.slane %v4490_v37, %v5486_v36  ;;  %v4484_v37 = vld [vmem:[%s6525_s3 + $0x4] sm:$0x3] }
 0x48f   :  { %4687 = vrsqrt.f32 %v1235_v59  ;;  %v1246_v61 = vmax.f32 %v1245_v60, 0.0 }
 0x491   :  { %v1247_v62 = vadd.f32 1e-05, %v1246_v61 }
 0x493   :  { %4689 = vrsqrt.f32 %v1247_v62 }
 0x49c   :  { %v4688_v1 = vpop.eup %4687 }
 0x49d   :  { %v1237_v5 = vmul.f32 %v4688_v1, %v1227_v63 }
 0x49f   :  { %1256 = vperm.xlu1 %4686, %v1237_v5   ;;  %v1238_v39 = vmul.f32 %v1237_v5, %v1230_v38 }
 0x4a0   :  { %v4690_v40 = vpop.eup %4689 }
 0x4a1   :  { %v1239_v43 = vsub.f32 %v1228_v6, %v1238_v39  ;;  %v1249_v47 = vmul.f32 %v4690_v40, %v1240_v7 }
 0x4a3   :  { %1263 = vperm.xlu1 %4686, %v1239_v43   ;;  %1288 = vperm.xlu0 %4685, %v1249_v47   ;;  %v1250_v3 = vmul.f32 %v1249_v47, %v1242_v42 }
 0x4a5   :  { %v1251_v58 = vsub.f32 %v1241_v52, %v1250_v3 }
 0x4a7   :  { %1295 = vperm.xlu1 %4686, %v1251_v58  }
 0x51a   :  { %v5463_v48 = vpop.permute.xlu1 %1256 }
 0x51b   :  { %v1259_v44 = vmul.f32 %v5463_v48, %v5366_v28  ;;  %v1260_v45 = vmul.f32 %v5463_v48, %v5368_v29  ;;  %v2054_v63 = vmul.f32 %v5463_v48, %v5437_v16  ;;  %v2055_v5 = vmul.f32 %v5463_v48, %v5439_v18 }
 0x51e   :  { %v5469_v53 = vpop.permute.xlu0 %1288  ;;  %v5471_v4 = vpop.permute.xlu1 %1263 }
 0x51f   :  { %v1266_v10 = vadd.f32 %v5471_v4, %v1259_v44  ;;  %v1267_v11 = vadd.f32 %v5471_v4, %v1260_v45  ;;  %v1291_v12 = vmul.f32 %v5469_v53, %v5346_v8  ;;  %v1292_v13 = vmul.f32 %v5469_v53, %v5351_v9 }
 0x520   :  { %v2056_v1 = vadd.f32 %v2054_v63, %v5471_v4  ;;  %v2057_v6 = vadd.f32 %v2055_v5, %v5471_v4  ;;  %v2076_v40 = vmul.f32 %v5381_v32, %v5469_v53  ;;  %v2077_v47 = vmul.f32 %v5386_v33, %v5469_v53 }
 0x521   :  { %v4475_v14 = vmul.f32 -1.442695, %v1266_v10  ;;  %v4476_v15 = vmul.f32 -1.442695, %v1267_v11 }
 0x522   :  { %v5479_v17 = vpop.permute.xlu1 %1295  ;;  %v4504_v7 = vmul.f32 -1.442695, %v2056_v1  ;;  %v4505_v39 = vmul.f32 -1.442695, %v2057_v6 }
 0x523   :  { %v1298_v19 = vadd.f32 %v5479_v17, %v1291_v12  ;;  %v1299_v20 = vadd.f32 %v5479_v17, %v1292_v13  ;;  %4691 = vpow2.f32 %v4475_v14  ;;  %v2078_v43 = vadd.f32 %v2076_v40, %v5479_v17 }
 0x524   :  { %4693 = vpow2.f32 %v4476_v15  ;;  %v2079_v32 = vadd.f32 %v2077_v47, %v5479_v17 }
 0x525   :  { %v4477_v21 = vmul.f32 -1.442695, %v1298_v19  ;;  %v4478_v22 = vmul.f32 -1.442695, %v1299_v20  ;;  %v4506_v52 = vmul.f32 -1.442695, %v2078_v43 }
 0x526   :  { %v4507_v3 = vmul.f32 -1.442695, %v2079_v32 }
 0x527   :  { %4695 = vpow2.f32 %v4477_v21 }
 0x528   :  { %4697 = vpow2.f32 %v4478_v22 }
 0x530   :  { %v4692_v23 = vpop.eup %4691 }
 0x531   :  { %v4694_v24 = vpop.eup %4693  ;;  %v1274_v8 = vadd.f32 1.0, %v4692_v23 }
 0x532   :  { %v1275_v25 = vadd.f32 1.0, %v4694_v24 }
 0x533   :  { %4699 = vrcp.f32 %v1274_v8  ;;  %v2024_v8 = vld [vmem:[%s6526_s9] sm:$0xff] }
 0x534   :  { %v4696_v9 = vpop.eup %4695  ;;  %4701 = vrcp.f32 %v1275_v25 }
 0x535   :  { %v4698_v26 = vpop.eup %4697  ;;  %v1306_v27 = vadd.f32 1.0, %v4696_v9 }
 0x536   :  { %v1307_v0 = vadd.f32 1.0, %v4698_v26  ;;  %v2032_v26 = vld [vmem:[%s6527_s10] sm:$0xff] }
 0x537   :  { %4703 = vrcp.f32 %v1306_v27 }
 0x538   :  { %4705 = vrcp.f32 %v1307_v0 }
 0x539   :  { %4707 = vpow2.f32 %v4504_v7 }
 0x53a   :  { %4709 = vpow2.f32 %v4505_v39 }
 0x53b   :  { %4711 = vpow2.f32 %v4506_v52 }
 0x53c   :  { %4713 = vpow2.f32 %v4507_v3 }
 0x540   :  { %v4700_v35 = vpop.eup %4699 }
 0x541   :  { %v4702_v38 = vpop.eup %4701  ;;  %v5493_v42 = vmul.f32 %v4700_v35, %v1266_v10  ;;  %v5684_v35 = vand.u32 127, %v1329_v30 }
 0x542   :  { %v5491_v41 = vmul.f32 %v4702_v38, %v1267_v11 }
 0x543   :  { %v5506_v56 = vmul.f32 %v1645_v46, %v5493_v42  ;;  %vm1487_vm4 = vcmp.lt.s32.totalorder %v5684_v35, 15  ;;  %vm1794_vm6 = vcmp.lt.s32.totalorder %v5684_v35, 113  ;;  %vm1364_vm7 = vcmp.lt.s32.totalorder %v5684_v35, 16 }
 0x544   :  { %v4704_v49 = vpop.eup %4703  ;;  %1360 = vrot.lane.b32.xlu0 %v5491_v41, %s4748_s28  ;;  %v5514_v59 = vmul.f32 %v1649_v50, %v5491_v41  ;;  %vm1331_vm8 = vcmp.lt.s32.totalorder %v5684_v35, 17  ;;  %vm1567_vm9 = vcmp.lt.s32.totalorder %v5684_v35, 1  ;;  %vm1954_vm10 = vcmp.lt.s32.totalorder %v5684_v35, 111 }
 0x545   :  { %v4706_v51 = vpop.eup %4705  ;;  %v5499_v54 = vmul.f32 %v4704_v49, %v1298_v19  ;;  %vm1714_vm11 = vcmp.lt.s32.totalorder %v5684_v35, 127  ;;  %vm1874_vm12 = vcmp.lt.s32.totalorder %v5684_v35, 112  ;;  %v4591_v35 = vld [vmem:[%s6533_s13 + $0x14] sm:$0xf] }
 0x546   :  { %v5501_v55 = vmul.f32 %v4706_v51, %v1299_v20  ;;  %v4708_v58 = vpop.eup %4707 }
 0x547   :  { %1358 = vrot.lane.b32.xlu1 %v5499_v54, %s4748_s28  ;;  %v5509_v57 = vmul.f32 %v1645_v46, %v5499_v54  ;;  %v2064_v33 = vadd.f32 1.0, %v4708_v58  ;;  %v4710_v48 = vpop.eup %4709  ;;  %v1502_v46 = vrot.slane %v4484_v37, %v5486_v36 }
 0x548   :  { %1321 = vrot.lane.b32.xlu0 %v5493_v42, %s4749_s0  ;;  %v5517_v60 = vmul.f32 %v1649_v50, %v5501_v55  ;;  %v2065_v44 = vadd.f32 1.0, %v4710_v48  ;;  %v4712_v45 = vpop.eup %4711  ;;  %v4533_v50 = vld [vmem:[%s6527_s10 + $0x8] sm:$0xff] }
 0x549   :  { %v1656_v61 = vpack.c.bf16 %v5509_v57, %v5506_v56  ;;  %4715 = vrcp.f32 %v2064_v33  ;;  %v2086_v53 = vadd.f32 1.0, %v4712_v45  ;;  %v4714_v4 = vpop.eup %4713  ;;  %v4496_v48 = vld [vmem:[%s6525_s3 + $0xc] sm:$0x3] }
 0x54a   :  { %v1657_v62 = vpack.c.bf16 %v5517_v60, %v5514_v59  ;;  %4717 = vrcp.f32 %v2065_v44  ;;  %v2087_v10 = vadd.f32 1.0, %v4714_v4  ;;  %v4489_v59 = vld [vmem:[%s6528_s8 + $0x10] sm:$0xf]  ;;  %v1809_v44 = vrot.slane %v4496_v48, %v5486_v36 }
 0x54b   :  { %1362 = vrot.lane.b32.xlu1 %v5501_v55, %s4748_s28  ;;  %4719 = vrcp.f32 %v2086_v53 }
 0x54c   :  { %1325 = vrot.lane.b32.xlu0 %v5491_v41, %s4749_s0  ;;  %4721 = vrcp.f32 %v2087_v10 }
 0x54f   :  { %1323 = vrot.lane.b32.xlu1 %v5499_v54, %s4749_s0 }
 0x550   :  { %1479 = vrot.lane.b32.xlu0 %v5493_v42, %s4750_s30 }
 0x553   :  { %1327 = vrot.lane.b32.xlu1 %v5501_v55, %s4749_s0 }
 0x554   :  { %1483 = vrot.lane.b32.xlu0 %v5491_v41, %s4750_s30 }
 0x556   :  { %v4716_v11 = vpop.eup %4715 }
 0x557   :  { %1481 = vrot.lane.b32.xlu1 %v5499_v54, %s4750_s30  ;;  %v5587_v12 = vmul.f32 %v4716_v11, %v2056_v1  ;;  %v4718_v13 = vpop.eup %4717 }
 0x558   :  { %1559 = vrot.lane.b32.xlu0 %v5493_v42, %s4751_s18  ;;  %v5593_v14 = vmul.f32 %v4718_v13, %v2057_v6  ;;  %v4720_v15 = vpop.eup %4719 }
 0x559   :  { %v5603_v17 = vmul.f32 %v4720_v15, %v2078_v43  ;;  %v4722_v19 = vpop.eup %4721 }
 0x55a   :  { %v5609_v20 = vmul.f32 %v4722_v19, %v2079_v32  ;;  %v4483_v32 = vld [vmem:[%s6528_s8 + $0x8] sm:$0xf] }
 0x55b   :  { %1485 = vrot.lane.b32.xlu1 %v5501_v55, %s4750_s30 }
 0x55c   :  { %1563 = vrot.lane.b32.xlu0 %v5491_v41, %s4751_s18 }
 0x55f   :  { %1561 = vrot.lane.b32.xlu1 %v5499_v54, %s4751_s18 }
 0x560   :  { %1706 = vrot.lane.b32.xlu0 %v5493_v42, %s4752_s19 }
 0x563   :  { %1565 = vrot.lane.b32.xlu1 %v5501_v55, %s4751_s18 }
 0x564   :  { %1710 = vrot.lane.b32.xlu0 %v5491_v41, %s4752_s19 }
 0x567   :  { %1708 = vrot.lane.b32.xlu1 %v5499_v54, %s4752_s19 }
 0x568   :  { %1786 = vrot.lane.b32.xlu0 %v5493_v42, %s4753_s2 }
 0x56b   :  { %1712 = vrot.lane.b32.xlu1 %v5501_v55, %s4752_s19 }
 0x56c   :  { %1790 = vrot.lane.b32.xlu0 %v5491_v41, %s4753_s2 }
 0x56f   :  { %1788 = vrot.lane.b32.xlu1 %v5499_v54, %s4753_s2 }
 0x570   :  { %1866 = vrot.lane.b32.xlu0 %v5493_v42, %s4754_s20 }
 0x573   :  { %1792 = vrot.lane.b32.xlu1 %v5501_v55, %s4753_s2 }
 0x574   :  { %1870 = vrot.lane.b32.xlu0 %v5491_v41, %s4754_s20 }
 0x577   :  { %1868 = vrot.lane.b32.xlu1 %v5499_v54, %s4754_s20 }
 0x578   :  { %1946 = vrot.lane.b32.xlu0 %v5493_v42, %s4755_s21 }
 0x57b   :  { %1872 = vrot.lane.b32.xlu1 %v5501_v55, %s4754_s20 }
 0x57c   :  { %1950 = vrot.lane.b32.xlu0 %v5491_v41, %s4755_s21 }
 0x57f   :  { %1356 = vrot.lane.b32.xlu1 %v5493_v42, %s4748_s28  ;;  %v1498_v42 = vrot.slane %v4484_v37, %v5484_v34 }
 0x580   :  { %2132 = vrot.lane.b32.xlu0 %v5587_v12, %s4748_s28 }
 0x583   :  { %1948 = vrot.lane.b32.xlu1 %v5499_v54, %s4755_s21 }
 0x584   :  { %2136 = vrot.lane.b32.xlu0 %v5593_v14, %s4748_s28 }
 0x587   :  { %1952 = vrot.lane.b32.xlu1 %v5501_v55, %s4755_s21 }
 0x588   :  { %2101 = vrot.lane.b32.xlu0 %v5587_v12, %s4749_s0 }
 0x58b   :  { %2134 = vrot.lane.b32.xlu1 %v5603_v17, %s4748_s28 }
 0x58c   :  { %2105 = vrot.lane.b32.xlu0 %v5593_v14, %s4749_s0 }
 0x58f   :  { %2138 = vrot.lane.b32.xlu1 %v5609_v20, %s4748_s28 }
 0x590   :  { %2251 = vrot.lane.b32.xlu0 %v5587_v12, %s4750_s30 }
 0x593   :  { %2103 = vrot.lane.b32.xlu1 %v5603_v17, %s4749_s0 }
 0x594   :  { %2255 = vrot.lane.b32.xlu0 %v5593_v14, %s4750_s30 }
 0x597   :  { %2107 = vrot.lane.b32.xlu1 %v5609_v20, %s4749_s0 }
 0x598   :  { %2328 = vrot.lane.b32.xlu0 %v5587_v12, %s4751_s18 }
 0x59b   :  { %2253 = vrot.lane.b32.xlu1 %v5603_v17, %s4750_s30 }
 0x59c   :  { %2332 = vrot.lane.b32.xlu0 %v5593_v14, %s4751_s18 }
 0x59f   :  { %2257 = vrot.lane.b32.xlu1 %v5609_v20, %s4750_s30 }
 0x5a0   :  { %2470 = vrot.lane.b32.xlu0 %v5587_v12, %s4752_s19 }
 0x5a3   :  { %2330 = vrot.lane.b32.xlu1 %v5603_v17, %s4751_s18 }
 0x5a4   :  { %2474 = vrot.lane.b32.xlu0 %v5593_v14, %s4752_s19 }
 0x5a7   :  { %2334 = vrot.lane.b32.xlu1 %v5609_v20, %s4751_s18 }
 0x5a8   :  { %2547 = vrot.lane.b32.xlu0 %v5587_v12, %s4753_s2 }
 0x5ab   :  { %2472 = vrot.lane.b32.xlu1 %v5603_v17, %s4752_s19 }
 0x5ac   :  { %2551 = vrot.lane.b32.xlu0 %v5593_v14, %s4753_s2 }
 0x5af   :  { %2476 = vrot.lane.b32.xlu1 %v5609_v20, %s4752_s19 }
 0x5b0   :  { %2624 = vrot.lane.b32.xlu0 %v5587_v12, %s4754_s20 }
 0x5b3   :  { %2549 = vrot.lane.b32.xlu1 %v5603_v17, %s4753_s2 }
 0x5b4   :  { %2628 = vrot.lane.b32.xlu0 %v5593_v14, %s4754_s20 }
 0x5b6   :  { %v5651_v21 = vpop.permute.xlu0 %1360 }
 0x5b7   :  { %2553 = vrot.lane.b32.xlu1 %v5609_v20, %s4753_s2 }
 0x5b8   :  { %2701 = vrot.lane.b32.xlu0 %v5587_v12, %s4755_s21 }
 0x5b9   :  { %v5657_v22 = vpop.permute.xlu1 %1358 }
 0x5ba   :  { %v5659_v23 = vpop.permute.xlu0 %1321 }
 0x5bb   :  { %2626 = vrot.lane.b32.xlu1 %v5603_v17, %s4754_s20 }
 0x5bc   :  { %2705 = vrot.lane.b32.xlu0 %v5593_v14, %s4755_s21 }
 0x5bd   :  { %v5665_v24 = vpop.permute.xlu1 %1362 }
 0x5be   :  { %v5670_v25 = vpop.permute.xlu0 %1325 }
 0x5bf   :  { %2630 = vrot.lane.b32.xlu1 %v5609_v20, %s4754_s20 }
 0x5c0   :  { %2027 = vperm.xlu0 %4685, %v2024_v8  }
 0x5c1   :  { %v5674_v9 = vpop.permute.xlu1 %1323 }
 0x5c2   :  { %v1480_v27 = vpop.permute.xlu0 %1479 }
 0x5c3   :  { %2703 = vrot.lane.b32.xlu1 %v5603_v17, %s4755_s21 }
 0x5c4   :  { %2035 = vperm.xlu0 %4685, %v2032_v26  }
 0x5c5   :  { %v5681_v0 = vpop.permute.xlu1 %1327 }
 0x5c6   :  { %v1484_v31 = vpop.permute.xlu0 %1483 }
 0x5c7   :  { %2707 = vrot.lane.b32.xlu1 %v5609_v20, %s4755_s21  ;;  %v1488_v30 = vsel %vm1487_vm4, %v1480_v27, %v1484_v31  ;;  %v1490_v49 = vsel %vm1487_vm4, %v1484_v31, %v1480_v27 }
 0x5c8   :  { %v1505_v1 = vmul.f32 %v1498_v42, %v1490_v49  ;;  %v1506_v5 = vmul.f32 %v1502_v46, %v1488_v30  ;;  %v1336_v30 = vld [vmem:[%s6525_s3] sm:$0x3] }
 0x5c9   :  { %v1482_v38 = vpop.permute.xlu1 %1481 }
 0x5ca   :  { %v5692_v41 = vpop.permute.xlu0 %1559 }
 0x5cb   :  { %2780 = vperm.xlu1 %4686, %v2024_v8  }
 0x5cd   :  { %v1486_v51 = vpop.permute.xlu1 %1485 }
 0x5ce   :  { %v5703_v54 = vpop.permute.xlu0 %1563  ;;  %v1489_v55 = vsel %vm1487_vm4, %v1482_v38, %v1486_v51  ;;  %v1491_v63 = vsel %vm1487_vm4, %v1486_v51, %v1482_v38  ;;  %v4480_v38 = vld [vmem:[%s6525_s3 + $0x2] sm:$0x3] }
 0x5cf   :  { %v1507_v6 = vmul.f32 %v1498_v42, %v1491_v63  ;;  %v1508_v7 = vmul.f32 %v1502_v46, %v1489_v55  ;;  %2789 = vperm.xlu1 %4686, %v4533_v50   ;;  %v4495_v46 = vld [vmem:[%s6528_s8 + $0x18] sm:$0xf]  ;;  %v1375_v49 = vrot.slane %v4480_v38, %v5484_v34  ;;  %v1379_v51 = vrot.slane %v4480_v38, %v5486_v36 }
 0x5d0   :  { %v1368_v55 = vsel %vm1364_vm7, %v5665_v24, %v5657_v22 }
 0x5d1   :  { %v1509_v39 = vpack.c.bf16 %v1507_v6, %v1505_v1  ;;  %v5709_v40 = vpop.permute.xlu1 %1561  ;;  %v1510_v43 = vpack.c.bf16 %v1508_v7, %v1506_v5  ;;  %v1366_v1 = vsel %vm1364_vm7, %v5657_v22, %v5665_v24  ;;  %v1345_v5 = vrot.slane %v1336_v30, %v5486_v36  ;;  %v4487_v22 = vld [vmem:[%s6525_s3 + $0x6] sm:$0x3] }
 0x5d2   :  { %v5711_v47 = vpop.permute.xlu0 %1706  ;;  %v1333_v6 = vsel %vm1331_vm8, %v5674_v9, %v5681_v0  ;;  %v1341_v7 = vrot.slane %v1336_v30, %v5484_v34 }
 0x5d3   :  { %1528 = vmatprep.subr.bf16.mxu0 %v1510_v43  ;;  %v1384_v43 = vmul.f32 %v1375_v49, %v1368_v55 }
 0x5d4   :  { %1529 = vmatpush1.bf16.msra.mxu0 %v1509_v39  ;;  %v1332_v39 = vsel %vm1331_vm8, %v5659_v23, %v5670_v25 }
 0x5d5   :  { %1675 = vmatprep.subr.bf16.mxu0 %v1657_v62  ;;  %v5719_v52 = vpop.permute.xlu1 %1565 }
 0x5d6   :  { %v5721_v3 = vpop.permute.xlu0 %1710 }
 0x5d7   :  { %4485 = vmatmul.mubr.msk.bf16.vlgmr.msra.gmra.mxu0 %vm1388_vm5, %v4483_v32  ;;  %v1385_v32 = vmul.f32 %v1379_v51, %v1366_v1  ;;  %v4493_v1 = vld [vmem:[%s6525_s3 + $0xa] sm:$0x3] }
 0x5d8   :  { %1676 = vmatpush1.bf16.msra.mxu0 %v1656_v61  ;;  %1693 = vmatprep.mubr.bf16.mxu0 %v6574_v2  ;;  %v1805_v61 = vrot.slane %v4496_v48, %v5484_v34 }
 0x5d9   :  { %v5728_v58 = vpop.permute.xlu1 %1708 }
 0x5da   :  { %v1787_v33 = vpop.permute.xlu0 %1786 }
 0x5dd   :  { %v5733_v60 = vpop.permute.xlu1 %1712 }
 0x5de   :  { %v1791_v62 = vpop.permute.xlu0 %1790 }
 0x5df   :  { %4491 = vmatmul.mubr.msk.bf16.vlgmr.msra.gmra.mxu0 %vm1388_vm5, %v4489_v59  ;;  %v1795_v45 = vsel %vm1794_vm6, %v1787_v33, %v1791_v62  ;;  %v1797_v53 = vsel %vm1794_vm6, %v1791_v62, %v1787_v33  ;;  %v1335_v33 = vsel %vm1331_vm8, %v5681_v0, %v5674_v9  ;;  %v1334_v9 = vsel %vm1331_vm8, %v5670_v25, %v5659_v23 }
 0x5e0   :  { %1853 = vmatprep.mubr.bf16.mxu0 %v6574_v2  ;;  %v1812_v15 = vmul.f32 %v1805_v61, %v1795_v45  ;;  %v1813_v19 = vmul.f32 %v1809_v44, %v1797_v53  ;;  %v1349_v0 = vmul.f32 %v1345_v5, %v1332_v39  ;;  %v1582_v53 = vrot.slane %v4487_v22, %v5486_v36 }
 0x5e1   :  { %v1789_v56 = vpop.permute.xlu1 %1788  ;;  %v1348_v25 = vmul.f32 %v1341_v7, %v1334_v9 }
 0x5e2   :  { %v5741_v57 = vpop.permute.xlu0 %1866 }
 0x5e5   :  { %v1793_v4 = vpop.permute.xlu1 %1792 }
 0x5e6   :  { %v5749_v10 = vpop.permute.xlu0 %1870  ;;  %v1796_v11 = vsel %vm1794_vm6, %v1789_v56, %v1793_v4  ;;  %v1798_v13 = vsel %vm1794_vm6, %v1793_v4, %v1789_v56  ;;  %v1351_v56 = vmul.f32 %v1345_v5, %v1333_v6  ;;  %v1350_v4 = vmul.f32 %v1341_v7, %v1335_v33 }
 0x5e7   :  { %v1814_v8 = vmul.f32 %v1805_v61, %v1796_v11  ;;  %v1815_v26 = vmul.f32 %v1809_v44, %v1798_v13  ;;  %v1569_v61 = vsel %vm1567_vm9, %v5709_v40, %v5719_v52  ;;  %v1568_v11 = vsel %vm1567_vm9, %v5692_v41, %v5703_v54 }
 0x5e8   :  { %v1586_v38 = vmul.f32 %v1582_v53, %v1568_v11  ;;  %v1571_v5 = vsel %vm1567_vm9, %v5719_v52, %v5709_v40  ;;  %v1578_v33 = vrot.slane %v4487_v22, %v5484_v34  ;;  %v1718_v40 = vsel %vm1714_vm11, %v5733_v60, %v5728_v58 }
 0x5e9   :  { %v1816_v27 = vpack.c.bf16 %v1814_v8, %v1812_v15  ;;  %v5755_v31 = vpop.permute.xlu1 %1868  ;;  %v1817_v37 = vpack.c.bf16 %v1815_v26, %v1813_v19  ;;  %v1588_v8 = vmul.f32 %v1582_v53, %v1569_v61  ;;  %v1570_v52 = vsel %vm1567_vm9, %v5703_v54, %v5692_v41  ;;  %v1320_v41 = vld [vmem:[%s6528_s8] sm:$0xf] }
 0x5ea   :  { %v1947_v42 = vpop.permute.xlu0 %1946  ;;  %v1717_v61 = vsel %vm1714_vm11, %v5721_v3, %v5711_v47  ;;  %v4501_v54 = vld [vmem:[%s6528_s8 + $0x20] sm:$0xf] }
 0x5eb   :  { %1835 = vmatprep.subr.bf16.mxu0 %v1817_v37  ;;  %v1353_v37 = vpack.c.bf16 %v1351_v56, %v1349_v0  ;;  %v1590_v7 = vpack.c.bf16 %v1588_v8, %v1586_v38  ;;  %v1585_v0 = vmul.f32 %v1578_v33, %v1570_v52 }
 0x5ec   :  { %1836 = vmatpush1.bf16.msra.mxu0 %v1816_v27 }
 0x5ed   :  { %v5768_v50 = vpop.permute.xlu1 %1872 }
 0x5ee   :  { %v1951_v63 = vpop.permute.xlu0 %1950  ;;  %v1878_v8 = vsel %vm1874_vm12, %v5768_v50, %v5755_v31 }
 0x5ef   :  { %4497 = vmatmul.mubr.msk.bf16.vlgmr.msra.gmra.mxu0 %vm1388_vm5, %v4495_v46  ;;  %v1955_v46 = vsel %vm1954_vm10, %v1947_v42, %v1951_v63  ;;  %v1957_v30 = vsel %vm1954_vm10, %v1951_v63, %v1947_v42 }
 0x5f0   :  { %2013 = vmatprep.mubr.bf16.mxu0 %v6574_v2 }
 0x5f1   :  { %v1357_v24 = vpop.permute.xlu1 %1356 }
 0x5f2   :  { %v5800_v59 = vpop.permute.xlu0 %2132  ;;  %v1365_v62 = vsel %vm1364_vm7, %v1357_v24, %v5651_v21  ;;  %v1367_v48 = vsel %vm1364_vm7, %v5651_v21, %v1357_v24  ;;  %v4502_v21 = vld [vmem:[%s6525_s3 + $0x10] sm:$0x3] }
 0x5f3   :  { %v1382_v44 = vmul.f32 %v1375_v49, %v1367_v48  ;;  %v1383_v45 = vmul.f32 %v1379_v51, %v1365_v62  ;;  %v1965_v26 = vrot.slane %v4502_v21, %v5484_v34  ;;  %v1969_v27 = vrot.slane %v4502_v21, %v5486_v36  ;;  %v4479_v49 = vld [vmem:[%s6528_s8 + $0x4] sm:$0xf]  ;;  %v4499_v21 = vld [vmem:[%s6525_s3 + $0xe] sm:$0x3] }
 0x5f4   :  { %v1352_v51 = vpack.c.bf16 %v1350_v4, %v1348_v25  ;;  %v1729_v62 = vrot.slane %v4493_v1, %v5486_v36 }
 0x5f5   :  { %v1386_v13 = vpack.c.bf16 %v1384_v43, %v1382_v44  ;;  %v1949_v15 = vpop.permute.xlu1 %1948  ;;  %v1387_v19 = vpack.c.bf16 %v1385_v32, %v1383_v45  ;;  %v1972_v39 = vmul.f32 %v1965_v26, %v1955_v46  ;;  %v1973_v43 = vmul.f32 %v1969_v27, %v1957_v30 }
 0x5f6   :  { %v5825_v23 = vpop.permute.xlu0 %2136  ;;  %v1587_v44 = vmul.f32 %v1578_v33, %v1571_v5  ;;  %v1735_v9 = vmul.f32 %v1729_v62, %v1718_v40  ;;  %v1733_v53 = vmul.f32 %v1729_v62, %v1717_v61  ;;  %v4486_v5 = vld [vmem:[%s6528_s8 + $0xc] sm:$0xf] }
 0x5f7   :  { %1406 = vmatprep.subr.bf16.mxu1 %v1387_v19  ;;  %v1725_v19 = vrot.slane %v4493_v1, %v5484_v34 }
 0x5f8   :  { %1407 = vmatpush1.bf16.msra.mxu1 %v1386_v13  ;;  %v1589_v11 = vpack.c.bf16 %v1587_v44, %v1585_v0  ;;  %v1716_v13 = vsel %vm1714_vm11, %v5728_v58, %v5733_v60  ;;  %v1737_v25 = vpack.c.bf16 %v1735_v9, %v1733_v53  ;;  %v1715_v58 = vsel %vm1714_vm11, %v5711_v47, %v5721_v3 }
 0x5f9   :  { %1450 = vmatprep.subr.bf16.mxu1 %v1353_v37  ;;  %v1953_v55 = vpop.permute.xlu1 %1952  ;;  %v1889_v60 = vrot.slane %v4499_v21, %v5486_v36  ;;  %v1877_v37 = vsel %vm1874_vm12, %v5749_v10, %v5741_v57  ;;  %v1732_v46 = vmul.f32 %v1725_v19, %v1715_v58  ;;  %v2140_v0 = vsel %vm1364_vm7, %v5800_v59, %v5825_v23 }
 0x5fa   :  { %v2102_v42 = vpop.permute.xlu0 %2101  ;;  %v1956_v63 = vsel %vm1954_vm10, %v1949_v15, %v1953_v55  ;;  %v1958_v6 = vsel %vm1954_vm10, %v1953_v55, %v1949_v15 }
 0x5fb   :  { %v1974_v24 = vmul.f32 %v1965_v26, %v1956_v63  ;;  %v1975_v32 = vmul.f32 %v1969_v27, %v1958_v6  ;;  %4481 = vmatmul.mubr.msk.bf16.vlgmr.msra.gmra.mxu1 %vm1388_vm5, %v4479_v49  ;;  %v2113_v26 = vld [vmem:[%s6525_s3] sm:$0x3]  ;;  %v1734_v27 = vmul.f32 %v1725_v19, %v1716_v13  ;;  %v1895_v47 = vmul.f32 %v1889_v60, %v1878_v8  ;;  %v4513_v8 = vld [vmem:[%s6525_s3 + $0x4] sm:$0x3] }
 0x5fc   :  { %1451 = vmatpush1.bf16.msra.mxu1 %v1352_v51  ;;  %1468 = vmatprep.mubr.bf16.mxu1 %v6574_v2  ;;  %v2118_v30 = vrot.slane %v2113_v26, %v5484_v34  ;;  %v2122_v49 = vrot.slane %v2113_v26, %v5486_v36  ;;  %v1893_v51 = vmul.f32 %v1889_v60, %v1877_v37  ;;  %v4516_v60 = vld [vmem:[%s6525_s3 + $0x6] sm:$0x3] }
 0x5fd   :  { %v1976_v48 = vpack.c.bf16 %v1974_v24, %v1972_v39  ;;  %1608 = vmatprep.subr.bf16.mxu1 %v1590_v7  ;;  %v5860_v56 = vpop.permute.xlu1 %2134  ;;  %v1977_v22 = vpack.c.bf16 %v1975_v32, %v1973_v43  ;;  %v1736_v63 = vpack.c.bf16 %v1734_v27, %v1732_v46  ;;  %v1876_v7 = vsel %vm1874_vm12, %v5755_v31, %v5768_v50  ;;  %v4509_v39 = vld [vmem:[%s6525_s3 + $0x2] sm:$0x3] }
 0x5fe   :  { %v2106_v45 = vpop.permute.xlu0 %2105  ;;  %v1897_v32 = vpack.c.bf16 %v1895_v47, %v1893_v51  ;;  %v1885_v31 = vrot.slane %v4499_v21, %v5484_v34  ;;  %v2149_v58 = vrot.slane %v4509_v39, %v5484_v34  ;;  %v2272_v37 = vrot.slane %v4513_v8, %v5486_v36 }
 0x5ff   :  { %1995 = vmatprep.subr.bf16.mxu0 %v1977_v22  ;;  %v2109_v55 = vsel %vm1331_vm8, %v2102_v42, %v2106_v45  ;;  %v2111_v1 = vsel %vm1331_vm8, %v2106_v45, %v2102_v42  ;;  %v2153_v22 = vrot.slane %v4509_v39, %v5486_v36 }
 0x600   :  { %1996 = vmatpush1.bf16.msra.mxu0 %v1976_v48  ;;  %v2125_v33 = vmul.f32 %v2118_v30, %v2111_v1  ;;  %v2126_v40 = vmul.f32 %v2122_v49, %v2109_v55  ;;  %v1875_v48 = vsel %vm1874_vm12, %v5741_v57, %v5749_v10  ;;  %v1894_v9 = vmul.f32 %v1885_v31, %v1876_v7  ;;  %v4492_v57 = vld [vmem:[%s6528_s8 + $0x14] sm:$0xf]  ;;  %v2100_v10 = vld [vmem:[%s6528_s8] sm:$0xf] }
 0x601   :  { %v5875_v4 = vpop.permute.xlu1 %2138  ;;  %v1892_v53 = vmul.f32 %v1885_v31, %v1875_v48  ;;  %v2157_v21 = vmul.f32 %v2153_v22, %v2140_v0  ;;  %v2268_v48 = vrot.slane %v4513_v8, %v5484_v34 }
 0x602   :  { %v5882_v15 = vpop.permute.xlu0 %2251  ;;  %v2141_v50 = vsel %vm1364_vm7, %v5860_v56, %v5875_v4  ;;  %v2143_v19 = vsel %vm1364_vm7, %v5875_v4, %v5860_v56  ;;  %v2142_v56 = vsel %vm1364_vm7, %v5825_v23, %v5800_v59  ;;  %v2345_v59 = vrot.slane %v4516_v60, %v5484_v34 }
 0x603   :  { %4482 = vmatmul.mubr.msk.bf16.vlgmr.msra.gmra.mxu1 %vm1388_vm5, %v1320_v41  ;;  %4503 = vmatmul.mubr.msk.bf16.vlgmr.msra.gmra.mxu0 %vm1388_vm5, %v4501_v54  ;;  %v2159_v54 = vmul.f32 %v2153_v22, %v2141_v50  ;;  %v1896_v13 = vpack.c.bf16 %v1894_v9, %v1892_v53  ;;  %v2158_v27 = vmul.f32 %v2149_v58, %v2143_v19 }
 0x604   :  { %1609 = vmatpush1.bf16.msra.mxu1 %v1589_v11  ;;  %1626 = vmatprep.mubr.bf16.mxu1 %v6574_v2  ;;  %v2349_v23 = vrot.slane %v4516_v60, %v5486_v36 }
 0x605   :  { %1755 = vmatprep.subr.bf16.mxu1 %v1737_v25  ;;  %v2104_v38 = vpop.permute.xlu1 %2103  ;;  %2241 = vmatprep.mubr.bf16.mxu0 %v6574_v2  ;;  %v2161_v26 = vpack.c.bf16 %v2159_v54, %v2157_v21 }
 0x606   :  { %v5905_v3 = vpop.permute.xlu0 %2255 }
 0x607   :  { %v2259_v47 = vsel %vm1487_vm4, %v5882_v15, %v5905_v3  ;;  %v2261_v22 = vsel %vm1487_vm4, %v5905_v3, %v5882_v15  ;;  %v4515_v3 = vld [vmem:[%s6528_s8 + $0xc] sm:$0xf] }
 0x608   :  { %v2275_v21 = vmul.f32 %v2268_v48, %v2261_v22 }
 0x609   :  { %v2108_v6 = vpop.permute.xlu1 %2107 }
 0x60a   :  { %v2329_v43 = vpop.permute.xlu0 %2328  ;;  %v2110_v24 = vsel %vm1331_vm8, %v2104_v38, %v2108_v6  ;;  %v2112_v42 = vsel %vm1331_vm8, %v2108_v6, %v2104_v38  ;;  %v2276_v6 = vmul.f32 %v2272_v37, %v2259_v47 }
 0x60b   :  { %v2127_v52 = vmul.f32 %v2118_v30, %v2112_v42  ;;  %v2128_v62 = vmul.f32 %v2122_v49, %v2110_v24  ;;  %4488 = vmatmul.mubr.msk.bf16.vlgmr.msra.gmra.mxu1 %vm1388_vm5, %v4486_v5  ;;  %v4519_v30 = vld [vmem:[%s6525_s3 + $0x8] sm:$0x3]  ;;  %v2156_v49 = vmul.f32 %v2149_v58, %v2142_v56  ;;  %v4498_v5 = vld [vmem:[%s6528_s8 + $0x1c] sm:$0xf] }
 0x60c   :  { %1756 = vmatpush1.bf16.msra.mxu1 %v1736_v63  ;;  %1773 = vmatprep.mubr.bf16.mxu1 %v6574_v2  ;;  %v2414_v39 = vrot.slane %v4519_v30, %v5486_v36 }
 0x60d   :  { %v2129_v61 = vpack.c.bf16 %v2127_v52, %v2125_v33  ;;  %1915 = vmatprep.subr.bf16.mxu1 %v1897_v32  ;;  %v2254_v44 = vpop.permute.xlu1 %2253  ;;  %v2130_v45 = vpack.c.bf16 %v2128_v62, %v2126_v40  ;;  %v2160_v63 = vpack.c.bf16 %v2158_v27, %v2156_v49  ;;  %v4522_v52 = vld [vmem:[%s6525_s3 + $0xa] sm:$0x3]  ;;  %v2410_v27 = vrot.slane %v4519_v30, %v5484_v34 }
 0x60e   :  { %v2333_v41 = vpop.permute.xlu0 %2332  ;;  %v2420_v9 = vmul.f32 %v2414_v39, %v5609_v20  ;;  %v2491_v53 = vrot.slane %v4522_v52, %v5486_v36  ;;  %v4508_v20 = vld [vmem:[%s6528_s8 + $0x4] sm:$0xf]  ;;  %v4512_v30 = vld [vmem:[%s6528_s8 + $0x8] sm:$0xf] }
 0x60f   :  { %2223 = vmatprep.subr.bf16.mxu0 %v2130_v45  ;;  %v2336_v51 = vsel %vm1567_vm9, %v2329_v43, %v2333_v41  ;;  %v2338_v55 = vsel %vm1567_vm9, %v2333_v41, %v2329_v43  ;;  %v2487_v41 = vrot.slane %v4522_v52, %v5484_v34 }
 0x610   :  { %2224 = vmatpush1.bf16.msra.mxu0 %v2129_v61  ;;  %v2352_v24 = vmul.f32 %v2345_v59, %v2338_v55  ;;  %v2353_v42 = vmul.f32 %v2349_v23, %v2336_v51  ;;  %v2417_v51 = vmul.f32 %v2410_v27, %v5587_v12  ;;  %v4521_v55 = vld [vmem:[%s6528_s8 + $0x14] sm:$0xf] }
 0x611   :  { %v2258_v11 = vpop.permute.xlu1 %2257 }
 0x612   :  { %v2471_v25 = vpop.permute.xlu0 %2470  ;;  %v2260_v4 = vsel %vm1487_vm4, %v2254_v44, %v2258_v11  ;;  %v2262_v40 = vsel %vm1487_vm4, %v2258_v11, %v2254_v44 }
 0x613   :  { %4494 = vmatmul.mubr.msk.bf16.vlgmr.msra.gmra.mxu1 %vm1388_vm5, %v4492_v57  ;;  %4511 = vmatmul.mubr.msk.bf16.vlgmr.msra.gmra.mxu0 %vm1388_vm5, %v2100_v10  ;;  %v2278_v1 = vmul.f32 %v2272_v37, %v2260_v4  ;;  %v2277_v0 = vmul.f32 %v2268_v48, %v2262_v40  ;;  %v2418_v10 = vmul.f32 %v2414_v39, %v5593_v14  ;;  %v4525_v4 = vld [vmem:[%s6525_s3 + $0xc] sm:$0x3]  ;;  %v4528_v39 = vld [vmem:[%s6525_s3 + $0xe] sm:$0x3] }
 0x614   :  { %1916 = vmatpush1.bf16.msra.mxu1 %v1896_v13  ;;  %1933 = vmatprep.mubr.bf16.mxu1 %v6574_v2  ;;  %v2564_v12 = vrot.slane %v4525_v4, %v5484_v34  ;;  %v2641_v52 = vrot.slane %v4528_v39, %v5484_v34 }
 0x615   :  { %2179 = vmatprep.subr.bf16.mxu1 %v2161_v26  ;;  %v2331_v38 = vpop.permute.xlu1 %2330  ;;  %2393 = vmatprep.mubr.bf16.mxu0 %v6574_v2  ;;  %v2280_v50 = vpack.c.bf16 %v2278_v1, %v2276_v6  ;;  %v2422_v13 = vpack.c.bf16 %v2420_v9, %v2418_v10  ;;  %v2279_v19 = vpack.c.bf16 %v2277_v0, %v2275_v21 }
 0x616   :  { %v2475_v46 = vpop.permute.xlu0 %2474 }
 0x617   :  { %v2478_v57 = vsel %vm1714_vm11, %v2471_v25, %v2475_v46  ;;  %v2480_v15 = vsel %vm1714_vm11, %v2475_v46, %v2471_v25 }
 0x618   :  { %v2494_v8 = vmul.f32 %v2487_v41, %v2478_v57  ;;  %v2495_v60 = vmul.f32 %v2491_v53, %v2480_v15 }
 0x619   :  { %v2335_v7 = vpop.permute.xlu1 %2334 }
 0x61a   :  { %v5988_v32 = vpop.permute.xlu0 %2547  ;;  %v2337_v33 = vsel %vm1567_vm9, %v2331_v38, %v2335_v7  ;;  %v2339_v43 = vsel %vm1567_vm9, %v2335_v7, %v2331_v38 }
 0x61b   :  { %v2354_v62 = vmul.f32 %v2345_v59, %v2339_v43  ;;  %v2355_v31 = vmul.f32 %v2349_v23, %v2337_v33  ;;  %4500 = vmatmul.mubr.msk.bf16.vlgmr.msra.gmra.mxu1 %vm1388_vm5, %v4498_v5  ;;  %v2419_v59 = vmul.f32 %v2410_v27, %v5603_v17  ;;  %v2568_v23 = vrot.slane %v4525_v4, %v5486_v36 }
 0x61c   :  { %2180 = vmatpush1.bf16.msra.mxu1 %v2160_v63  ;;  %2197 = vmatprep.mubr.bf16.mxu1 %v6574_v2 }
 0x61d   :  { %v2356_v61 = vpack.c.bf16 %v2354_v62, %v2352_v24  ;;  %2298 = vmatprep.subr.bf16.mxu1 %v2280_v50  ;;  %v2473_v44 = vpop.permute.xlu1 %2472  ;;  %v2357_v45 = vpack.c.bf16 %v2355_v31, %v2353_v42  ;;  %v2421_v5 = vpack.c.bf16 %v2419_v59, %v2417_v51  ;;  %v2645_v62 = vrot.slane %v4528_v39, %v5486_v36 }
 0x61e   :  { %v2552_v54 = vpop.permute.xlu0 %2551 }
 0x61f   :  { %2375 = vmatprep.subr.bf16.mxu0 %v2357_v45  ;;  %v2557_v46 = vsel %vm1794_vm6, %v2552_v54, %v5988_v32  ;;  %v2555_v24 = vsel %vm1794_vm6, %v5988_v32, %v2552_v54  ;;  %v4518_v32 = vld [vmem:[%s6528_s8 + $0x10] sm:$0xf] }
 0x620   :  { %2376 = vmatpush1.bf16.msra.mxu0 %v2356_v61  ;;  %v2572_v63 = vmul.f32 %v2568_v23, %v2557_v46  ;;  %v2571_v31 = vmul.f32 %v2564_v12, %v2555_v24 }
 0x621   :  { %v2477_v11 = vpop.permute.xlu1 %2476 }
 0x622   :  { %v2625_v58 = vpop.permute.xlu0 %2624  ;;  %v2479_v14 = vsel %vm1714_vm11, %v2473_v44, %v2477_v11  ;;  %v2481_v25 = vsel %vm1714_vm11, %v2477_v11, %v2473_v44 }
 0x623   :  { %v2496_v26 = vmul.f32 %v2487_v41, %v2479_v14  ;;  %v2497_v56 = vmul.f32 %v2491_v53, %v2481_v25  ;;  %4510 = vmatmul.mubr.msk.bf16.vlgmr.msra.gmra.mxu1 %vm1388_vm5, %v4508_v20  ;;  %4517 = vmatmul.mubr.msk.bf16.vlgmr.msra.gmra.mxu0 %vm1388_vm5, %v4515_v3  ;;  %v4531_v41 = vld [vmem:[%s6525_s3 + $0x10] sm:$0x3] }
 0x624   :  { %2299 = vmatpush1.bf16.msra.mxu1 %v2279_v19  ;;  %2316 = vmatprep.mubr.bf16.mxu1 %v6574_v2  ;;  %v2718_v20 = vrot.slane %v4531_v41, %v5484_v34  ;;  %v2722_v3 = vrot.slane %v4531_v41, %v5486_v36  ;;  %v4524_v19 = vld [vmem:[%s6528_s8 + $0x18] sm:$0xf] }
 0x625   :  { %v2498_v37 = vpack.c.bf16 %v2496_v26, %v2494_v8  ;;  %2440 = vmatprep.subr.bf16.mxu1 %v2422_v13  ;;  %v2550_v38 = vpop.permute.xlu1 %2549  ;;  %v2499_v47 = vpack.c.bf16 %v2497_v56, %v2495_v60  ;;  %2535 = vmatprep.mubr.bf16.mxu0 %v6574_v2  ;;  %v4527_v8 = vld [vmem:[%s6528_s8 + $0x1c] sm:$0xf] }
 0x626   :  { %v2629_v49 = vpop.permute.xlu0 %2628 }
 0x627   :  { %2517 = vmatprep.subr.bf16.mxu0 %v2499_v47  ;;  %v2632_v50 = vsel %vm1874_vm12, %v2625_v58, %v2629_v49  ;;  %v2634_v48 = vsel %vm1874_vm12, %v2629_v49, %v2625_v58 }
 0x628   :  { %2518 = vmatpush1.bf16.msra.mxu0 %v2498_v37  ;;  %v2648_v9 = vmul.f32 %v2641_v52, %v2632_v50  ;;  %v2649_v0 = vmul.f32 %v2645_v62, %v2634_v48 }
 0x629   :  { %v2554_v17 = vpop.permute.xlu1 %2553 }
 0x62a   :  { %v2558_v1 = vsel %vm1794_vm6, %v2554_v17, %v2550_v38  ;;  %v2556_v6 = vsel %vm1794_vm6, %v2550_v38, %v2554_v17  ;;  %v2702_v43 = vpop.permute.xlu0 %2701  ;;  %v4530_v38 = vld [vmem:[%s6528_s8 + $0x20] sm:$0xf] }
 0x62b   :  { %v2574_v7 = vmul.f32 %v2568_v23, %v2558_v1  ;;  %4514 = vmatmul.mubr.msk.bf16.vlgmr.msra.gmra.mxu1 %vm1388_vm5, %v4512_v30  ;;  %4523 = vmatmul.mubr.msk.bf16.vlgmr.msra.gmra.mxu0 %vm1388_vm5, %v4521_v55  ;;  %v2573_v40 = vmul.f32 %v2564_v12, %v2556_v6 }
 0x62c   :  { %2441 = vmatpush1.bf16.msra.mxu1 %v2421_v5  ;;  %2458 = vmatprep.mubr.bf16.mxu1 %v6574_v2 }
 0x62d   :  { %v2627_v42 = vpop.permute.xlu1 %2626  ;;  %v2576_v33 = vpack.c.bf16 %v2574_v7, %v2572_v63  ;;  %2689 = vmatprep.mubr.bf16.mxu0 %v6574_v2  ;;  %v2575_v61 = vpack.c.bf16 %v2573_v40, %v2571_v31 }
 0x62e   :  { %v2706_v57 = vpop.permute.xlu0 %2705 }
 0x62f   :  { %2594 = vmatprep.subr.bf16.mxu1 %v2576_v33  ;;  %v2709_v11 = vsel %vm1954_vm10, %v2702_v43, %v2706_v57  ;;  %v2711_v13 = vsel %vm1954_vm10, %v2706_v57, %v2702_v43 }
 0x630   :  { %v2725_v14 = vmul.f32 %v2718_v20, %v2709_v11  ;;  %v2726_v26 = vmul.f32 %v2722_v3, %v2711_v13 }
 0x631   :  { %v2631_v22 = vpop.permute.xlu1 %2630 }
 0x632   :  { %v2633_v44 = vsel %vm1874_vm12, %v2627_v42, %v2631_v22  ;;  %v2635_v45 = vsel %vm1874_vm12, %v2631_v22, %v2627_v42 }
 0x633   :  { %v2650_v54 = vmul.f32 %v2641_v52, %v2633_v44  ;;  %v2651_v53 = vmul.f32 %v2645_v62, %v2635_v45  ;;  %4520 = vmatmul.mubr.msk.bf16.vlgmr.msra.gmra.mxu1 %vm1388_vm5, %v4518_v32 }
 0x634   :  { %2595 = vmatpush1.bf16.msra.mxu1 %v2575_v61  ;;  %2612 = vmatprep.mubr.bf16.mxu1 %v6574_v2 }
 0x635   :  { %v2652_v10 = vpack.c.bf16 %v2650_v54, %v2648_v9  ;;  %v2704_v21 = vpop.permute.xlu1 %2703  ;;  %v2653_v15 = vpack.c.bf16 %v2651_v53, %v2649_v0 }
 0x637   :  { %2671 = vmatprep.subr.bf16.mxu0 %v2653_v15 }
 0x638   :  { %2672 = vmatpush1.bf16.msra.mxu0 %v2652_v10 }
 0x639   :  { %v2708_v58 = vpop.permute.xlu1 %2707 }
 0x63a   :  { %v2710_v25 = vsel %vm1954_vm10, %v2704_v21, %v2708_v58  ;;  %v2712_v60 = vsel %vm1954_vm10, %v2708_v58, %v2704_v21 }
 0x63b   :  { %v2727_v56 = vmul.f32 %v2718_v20, %v2710_v25  ;;  %v2728_v4 = vmul.f32 %v2722_v3, %v2712_v60  ;;  %4526 = vmatmul.mubr.msk.bf16.vlgmr.msra.gmra.mxu1 %vm1388_vm5, %v4524_v19  ;;  %4529 = vmatmul.mubr.msk.bf16.vlgmr.msra.gmra.mxu0 %vm1388_vm5, %v4527_v8  ;;  %v2028_v25 = vpop.permute.xlu0 %2027 }
 0x63c   :  { %2766 = vmatprep.mubr.bf16.mxu1 %v6574_v2  ;;  %2937 = vmatprep.mubr.bf16.mxu0 %v6574_v2 }
 0x63d   :  { %v2729_v27 = vpack.c.bf16 %v2727_v56, %v2725_v14  ;;  %v2730_v37 = vpack.c.bf16 %v2728_v4, %v2726_v26 }
 0x63f   :  { %2748 = vmatprep.subr.bf16.mxu1 %v2730_v37 }
 0x640   :  { %2749 = vmatpush1.bf16.msra.mxu1 %v2729_v27 }
 0x643   :  { %4532 = vmatmul.mubr.msk.bf16.vlgmr.msra.gmra.mxu1 %vm1388_vm5, %v4530_v38 }
 0x644   :  { %2987 = vmatprep.mubr.bf16.mxu1 %v6574_v2 }
 0x697   :  { %v1548_v47 = vpop.f32.mrf.mxu0 }
 0x699   :  { %v1550_v59 = vpop.f32.mrf.mxu0 }
 0x69b   :  { %v1552_v23 = vpop.f32.mrf.mxu0 }
 0x69c   :  { %v2036_v23 = vpop.permute.xlu0 %2035 }
 0x69d   :  { %v1553_v46 = vpop.f32.mrf.mxu0 }
 0x69f   :  { %v1695_v49 = vpop.f32.mrf.mxu0 }
 0x6a1   :  { %v1697_v30 = vpop.f32.mrf.mxu0 }
 0x6a3   :  { %v1699_v51 = vpop.f32.mrf.mxu0 }
 0x6a5   :  { %v1700_v55 = vpop.f32.mrf.mxu0 }
 0x6af   :  { %v1855_v17 = vpop.f32.mrf.mxu0 }
 0x6b1   :  { %v1857_v1 = vpop.f32.mrf.mxu0 }
 0x6b3   :  { %v1859_v5 = vpop.f32.mrf.mxu0 }
 0x6b5   :  { %v1860_v63 = vpop.f32.mrf.mxu0 }
 0x6bb   :  { %v1426_v6 = vpop.f32.mrf.mxu1 }
 0x6bd   :  { %v1428_v7 = vpop.f32.mrf.mxu1 }
 0x6bf   :  { %v1430_v12 = vpop.f32.mrf.mxu1 }
 0x6c1   :  { %v1431_v39 = vpop.f32.mrf.mxu1 }
 0x6c3   :  { %v1470_v24 = vpop.f32.mrf.mxu1  ;;  %v2015_v42 = vpop.f32.mrf.mxu0 }
 0x6c4   :  { %v1471_v50 = vadd.f32 %v1470_v24, %v1426_v6 }
 0x6c5   :  { %v1472_v33 = vpop.f32.mrf.mxu1  ;;  %v2017_v43 = vpop.f32.mrf.mxu0 }
 0x6c6   :  { %v1473_v32 = vadd.f32 %v1472_v33, %v1428_v7  ;;  %v1555_v61 = vadd.f32 %v1548_v47, %v1471_v50 }
 0x6c7   :  { %v1474_v40 = vpop.f32.mrf.mxu1  ;;  %v2019_v52 = vpop.f32.mrf.mxu0 }
 0x6c8   :  { %v1556_v45 = vadd.f32 %v1550_v59, %v1473_v32 }
 0x6c9   :  { %v1475_v62 = vpop.f32.mrf.mxu1  ;;  %v2020_v31 = vpop.f32.mrf.mxu0 }
 0x6cb   :  { %v1628_v48 = vpop.f32.mrf.mxu1 }
 0x6cc   :  { %v1635_v9 = vadd.f32 %v1628_v48, %v1555_v61 }
 0x6cd   :  { %v1630_v22 = vpop.f32.mrf.mxu1 }
 0x6ce   :  { %v1636_v41 = vadd.f32 %v1630_v22, %v1556_v45  ;;  %v1702_v57 = vadd.f32 %v1695_v49, %v1635_v9 }
 0x6cf   :  { %v1632_v44 = vpop.f32.mrf.mxu1 }
 0x6d0   :  { %v1703_v15 = vadd.f32 %v1697_v30, %v1636_v41 }
 0x6d1   :  { %v1633_v0 = vpop.f32.mrf.mxu1 }
 0x6d3   :  { %v1775_v54 = vpop.f32.mrf.mxu1  ;;  %v2243_v53 = vpop.f32.mrf.mxu0 }
 0x6d4   :  { %v1782_v20 = vadd.f32 %v1775_v54, %v1702_v57 }
 0x6d5   :  { %v1777_v10 = vpop.f32.mrf.mxu1  ;;  %v2245_v21 = vpop.f32.mrf.mxu0 }
 0x6d6   :  { %v1783_v13 = vadd.f32 %v1777_v10, %v1703_v15  ;;  %v1862_v58 = vadd.f32 %v1855_v17, %v1782_v20 }
 0x6d7   :  { %v1779_v3 = vpop.f32.mrf.mxu1  ;;  %v2247_v11 = vpop.f32.mrf.mxu0 }
 0x6d8   :  { %v1863_v60 = vadd.f32 %v1857_v1, %v1783_v13 }
 0x6d9   :  { %v1780_v19 = vpop.f32.mrf.mxu1  ;;  %v2248_v8 = vpop.f32.mrf.mxu0 }
 0x6db   :  { %v1935_v14 = vpop.f32.mrf.mxu1 }
 0x6dc   :  { %v1942_v26 = vadd.f32 %v1935_v14, %v1862_v58 }
 0x6dd   :  { %v1937_v56 = vpop.f32.mrf.mxu1 }
 0x6de   :  { %v2022_v4 = vadd.f32 %v2015_v42, %v1942_v26  ;;  %v1943_v27 = vadd.f32 %v1937_v56, %v1863_v60 }
 0x6df   :  { %v1939_v37 = vpop.f32.mrf.mxu1 }
 0x6e0   :  { %v2030_v38 = vadd.f32 %v2028_v25, %v2022_v4  ;;  %v2023_v47 = vadd.f32 %v2017_v43, %v1943_v27 }
 0x6e1   :  { %v1940_v59 = vpop.f32.mrf.mxu1 }
 0x6e2   :  { %v2031_v46 = vadd.f32 %v2028_v25, %v2023_v47  ;;  %v6102_v51 = vadd.f32 %v2036_v23, %v2030_v38 }
 0x6e3   :  { %v2199_v49 = vpop.f32.mrf.mxu1  ;;  %v2395_v30 = vpop.f32.mrf.mxu0 }
 0x6e4   :  { %v6104_v55 = vadd.f32 %v2036_v23, %v2031_v46  ;;  %v2046_v12 = vmul.f32 %v6102_v51, %v6102_v51  ;;  %v2244_v50 = vadd.f32 %v2243_v53, %v2199_v49 }
 0x6e5   :  { %v2201_v17 = vpop.f32.mrf.mxu1  ;;  %v2397_v5 = vpop.f32.mrf.mxu0 }
 0x6e6   :  { %v2042_v1 = vadd.f32 %v6104_v55, %v6102_v51  ;;  %v2047_v63 = vmul.f32 %v6104_v55, %v6104_v55  ;;  %v2246_v22 = vadd.f32 %v2245_v21, %v2201_v17  ;;  %v2781_v21 = vpop.permute.xlu1 %2780 }
 0x6e7   :  { %v2203_v6 = vpop.f32.mrf.mxu1  ;;  %v2399_v7 = vpop.f32.mrf.mxu0 }
 0x6e8   :  { %2043 = vadd.xlane.f32.xlu0 %v2042_v1  ;;  %v2048_v42 = vadd.f32 %v2047_v63, %v2046_v12 }
 0x6e9   :  { %v2204_v39 = vpop.f32.mrf.mxu1  ;;  %v2400_v24 = vpop.f32.mrf.mxu0 }
 0x6ea   :  { %v2790_v23 = vpop.permute.xlu1 %2789 }
 0x6eb   :  { %v2318_v33 = vpop.f32.mrf.mxu1  ;;  %v2537_v43 = vpop.f32.mrf.mxu0 }
 0x6ec   :  { %2049 = vadd.xlane.f32.xlu0 %v2048_v42  ;;  %v2325_v61 = vadd.f32 %v2318_v33, %v2244_v50 }
 0x6ed   :  { %v2320_v40 = vpop.f32.mrf.mxu1  ;;  %v2539_v52 = vpop.f32.mrf.mxu0 }
 0x6ee   :  { %v2326_v45 = vadd.f32 %v2320_v40, %v2246_v22  ;;  %v2402_v0 = vadd.f32 %v2395_v30, %v2325_v61 }
 0x6ef   :  { %v2322_v62 = vpop.f32.mrf.mxu1  ;;  %v2541_v31 = vpop.f32.mrf.mxu0 }
 0x6f0   :  { %v2403_v54 = vadd.f32 %v2397_v5, %v2326_v45 }
 0x6f1   :  { %v2323_v48 = vpop.f32.mrf.mxu1  ;;  %v2542_v32 = vpop.f32.mrf.mxu0 }
 0x6f2   :  { %v2807_v32 = vld [vmem:[%s6529_s11] sm:$0xff] }
 0x6f3   :  { %v2460_v44 = vpop.f32.mrf.mxu1 }
 0x6f4   :  { %v2467_v57 = vadd.f32 %v2460_v44, %v2402_v0  ;;  %v2808_v44 = vld [vmem:[%s6530_s12] sm:$0xff] }
 0x6f5   :  { %v2462_v9 = vpop.f32.mrf.mxu1 }
 0x6f6   :  { %v2468_v15 = vadd.f32 %v2462_v9, %v2403_v54  ;;  %v2544_v11 = vadd.f32 %v2537_v43, %v2467_v57 }
 0x6f7   :  { %v2464_v41 = vpop.f32.mrf.mxu1 }
 0x6f8   :  { %v2545_v8 = vadd.f32 %v2539_v52, %v2468_v15 }
 0x6f9   :  { %v2465_v10 = vpop.f32.mrf.mxu1 }
 0x6fb   :  { %v2614_v20 = vpop.f32.mrf.mxu1  ;;  %v2691_v3 = vpop.f32.mrf.mxu0 }
 0x6fc   :  { %v2621_v53 = vadd.f32 %v2614_v20, %v2544_v11 }
 0x6fd   :  { %v2616_v13 = vpop.f32.mrf.mxu1  ;;  %v2693_v19 = vpop.f32.mrf.mxu0 }
 0x6fe   :  { %v2622_v25 = vadd.f32 %v2616_v13, %v2545_v8  ;;  %v2698_v56 = vadd.f32 %v2691_v3, %v2621_v53 }
 0x6ff   :  { %v2618_v58 = vpop.f32.mrf.mxu1  ;;  %v2695_v14 = vpop.f32.mrf.mxu0 }
 0x700   :  { %v2699_v27 = vadd.f32 %v2693_v19, %v2622_v25 }
 0x701   :  { %v2619_v60 = vpop.f32.mrf.mxu1  ;;  %v2696_v26 = vpop.f32.mrf.mxu0 }
 0x703   :  { %v2768_v4 = vpop.f32.mrf.mxu1 }
 0x704   :  { %v2775_v37 = vadd.f32 %v2768_v4, %v2698_v56 }
 0x705   :  { %v2770_v38 = vpop.f32.mrf.mxu1 }
 0x706   :  { %v2783_v47 = vadd.f32 %v2781_v21, %v2775_v37  ;;  %v2776_v59 = vadd.f32 %v2770_v38, %v2699_v27 }
 0x707   :  { %v2772_v46 = vpop.f32.mrf.mxu1 }
 0x708   :  { %v2792_v49 = vadd.f32 %v2790_v23, %v2783_v47  ;;  %v2784_v30 = vadd.f32 %v2781_v21, %v2776_v59 }
 0x709   :  { %v2773_v17 = vpop.f32.mrf.mxu1 }
 0x70a   :  { %v2793_v5 = vadd.f32 %v2790_v23, %v2784_v30  ;;  %v2801_v63 = vmul.f32 %v2792_v49, %v2792_v49  ;;  %v3583_v30 = vld [vmem:[%s6532_s16] sm:$0xff] }
 0x70b   :  { %v4537_v17 = vld [vmem:[%s6525_s3 + $0x2] sm:$0x3] }
 0x70c   :  { %v2797_v1 = vadd.f32 %v2793_v5, %v2792_v49  ;;  %v2802_v6 = vmul.f32 %v2793_v5, %v2793_v5 }
 0x70e   :  { %2798 = vadd.xlane.f32.xlu1 %v2797_v1  ;;  %v2803_v7 = vadd.f32 %v2802_v6, %v2801_v63  ;;  %v2885_v63 = vrot.slane %v4537_v17, %v5484_v34  ;;  %v2889_v6 = vrot.slane %v4537_v17, %v5486_v36 }
 0x710   :  { %2804 = vadd.xlane.f32.xlu0 %v2803_v7  ;;  %v2856_v7 = vld [vmem:[%s6525_s3] sm:$0x3] }
 0x771   :  { %v2044_v12 = vpop.xlane.xlu0 %2043 }
 0x775   :  { %v2050_v39 = vpop.xlane.xlu0 %2049 }
 0x797   :  { %v2799_v24 = vpop.xlane.xlu1 %2798 }
 0x798   :  { %v2800_v42 = vadd.f32 %v2799_v24, %v2044_v12 }
 0x799   :  { %v2805_v33 = vpop.xlane.xlu0 %2804 }
 0x79a   :  { %v2809_v43 = vmul.f32 0.001953125, %v2800_v42  ;;  %v2806_v40 = vadd.f32 %v2805_v33, %v2050_v39  ;;  %v4551_v33 = vld [vmem:[%s6525_s3 + $0x8] sm:$0x3] }
 0x79c   :  { %v2811_v52 = vmul.f32 %v2809_v43, %v2809_v43  ;;  %v2810_v62 = vmul.f32 0.001953125, %v2806_v40 }
 0x79e   :  { %v2812_v31 = vsub.f32 %v2810_v62, %v2811_v52  ;;  %v2861_v52 = vrot.slane %v2856_v7, %v5484_v34  ;;  %v2865_v62 = vrot.slane %v2856_v7, %v5486_v36  ;;  %v4559_v7 = vld [vmem:[%s6525_s3 + $0xc] sm:$0x3] }
 0x7a0   :  { %v2813_v50 = vmax.f32 %v2812_v31, 0.0  ;;  %v4543_v31 = vld [vmem:[%s6525_s3 + $0x4] sm:$0x3] }
 0x7a2   :  { %v2814_v48 = vadd.f32 1e-05, %v2813_v50 }
 0x7a4   :  { %4723 = vrsqrt.f32 %v2814_v48 }
 0x7b1   :  { %v4724_v22 = vpop.eup %4723 }
 0x7b2   :  { %v2816_v61 = vmul.f32 %v4724_v22, %v2807_v32 }
 0x7b4   :  { %2823 = vperm.xlu1 %4686, %v2816_v61   ;;  %v2817_v45 = vmul.f32 %v2816_v61, %v2809_v43  ;;  %v3155_v61 = vrot.slane %v4551_v33, %v5484_v34 }
 0x7b6   :  { %v2818_v9 = vsub.f32 %v2808_v44, %v2817_v45 }
 0x7b8   :  { %2830 = vperm.xlu0 %4685, %v2818_v9   ;;  %v3009_v9 = vrot.slane %v4543_v31, %v5484_v34 }
 0x82f   :  { %v2824_v0 = vpop.permute.xlu1 %2823 }
 0x830   :  { %v2826_v41 = vmul.f32 %v2824_v0, %v6102_v51  ;;  %v2827_v54 = vmul.f32 %v2824_v0, %v6104_v55  ;;  %v3595_v11 = vmul.f32 %v2824_v0, %v2792_v49  ;;  %v3596_v21 = vmul.f32 %v2824_v0, %v2793_v5  ;;  %v3573_v49 = vld [vmem:[%s6531_s14] sm:$0xff] }
 0x831   :  { %v3159_v0 = vrot.slane %v4551_v33, %v5486_v36 }
 0x833   :  { %v2831_v57 = vpop.permute.xlu0 %2830 }
 0x834   :  { %v2833_v10 = vadd.f32 %v2831_v57, %v2826_v41  ;;  %v2834_v15 = vadd.f32 %v2831_v57, %v2827_v54  ;;  %v3597_v53 = vadd.f32 %v3595_v11, %v2831_v57  ;;  %v3598_v51 = vadd.f32 %v3596_v21, %v2831_v57 }
 0x836   :  { %v4534_v20 = vmul.f32 -1.442695, %v2833_v10  ;;  %v4535_v3 = vmul.f32 -1.442695, %v2834_v15  ;;  %v4571_v14 = vmul.f32 -1.442695, %v3597_v53 }
 0x837   :  { %v4572_v55 = vmul.f32 -1.442695, %v3598_v51 }
 0x838   :  { %4725 = vpow2.f32 %v4534_v20  ;;  %v4536_v20 = vld [vmem:[%s6533_s13 + $0x4] sm:$0xf] }
 0x839   :  { %4727 = vpow2.f32 %v4535_v3 }
 0x845   :  { %v4726_v13 = vpop.eup %4725 }
 0x846   :  { %v4728_v19 = vpop.eup %4727  ;;  %v2841_v8 = vadd.f32 1.0, %v4726_v13 }
 0x847   :  { %v2842_v58 = vadd.f32 1.0, %v4728_v19 }
 0x848   :  { %4729 = vrcp.f32 %v2841_v8 }
 0x849   :  { %4731 = vrcp.f32 %v2842_v58 }
 0x84a   :  { %4733 = vpow2.f32 %v4571_v14 }
 0x84b   :  { %4735 = vpow2.f32 %v4572_v55 }
 0x855   :  { %v4730_v25 = vpop.eup %4729 }
 0x856   :  { %v6120_v60 = vmul.f32 %v4730_v25, %v2833_v10  ;;  %v4732_v26 = vpop.eup %4731  ;;  %v3013_v10 = vrot.slane %v4543_v31, %v5486_v36 }
 0x857   :  { %v6126_v56 = vmul.f32 %v4732_v26, %v2834_v15  ;;  %v4734_v4 = vpop.eup %4733  ;;  %v4547_v15 = vld [vmem:[%s6525_s3 + $0x6] sm:$0x3]  ;;  %v4555_v26 = vld [vmem:[%s6525_s3 + $0xa] sm:$0x3] }
 0x858   :  { %2850 = vrot.lane.b32.xlu0 %v6120_v60, %s4749_s0  ;;  %2874 = vrot.lane.b32.xlu1 %v6120_v60, %s4748_s28  ;;  %v3605_v27 = vadd.f32 1.0, %v4734_v4  ;;  %v4736_v37 = vpop.eup %4735  ;;  %v3162_v8 = vmul.f32 %v3155_v61, %v6120_v60  ;;  %v3085_v14 = vrot.slane %v4547_v15, %v5484_v34  ;;  %v2849_v4 = vld [vmem:[%s6533_s13] sm:$0xf]  ;;  %v3231_v17 = vrot.slane %v4555_v26, %v5484_v34  ;;  %v4546_v61 = vld [vmem:[%s6533_s13 + $0xc] sm:$0xf] }
 0x859   :  { %v3606_v38 = vadd.f32 1.0, %v4736_v37  ;;  %v3163_v21 = vmul.f32 %v3159_v0, %v6126_v56 }
 0x85a   :  { %4737 = vrcp.f32 %v3605_v27 }
 0x85b   :  { %4739 = vrcp.f32 %v3606_v38 }
 0x85c   :  { %2998 = vrot.lane.b32.xlu0 %v6120_v60, %s4750_s30  ;;  %2876 = vrot.lane.b32.xlu1 %v6126_v56, %s4748_s28 }
 0x860   :  { %3074 = vrot.lane.b32.xlu0 %v6120_v60, %s4751_s18  ;;  %2852 = vrot.lane.b32.xlu1 %v6126_v56, %s4749_s0 }
 0x864   :  { %3220 = vrot.lane.b32.xlu0 %v6120_v60, %s4752_s19  ;;  %3000 = vrot.lane.b32.xlu1 %v6126_v56, %s4750_s30 }
 0x867   :  { %v4738_v47 = vpop.eup %4737 }
 0x868   :  { %3296 = vrot.lane.b32.xlu0 %v6120_v60, %s4753_s2  ;;  %3076 = vrot.lane.b32.xlu1 %v6126_v56, %s4751_s18  ;;  %v6152_v59 = vmul.f32 %v4738_v47, %v3597_v53  ;;  %v4740_v23 = vpop.eup %4739  ;;  %v3164_v47 = vpack.c.bf16 %v3162_v8, %v3162_v8 }
 0x869   :  { %v6162_v46 = vmul.f32 %v4740_v23, %v3598_v51 }
 0x86c   :  { %3372 = vrot.lane.b32.xlu0 %v6120_v60, %s4754_s20  ;;  %3222 = vrot.lane.b32.xlu1 %v6126_v56, %s4752_s19 }
 0x870   :  { %3448 = vrot.lane.b32.xlu0 %v6120_v60, %s4755_s21  ;;  %3298 = vrot.lane.b32.xlu1 %v6126_v56, %s4753_s2  ;;  %v3089_v60 = vrot.slane %v4547_v15, %v5486_v36 }
 0x874   :  { %3374 = vrot.lane.b32.xlu1 %v6126_v56, %s4754_s20  ;;  %3637 = vrot.lane.b32.xlu0 %v6152_v59, %s4748_s28 }
 0x878   :  { %3450 = vrot.lane.b32.xlu1 %v6126_v56, %s4755_s21  ;;  %3614 = vrot.lane.b32.xlu0 %v6152_v59, %s4749_s0 }
 0x87c   :  { %3639 = vrot.lane.b32.xlu1 %v6162_v46, %s4748_s28  ;;  %3760 = vrot.lane.b32.xlu0 %v6152_v59, %s4750_s30 }
 0x880   :  { %3616 = vrot.lane.b32.xlu1 %v6162_v46, %s4749_s0  ;;  %3835 = vrot.lane.b32.xlu0 %v6152_v59, %s4751_s18 }
 0x884   :  { %3762 = vrot.lane.b32.xlu1 %v6162_v46, %s4750_s30  ;;  %3979 = vrot.lane.b32.xlu0 %v6152_v59, %s4752_s19 }
 0x888   :  { %3837 = vrot.lane.b32.xlu1 %v6162_v46, %s4751_s18  ;;  %4054 = vrot.lane.b32.xlu0 %v6152_v59, %s4753_s2 }
 0x88c   :  { %3981 = vrot.lane.b32.xlu1 %v6162_v46, %s4752_s19  ;;  %4129 = vrot.lane.b32.xlu0 %v6152_v59, %s4754_s20 }
 0x890   :  { %4056 = vrot.lane.b32.xlu1 %v6162_v46, %s4753_s2  ;;  %4204 = vrot.lane.b32.xlu0 %v6152_v59, %s4755_s21 }
 0x894   :  { %4131 = vrot.lane.b32.xlu1 %v6162_v46, %s4754_s20  ;;  %3576 = vperm.xlu0 %4685, %v3573_v49  }
 0x898   :  { %4206 = vrot.lane.b32.xlu1 %v6162_v46, %s4755_s21  ;;  %3586 = vperm.xlu0 %4685, %v3583_v30  }
 0x89c   :  { %4332 = vperm.xlu1 %4686, %v3573_v49  }
 0x8a0   :  { %4342 = vperm.xlu1 %4686, %v3583_v30   ;;  %v3165_v30 = vpack.c.bf16 %v3163_v21, %v3163_v21 }
 0x8ca   :  { %v2851_v5 = vpop.permute.xlu0 %2850  ;;  %v2875_v1 = vpop.permute.xlu1 %2874 }
 0x8ce   :  { %v2999_v12 = vpop.permute.xlu0 %2998  ;;  %v2877_v39 = vpop.permute.xlu1 %2876 }
 0x8cf   :  { %v2878_v24 = vsel %vm1364_vm7, %v2875_v1, %v2877_v39  ;;  %v2879_v42 = vsel %vm1364_vm7, %v2877_v39, %v2875_v1 }
 0x8d0   :  { %v2892_v43 = vmul.f32 %v2885_v63, %v2879_v42  ;;  %v2893_v40 = vmul.f32 %v2889_v6, %v2878_v24  ;;  %v3235_v6 = vrot.slane %v4555_v26, %v5486_v36 }
 0x8d2   :  { %v2894_v50 = vpack.c.bf16 %v2892_v43, %v2892_v43  ;;  %v2895_v48 = vpack.c.bf16 %v2893_v40, %v2893_v40  ;;  %v3075_v32 = vpop.permute.xlu0 %3074  ;;  %v2853_v22 = vpop.permute.xlu1 %2852 }
 0x8d3   :  { %v2854_v44 = vsel %vm1331_vm8, %v2851_v5, %v2853_v22  ;;  %v2855_v45 = vsel %vm1331_vm8, %v2853_v22, %v2851_v5  ;;  %v4563_v22 = vld [vmem:[%s6525_s3 + $0xe] sm:$0x3] }
 0x8d4   :  { %v2868_v41 = vmul.f32 %v2861_v52, %v2855_v45  ;;  %v2869_v54 = vmul.f32 %v2865_v62, %v2854_v44  ;;  %4538 = vmatprep.subr.msk.bf16.mxu0 %vm64_vm0, %v2895_v48  ;;  %v2900_v57 = vsel %vm64_vm0, %v2894_v50, 0  ;;  %v3170_v52 = vsel %vm64_vm0, %v3164_v47, 0 }
 0x8d5   :  { %2920 = vmatpush1.bf16.msra.mxu0 %v2900_v57  ;;  %v3307_v62 = vrot.slane %v4559_v7, %v5484_v34  ;;  %v3383_v57 = vrot.slane %v4563_v22, %v5484_v34 }
 0x8d6   :  { %v2870_v3 = vpack.c.bf16 %v2868_v41, %v2868_v41  ;;  %v2871_v11 = vpack.c.bf16 %v2869_v54, %v2869_v54  ;;  %v3221_v13 = vpop.permute.xlu0 %3220  ;;  %v3001_v19 = vpop.permute.xlu1 %3000 }
 0x8d7   :  { %v3002_v53 = vsel %vm1487_vm4, %v2999_v12, %v3001_v19  ;;  %v3003_v58 = vsel %vm1487_vm4, %v3001_v19, %v2999_v12  ;;  %v4542_v12 = vld [vmem:[%s6533_s13 + $0x8] sm:$0xf] }
 0x8d8   :  { %v3016_v51 = vmul.f32 %v3009_v9, %v3003_v58  ;;  %v3017_v55 = vmul.f32 %v3013_v10, %v3002_v53  ;;  %4539 = vmatmul.mubr.msk.bf16.vlgmr.msra.gmra.mxu0 %vm60_vm2, %v4536_v20  ;;  %4540 = vmatprep.subr.msk.bf16.mxu1 %vm64_vm0, %v2871_v11  ;;  %v2950_v25 = vsel %vm64_vm0, %v2870_v3, 0  ;;  %v3387_v3 = vrot.slane %v4563_v22, %v5486_v36  ;;  %v4567_v11 = vld [vmem:[%s6525_s3 + $0x10] sm:$0x3]  ;;  %v4562_v22 = vld [vmem:[%s6533_s13 + $0x1c] sm:$0xf] }
 0x8d9   :  { %2970 = vmatpush1.bf16.msra.mxu1 %v2950_v25  ;;  %3061 = vmatprep.mubr.bf16.mxu0 %v6574_v2  ;;  %v3463_v26 = vrot.slane %v4567_v11, %v5486_v36 }
 0x8da   :  { %v3018_v56 = vpack.c.bf16 %v3016_v51, %v3016_v51  ;;  %v3019_v27 = vpack.c.bf16 %v3017_v55, %v3017_v55  ;;  %v3297_v37 = vpop.permute.xlu0 %3296  ;;  %v3077_v38 = vpop.permute.xlu1 %3076  ;;  %v3459_v51 = vrot.slane %v4567_v11, %v5484_v34 }
 0x8db   :  { %v3078_v23 = vsel %vm1567_vm9, %v3075_v32, %v3077_v38  ;;  %v3079_v49 = vsel %vm1567_vm9, %v3077_v38, %v3075_v32  ;;  %v3311_v32 = vrot.slane %v4559_v7, %v5486_v36 }
 0x8dc   :  { %v3092_v5 = vmul.f32 %v3085_v14, %v3079_v49  ;;  %v3093_v1 = vmul.f32 %v3089_v60, %v3078_v23  ;;  %4541 = vmatmul.mubr.msk.bf16.vlgmr.msra.gmra.mxu1 %vm60_vm2, %v2849_v4  ;;  %4544 = vmatprep.subr.msk.bf16.mxu0 %vm64_vm0, %v3019_v27  ;;  %v3024_v63 = vsel %vm64_vm0, %v3018_v56, 0  ;;  %v4574_v4 = vld [vmem:[%s6525_s3 + $0x2] sm:$0x3]  ;;  %v4554_v56 = vld [vmem:[%s6533_s13 + $0x14] sm:$0xf] }
 0x8dd   :  { %3044 = vmatpush1.bf16.msra.mxu0 %v3024_v63  ;;  %3137 = vmatprep.mubr.bf16.mxu1 %v6574_v2  ;;  %v3652_v7 = vrot.slane %v4574_v4, %v5486_v36 }
 0x8de   :  { %v3094_v39 = vpack.c.bf16 %v3092_v5, %v3092_v5  ;;  %v3095_v24 = vpack.c.bf16 %v3093_v1, %v3093_v1  ;;  %v3373_v42 = vpop.permute.xlu0 %3372  ;;  %4552 = vmatprep.subr.msk.bf16.mxu0 %vm64_vm0, %v3165_v30  ;;  %v3223_v33 = vpop.permute.xlu1 %3222  ;;  %v4741_v30 = vld [vmem:[%s6522_s1 + $0x8] sm:$0xff]  ;;  %v3648_v5 = vrot.slane %v4574_v4, %v5484_v34 }
 0x8df   :  { %v3224_v43 = vsel %vm1714_vm11, %v3221_v13, %v3223_v33  ;;  %v3225_v40 = vsel %vm1714_vm11, %v3223_v33, %v3221_v13  ;;  %v4550_v13 = vld [vmem:[%s6533_s13 + $0x10] sm:$0xf] }
 0x8e0   :  { %v3238_v31 = vmul.f32 %v3231_v17, %v3224_v43  ;;  %v3239_v50 = vmul.f32 %v3235_v6, %v3225_v40  ;;  %4545 = vmatmul.mubr.msk.bf16.vlgmr.msra.gmra.mxu0 %vm60_vm2, %v4542_v12  ;;  %4548 = vmatprep.subr.msk.bf16.mxu1 %vm64_vm0, %v3095_v24  ;;  %v3100_v48 = vsel %vm64_vm0, %v3094_v39, 0  ;;  %v3528_v17 = vpack.c.bf16 %v4741_v30, %v5368_v29  ;;  %v3620_v12 = vld [vmem:[%s6525_s3] sm:$0x3]  ;;  %v4558_v29 = vld [vmem:[%s6533_s13 + $0x18] sm:$0xf] }
 0x8e1   :  { %3120 = vmatpush1.bf16.msra.mxu1 %v3100_v48  ;;  %3190 = vmatpush1.bf16.msra.mxu0 %v3170_v52  ;;  %v3625_v52 = vrot.slane %v3620_v12, %v5484_v34  ;;  %v3629_v48 = vrot.slane %v3620_v12, %v5486_v36  ;;  %v4596_v12 = vld [vmem:[%s6525_s3 + $0xc] sm:$0x3] }
 0x8e2   :  { %v3240_v44 = vpack.c.bf16 %v3238_v31, %v3238_v31  ;;  %v3241_v45 = vpack.c.bf16 %v3239_v50, %v3239_v50  ;;  %v3449_v9 = vpop.permute.xlu0 %3448  ;;  %v3299_v0 = vpop.permute.xlu1 %3298  ;;  %3207 = vmatprep.mubr.bf16.mxu0 %v6574_v2 }
 0x8e3   :  { %v3300_v41 = vsel %vm1794_vm6, %v3297_v37, %v3299_v0  ;;  %v3301_v54 = vsel %vm1794_vm6, %v3299_v0, %v3297_v37 }
 0x8e4   :  { %v3314_v10 = vmul.f32 %v3307_v62, %v3300_v41  ;;  %v3315_v15 = vmul.f32 %v3311_v32, %v3301_v54  ;;  %4549 = vmatmul.mubr.msk.bf16.vlgmr.msra.gmra.mxu1 %vm60_vm2, %v4546_v61  ;;  %4556 = vmatprep.subr.msk.bf16.mxu1 %vm64_vm0, %v3241_v45  ;;  %v3246_v20 = vsel %vm64_vm0, %v3240_v44, 0  ;;  %v4580_v32 = vld [vmem:[%s6525_s3 + $0x4] sm:$0x3] }
 0x8e5   :  { %3266 = vmatpush1.bf16.msra.mxu1 %v3246_v20  ;;  %3283 = vmatprep.mubr.bf16.mxu1 %v6574_v2 }
 0x8e6   :  { %v3316_v19 = vpack.c.bf16 %v3314_v10, %v3314_v10  ;;  %v3317_v8 = vpack.c.bf16 %v3315_v15, %v3315_v15  ;;  %v3375_v53 = vpop.permute.xlu1 %3374  ;;  %v3638_v58 = vpop.permute.xlu0 %3637  ;;  %v3775_v10 = vrot.slane %v4580_v32, %v5486_v36  ;;  %v4588_v15 = vld [vmem:[%s6525_s3 + $0x8] sm:$0x3] }
 0x8e7   :  { %v3376_v14 = vsel %vm1874_vm12, %v3373_v42, %v3375_v53  ;;  %v3377_v21 = vsel %vm1874_vm12, %v3375_v53, %v3373_v42  ;;  %v3919_v53 = vrot.slane %v4588_v15, %v5486_v36 }
 0x8e8   :  { %v3390_v55 = vmul.f32 %v3383_v57, %v3376_v14  ;;  %v3391_v25 = vmul.f32 %v3387_v3, %v3377_v21  ;;  %4553 = vmatmul.mubr.msk.bf16.vlgmr.msra.gmra.mxu0 %vm60_vm2, %v4550_v13  ;;  %4560 = vmatprep.subr.msk.bf16.mxu0 %vm64_vm0, %v3317_v8  ;;  %v3322_v60 = vsel %vm64_vm0, %v3316_v19, 0  ;;  %v3771_v57 = vrot.slane %v4580_v32, %v5484_v34  ;;  %v4566_v13 = vld [vmem:[%s6533_s13 + $0x20] sm:$0xf] }
 0x8e9   :  { %3342 = vmatpush1.bf16.msra.mxu0 %v3322_v60  ;;  %3359 = vmatprep.mubr.bf16.mxu0 %v6574_v2 }
 0x8ea   :  { %v3392_v27 = vpack.c.bf16 %v3390_v55, %v3390_v55  ;;  %v3393_v37 = vpack.c.bf16 %v3391_v25, %v3391_v25  ;;  %v3451_v38 = vpop.permute.xlu1 %3450  ;;  %v3615_v47 = vpop.permute.xlu0 %3614 }
 0x8eb   :  { %v3452_v23 = vsel %vm1954_vm10, %v3449_v9, %v3451_v38  ;;  %v3453_v49 = vsel %vm1954_vm10, %v3451_v38, %v3449_v9  ;;  %v4742_v9 = vld [vmem:[%s6522_s1] sm:$0xff] }
 0x8ec   :  { %v3466_v1 = vmul.f32 %v3459_v51, %v3452_v23  ;;  %v3467_v63 = vmul.f32 %v3463_v26, %v3453_v49  ;;  %4557 = vmatmul.mubr.msk.bf16.vlgmr.msra.gmra.mxu1 %vm60_vm2, %v4554_v56  ;;  %4564 = vmatprep.subr.msk.bf16.mxu1 %vm64_vm0, %v3393_v37  ;;  %v3398_v6 = vsel %vm64_vm0, %v3392_v27, 0  ;;  %v3527_v0 = vpack.c.bf16 %v4742_v9, %v5366_v28  ;;  %v4584_v28 = vld [vmem:[%s6525_s3 + $0x6] sm:$0x3]  ;;  %v4592_v56 = vld [vmem:[%s6525_s3 + $0xa] sm:$0x3] }
 0x8ed   :  { %3418 = vmatpush1.bf16.msra.mxu1 %v3398_v6  ;;  %3435 = vmatprep.mubr.bf16.mxu1 %v6574_v2  ;;  %v3846_v21 = vrot.slane %v4584_v28, %v5484_v34  ;;  %v3850_v51 = vrot.slane %v4584_v28, %v5486_v36  ;;  %v3522_v27 = vld [vmem:[%s6534_s15] sm:$0xf]  ;;  %v3994_v30 = vrot.slane %v4592_v56, %v5486_v36 }
 0x8ee   :  { %v3468_v39 = vpack.c.bf16 %v3466_v1, %v3466_v1  ;;  %v3469_v24 = vpack.c.bf16 %v3467_v63, %v3467_v63  ;;  %3546 = vmatprep.subr.bf16.mxu1 %v3528_v17  ;;  %v3640_v42 = vpop.permute.xlu1 %3639  ;;  %v3761_v33 = vpop.permute.xlu0 %3760  ;;  %v3923_v17 = vmul.f32 %v3919_v53, %v6162_v46 }
 0x8ef   :  { %v3641_v43 = vsel %vm1364_vm7, %v3638_v58, %v3640_v42  ;;  %v3642_v40 = vsel %vm1364_vm7, %v3640_v42, %v3638_v58 }
 0x8f0   :  { %v3655_v62 = vmul.f32 %v3648_v5, %v3642_v40  ;;  %v3656_v31 = vmul.f32 %v3652_v7, %v3641_v43  ;;  %4561 = vmatmul.mubr.msk.bf16.vlgmr.msra.gmra.mxu0 %vm60_vm2, %v4558_v29  ;;  %4568 = vmatprep.subr.msk.bf16.mxu0 %vm64_vm0, %v3469_v24  ;;  %v3474_v50 = vsel %vm64_vm0, %v3468_v39, 0  ;;  %v4573_v7 = vld [vmem:[%s6533_s13 + $0x4] sm:$0xf]  ;;  %v3990_v24 = vrot.slane %v4592_v56, %v5484_v34 }
 0x8f1   :  { %3494 = vmatpush1.bf16.msra.mxu0 %v3474_v50  ;;  %3511 = vmatprep.mubr.bf16.mxu0 %v6574_v2 }
 0x8f2   :  { %v3658_v61 = vpack.c.bf16 %v3656_v31, %v3656_v31  ;;  %v3617_v44 = vpop.permute.xlu1 %3616  ;;  %v3836_v45 = vpop.permute.xlu0 %3835  ;;  %v3657_v20 = vpack.c.bf16 %v3655_v62, %v3655_v62  ;;  %v4069_v31 = vrot.slane %v4596_v12, %v5486_v36 }
 0x8f3   :  { %v3618_v41 = vsel %vm1331_vm8, %v3615_v47, %v3617_v44  ;;  %v3619_v54 = vsel %vm1331_vm8, %v3617_v44, %v3615_v47  ;;  %v3915_v47 = vrot.slane %v4588_v15, %v5484_v34  ;;  %v4579_v15 = vld [vmem:[%s6533_s13 + $0x8] sm:$0xf] }
 0x8f4   :  { %v3632_v3 = vmul.f32 %v3625_v52, %v3619_v54  ;;  %v3633_v11 = vmul.f32 %v3629_v48, %v3618_v41  ;;  %4565 = vmatmul.mubr.msk.bf16.vlgmr.msra.gmra.mxu1 %vm60_vm2, %v4562_v22  ;;  %4575 = vmatprep.subr.msk.bf16.mxu0 %vm64_vm0, %v3658_v61  ;;  %v3663_v4 = vsel %vm64_vm0, %v3657_v20, 0  ;;  %v3613_v48 = vld [vmem:[%s6533_s13] sm:$0xf]  ;;  %v4065_v61 = vrot.slane %v4596_v12, %v5484_v34  ;;  %v4604_v20 = vld [vmem:[%s6525_s3 + $0x10] sm:$0x3] }
 0x8f5   :  { %3547 = vmatpush1.bf16.msra.mxu1 %v3527_v0  ;;  %3564 = vmatprep.mubr.bf16.mxu1 %v6574_v2  ;;  %v3922_v43 = vmul.f32 %v3915_v47, %v6152_v59  ;;  %v4600_v59 = vld [vmem:[%s6525_s3 + $0xe] sm:$0x3]  ;;  %v4587_v47 = vld [vmem:[%s6533_s13 + $0x10] sm:$0xf]  ;;  %v4599_v12 = vld [vmem:[%s6533_s13 + $0x1c] sm:$0xf] }
 0x8f6   :  { %v3635_v19 = vpack.c.bf16 %v3633_v11, %v3633_v11  ;;  %v3763_v8 = vpop.permute.xlu1 %3762  ;;  %v3634_v55 = vpack.c.bf16 %v3632_v3, %v3632_v3  ;;  %v3980_v26 = vpop.permute.xlu0 %3979  ;;  %v4140_v28 = vrot.slane %v4600_v59, %v5484_v34 }
 0x8f7   :  { %v3764_v58 = vsel %vm1487_vm4, %v3761_v33, %v3763_v8  ;;  %v3765_v14 = vsel %vm1487_vm4, %v3763_v8, %v3761_v33  ;;  %v3925_v33 = vpack.c.bf16 %v3923_v17, %v3923_v17 }
 0x8f8   :  { %v3778_v25 = vmul.f32 %v3771_v57, %v3765_v14  ;;  %v3779_v60 = vmul.f32 %v3775_v10, %v3764_v58  ;;  %4569 = vmatmul.mubr.msk.bf16.vlgmr.msra.gmra.mxu0 %vm60_vm2, %v4566_v13  ;;  %4577 = vmatprep.subr.msk.bf16.mxu1 %vm64_vm0, %v3635_v19  ;;  %v3713_v6 = vsel %vm64_vm0, %v3634_v55, 0  ;;  %v4144_v57 = vrot.slane %v4600_v59, %v5486_v36 }
 0x8f9   :  { %3683 = vmatpush1.bf16.msra.mxu0 %v3663_v4  ;;  %3700 = vmatprep.mubr.bf16.mxu0 %v6574_v2  ;;  %v4219_v14 = vrot.slane %v4604_v20, %v5486_v36 }
 0x8fa   :  { %v3781_v37 = vpack.c.bf16 %v3779_v60, %v3779_v60  ;;  %v3838_v38 = vpop.permute.xlu1 %3837  ;;  %v3780_v5 = vpack.c.bf16 %v3778_v25, %v3778_v25  ;;  %v4055_v29 = vpop.permute.xlu0 %4054 }
 0x8fb   :  { %v3839_v23 = vsel %vm1567_vm9, %v3836_v45, %v3838_v38  ;;  %v3840_v49 = vsel %vm1567_vm9, %v3838_v38, %v3836_v45  ;;  %v3924_v45 = vpack.c.bf16 %v3922_v43, %v3922_v43 }
 0x8fc   :  { %v3853_v1 = vmul.f32 %v3846_v21, %v3840_v49  ;;  %v3854_v63 = vmul.f32 %v3850_v51, %v3839_v23  ;;  %4570 = vmatmul.mubr.msk.bf16.vlgmr.msra.gmra.mxu1 %vm1388_vm5, %v3522_v27  ;;  %4581 = vmatprep.subr.msk.bf16.mxu0 %vm64_vm0, %v3781_v37  ;;  %v3786_v62 = vsel %vm64_vm0, %v3780_v5, 0  ;;  %v4583_v51 = vld [vmem:[%s6533_s13 + $0xc] sm:$0xf] }
 0x8fd   :  { %3733 = vmatpush1.bf16.msra.mxu1 %v3713_v6  ;;  %3750 = vmatprep.mubr.bf16.mxu1 %v6574_v2  ;;  %v3930_v19 = vsel %vm64_vm0, %v3924_v45, 0  ;;  %v4595_v6 = vld [vmem:[%s6533_s13 + $0x18] sm:$0xf] }
 0x8fe   :  { %v3856_v46 = vpack.c.bf16 %v3854_v63, %v3854_v63  ;;  %v3982_v39 = vpop.permute.xlu1 %3981  ;;  %v3855_v40 = vpack.c.bf16 %v3853_v1, %v3853_v1  ;;  %v4130_v0 = vpop.permute.xlu0 %4129  ;;  %v4743_v1 = vld [vmem:[%s6522_s1 + $0x18] sm:$0xff] }
 0x8ff   :  { %v3984_v42 = vsel %vm1714_vm11, %v3982_v39, %v3980_v26  ;;  %v3983_v50 = vsel %vm1714_vm11, %v3980_v26, %v3982_v39  ;;  %v4215_v26 = vrot.slane %v4604_v20, %v5484_v34  ;;  %v4284_v63 = vpack.c.bf16 %v4743_v1, %v5439_v18  ;;  %v4744_v18 = vld [vmem:[%s6522_s1 + $0x10] sm:$0xff]  ;;  %v4278_v39 = vld [vmem:[%s6534_s15] sm:$0xf] }
 0x900   :  { %v3998_v52 = vmul.f32 %v3994_v30, %v3984_v42  ;;  %4576 = vmatmul.mubr.msk.bf16.vlgmr.msra.gmra.mxu0 %vm60_vm2, %v4573_v7  ;;  %4585 = vmatprep.subr.msk.bf16.mxu1 %vm64_vm0, %v3856_v46  ;;  %v3997_v9 = vmul.f32 %v3990_v24, %v3983_v50  ;;  %v3861_v54 = vsel %vm64_vm0, %v3855_v40, 0  ;;  %v4283_v46 = vpack.c.bf16 %v4744_v18, %v5437_v16 }
 0x901   :  { %3806 = vmatpush1.bf16.msra.mxu0 %v3786_v62  ;;  %3823 = vmatprep.mubr.bf16.mxu0 %v6574_v2 }
 0x902   :  { %v4000_v32 = vpack.c.bf16 %v3998_v52, %v3998_v52  ;;  %4589 = vmatprep.subr.msk.bf16.mxu0 %vm64_vm0, %v3925_v33  ;;  %v4057_v22 = vpop.permute.xlu1 %4056  ;;  %v3999_v8 = vpack.c.bf16 %v3997_v9, %v3997_v9  ;;  %v4205_v55 = vpop.permute.xlu0 %4204 }
 0x903   :  { %v4059_v44 = vsel %vm1794_vm6, %v4057_v22, %v4055_v29  ;;  %v4058_v10 = vsel %vm1794_vm6, %v4055_v29, %v4057_v22  ;;  %v4603_v29 = vld [vmem:[%s6533_s13 + $0x20] sm:$0xf] }
 0x904   :  { %v4073_v41 = vmul.f32 %v4069_v31, %v4059_v44  ;;  %4578 = vmatmul.mubr.msk.bf16.vlgmr.msra.gmra.mxu1 %vm60_vm2, %v3613_v48  ;;  %v4072_v53 = vmul.f32 %v4065_v61, %v4058_v10  ;;  %v4005_v37 = vsel %vm64_vm0, %v3999_v8, 0 }
 0x905   :  { %3881 = vmatpush1.bf16.msra.mxu1 %v3861_v54  ;;  %3898 = vmatprep.mubr.bf16.mxu1 %v6574_v2 }
 0x906   :  { %v4075_v3 = vpack.c.bf16 %v4073_v41, %v4073_v41  ;;  %4593 = vmatprep.subr.msk.bf16.mxu1 %vm64_vm0, %v4000_v32  ;;  %v4132_v11 = vpop.permute.xlu1 %4131  ;;  %v4074_v4 = vpack.c.bf16 %v4072_v53, %v4072_v53 }
 0x907   :  { %v4134_v13 = vsel %vm1874_vm12, %v4132_v11, %v4130_v0  ;;  %v4133_v21 = vsel %vm1874_vm12, %v4130_v0, %v4132_v11 }
 0x908   :  { %v4148_v58 = vmul.f32 %v4144_v57, %v4134_v13  ;;  %4582 = vmatmul.mubr.msk.bf16.vlgmr.msra.gmra.mxu0 %vm60_vm2, %v4579_v15  ;;  %v4147_v56 = vmul.f32 %v4140_v28, %v4133_v21  ;;  %v4080_v30 = vsel %vm64_vm0, %v4074_v4, 0 }
 0x909   :  { %3950 = vmatpush1.bf16.msra.mxu0 %v3930_v19  ;;  %3967 = vmatprep.mubr.bf16.mxu0 %v6574_v2 }
 0x90a   :  { %v4150_v25 = vpack.c.bf16 %v4148_v58, %v4148_v58  ;;  %4597 = vmatprep.subr.msk.bf16.mxu0 %vm64_vm0, %v4075_v3  ;;  %v4207_v60 = vpop.permute.xlu1 %4206  ;;  %v4149_v23 = vpack.c.bf16 %v4147_v56, %v4147_v56 }
 0x90b   :  { %v4209_v36 = vsel %vm1954_vm10, %v4207_v60, %v4205_v55  ;;  %v4208_v38 = vsel %vm1954_vm10, %v4205_v55, %v4207_v60 }
 0x90c   :  { %v4223_v27 = vmul.f32 %v4219_v14, %v4209_v36  ;;  %4586 = vmatmul.mubr.msk.bf16.vlgmr.msra.gmra.mxu1 %vm60_vm2, %v4583_v51  ;;  %v4222_v49 = vmul.f32 %v4215_v26, %v4208_v38  ;;  %v4155_v5 = vsel %vm64_vm0, %v4149_v23, 0 }
 0x90d   :  { %4025 = vmatpush1.bf16.msra.mxu1 %v4005_v37  ;;  %4042 = vmatprep.mubr.bf16.mxu1 %v6574_v2 }
 0x90e   :  { %v4225_v34 = vpack.c.bf16 %v4223_v27, %v4223_v27  ;;  %4601 = vmatprep.subr.msk.bf16.mxu1 %vm64_vm0, %v4150_v25  ;;  %v4224_v17 = vpack.c.bf16 %v4222_v49, %v4222_v49 }
 0x90f   :  { %v3577_v36 = vpop.permute.xlu0 %3576 }
 0x910   :  { %4590 = vmatmul.mubr.msk.bf16.vlgmr.msra.gmra.mxu0 %vm60_vm2, %v4587_v47  ;;  %v4230_v7 = vsel %vm64_vm0, %v4224_v17, 0 }
 0x911   :  { %4100 = vmatpush1.bf16.msra.mxu0 %v4080_v30  ;;  %4117 = vmatprep.mubr.bf16.mxu0 %v6574_v2 }
 0x912   :  { %4605 = vmatprep.subr.msk.bf16.mxu0 %vm64_vm0, %v4225_v34 }
 0x914   :  { %4594 = vmatmul.mubr.msk.bf16.vlgmr.msra.gmra.mxu1 %vm60_vm2, %v4591_v35 }
 0x915   :  { %4175 = vmatpush1.bf16.msra.mxu1 %v4155_v5  ;;  %4192 = vmatprep.mubr.bf16.mxu1 %v6574_v2  ;;  %v3587_v5 = vpop.permute.xlu0 %3586 }
 0x916   :  { %4302 = vmatprep.subr.bf16.mxu1 %v4284_v63 }
 0x918   :  { %4598 = vmatmul.mubr.msk.bf16.vlgmr.msra.gmra.mxu0 %vm60_vm2, %v4595_v6 }
 0x919   :  { %4250 = vmatpush1.bf16.msra.mxu0 %v4230_v7  ;;  %4267 = vmatprep.mubr.bf16.mxu0 %v6574_v2 }
 0x91c   :  { %4602 = vmatmul.mubr.msk.bf16.vlgmr.msra.gmra.mxu1 %vm60_vm2, %v4599_v12 }
 0x91d   :  { %4303 = vmatpush1.bf16.msra.mxu1 %v4283_v46  ;;  %4320 = vmatprep.mubr.bf16.mxu1 %v6574_v2 }
 0x920   :  { %4606 = vmatmul.mubr.msk.bf16.vlgmr.msra.gmra.mxu0 %vm60_vm2, %v4603_v29 }
 0x924   :  { %4607 = vmatmul.mubr.msk.bf16.vlgmr.msra.gmra.mxu1 %vm1388_vm5, %v4278_v39 }
 0x998   :  { %v2939_v24 = vpop.f32.mrf.mxu0 }
 0x99a   :  { %v2941_v42 = vpop.f32.mrf.mxu0 }
 0x99c   :  { %v2943_v16 = vpop.f32.mrf.mxu0  ;;  %v2989_v33 = vpop.f32.mrf.mxu1 }
 0x99d   :  { %v2990_v9 = vadd.f32 %v2989_v33, %v2939_v24 }
 0x99e   :  { %v2944_v43 = vpop.f32.mrf.mxu0  ;;  %v2991_v40 = vpop.f32.mrf.mxu1 }
 0x99f   :  { %v2992_v54 = vadd.f32 %v2991_v40, %v2941_v42 }
 0x9a0   :  { %v2993_v52 = vpop.f32.mrf.mxu1  ;;  %v3063_v62 = vpop.f32.mrf.mxu0 }
 0x9a1   :  { %v3070_v57 = vadd.f32 %v3063_v62, %v2990_v9 }
 0x9a2   :  { %v2994_v31 = vpop.f32.mrf.mxu1  ;;  %v3065_v50 = vpop.f32.mrf.mxu0 }
 0x9a3   :  { %v3071_v20 = vadd.f32 %v3065_v50, %v2992_v54 }
 0x9a4   :  { %v3067_v48 = vpop.f32.mrf.mxu0  ;;  %v3139_v2 = vpop.f32.mrf.mxu1 }
 0x9a5   :  { %v3146_v3 = vadd.f32 %v3139_v2, %v3070_v57 }
 0x9a6   :  { %v3068_v59 = vpop.f32.mrf.mxu0  ;;  %v3141_v32 = vpop.f32.mrf.mxu1 }
 0x9a7   :  { %v3147_v13 = vadd.f32 %v3141_v32, %v3071_v20 }
 0x9a8   :  { %v3143_v22 = vpop.f32.mrf.mxu1  ;;  %v3209_v61 = vpop.f32.mrf.mxu0 }
 0x9a9   :  { %v3216_v19 = vadd.f32 %v3209_v61, %v3146_v3 }
 0x9aa   :  { %v3144_v44 = vpop.f32.mrf.mxu1  ;;  %v3211_v45 = vpop.f32.mrf.mxu0 }
 0x9ab   :  { %v3217_v58 = vadd.f32 %v3211_v45, %v3147_v13 }
 0x9ac   :  { %v3213_v0 = vpop.f32.mrf.mxu0  ;;  %v3285_v41 = vpop.f32.mrf.mxu1 }
 0x9ad   :  { %v3292_v14 = vadd.f32 %v3285_v41, %v3216_v19 }
 0x9ae   :  { %v3214_v10 = vpop.f32.mrf.mxu0  ;;  %v3287_v15 = vpop.f32.mrf.mxu1 }
 0x9af   :  { %v3293_v55 = vadd.f32 %v3287_v15, %v3217_v58 }
 0x9b0   :  { %v3289_v11 = vpop.f32.mrf.mxu1  ;;  %v3361_v28 = vpop.f32.mrf.mxu0 }
 0x9b1   :  { %v3368_v25 = vadd.f32 %v3361_v28, %v3292_v14 }
 0x9b2   :  { %v3290_v8 = vpop.f32.mrf.mxu1  ;;  %v3363_v53 = vpop.f32.mrf.mxu0 }
 0x9b3   :  { %v3369_v4 = vadd.f32 %v3363_v53, %v3293_v55 }
 0x9b4   :  { %v3365_v21 = vpop.f32.mrf.mxu0  ;;  %v3437_v51 = vpop.f32.mrf.mxu1 }
 0x9b5   :  { %v3444_v56 = vadd.f32 %v3437_v51, %v3368_v25 }
 0x9b6   :  { %v3366_v60 = vpop.f32.mrf.mxu0  ;;  %v3439_v26 = vpop.f32.mrf.mxu1 }
 0x9b7   :  { %v3445_v38 = vadd.f32 %v3439_v26, %v3369_v4 }
 0x9b8   :  { %v3441_v27 = vpop.f32.mrf.mxu1  ;;  %v3513_v37 = vpop.f32.mrf.mxu0 }
 0x9b9   :  { %v3520_v47 = vadd.f32 %v3513_v37, %v3444_v56 }
 0x9ba   :  { %v3442_v34 = vpop.f32.mrf.mxu1  ;;  %v3515_v23 = vpop.f32.mrf.mxu0 }
 0x9bb   :  { %v3521_v49 = vadd.f32 %v3515_v23, %v3445_v38  ;;  %v3579_v30 = vadd.f32 %v3577_v36, %v3520_v47 }
 0x9bc   :  { %v3517_v35 = vpop.f32.mrf.mxu0  ;;  %v3566_v17 = vpop.f32.mrf.mxu1 }
 0x9bd   :  { %v3581_v1 = vadd.f32 %v3579_v30, %v3566_v17  ;;  %v3580_v63 = vadd.f32 %v3577_v36, %v3521_v49  ;;  %v4333_v36 = vpop.permute.xlu1 %4332 }
 0x9be   :  { %v3518_v6 = vpop.f32.mrf.mxu0  ;;  %v3568_v7 = vpop.f32.mrf.mxu1 }
 0x9bf   :  { %v3589_v12 = vadd.f32 %v3587_v5, %v3581_v1  ;;  %v3582_v18 = vadd.f32 %v3580_v63, %v3568_v7 }
 0x9c0   :  { %v3570_v46 = vpop.f32.mrf.mxu1  ;;  %v3702_v29 = vpop.f32.mrf.mxu0 }
 0x9c1   :  { %3591 = vst [vmem:[%s6535_s17] sm:$0xff] %v3589_v12  ;;  %v3590_v39 = vadd.f32 %v3587_v5, %v3582_v18  ;;  %v4343_v5 = vpop.permute.xlu1 %4342 }
 0x9c2   :  { %v3571_v24 = vpop.f32.mrf.mxu1  ;;  %v3704_v42 = vpop.f32.mrf.mxu0 }
 0x9c3   :  { %3592 = vst [vmem:[%s6535_s17 + $0x8] sm:$0xff] %v3590_v39 }
 0x9c4   :  { %v3706_v16 = vpop.f32.mrf.mxu0  ;;  %v3752_v33 = vpop.f32.mrf.mxu1 }
 0x9c5   :  { %v3753_v9 = vadd.f32 %v3752_v33, %v3702_v29 }
 0x9c6   :  { %v3707_v43 = vpop.f32.mrf.mxu0  ;;  %v3754_v40 = vpop.f32.mrf.mxu1 }
 0x9c7   :  { %v3755_v54 = vadd.f32 %v3754_v40, %v3704_v42 }
 0x9c8   :  { %v3756_v52 = vpop.f32.mrf.mxu1  ;;  %v3825_v62 = vpop.f32.mrf.mxu0 }
 0x9c9   :  { %v3832_v57 = vadd.f32 %v3825_v62, %v3753_v9 }
 0x9ca   :  { %v3757_v31 = vpop.f32.mrf.mxu1  ;;  %v3827_v50 = vpop.f32.mrf.mxu0 }
 0x9cb   :  { %v3833_v20 = vadd.f32 %v3827_v50, %v3755_v54 }
 0x9cc   :  { %v3829_v48 = vpop.f32.mrf.mxu0  ;;  %v3900_v2 = vpop.f32.mrf.mxu1 }
 0x9cd   :  { %v3907_v3 = vadd.f32 %v3900_v2, %v3832_v57 }
 0x9ce   :  { %v3830_v59 = vpop.f32.mrf.mxu0  ;;  %v3902_v32 = vpop.f32.mrf.mxu1 }
 0x9cf   :  { %v3908_v13 = vadd.f32 %v3902_v32, %v3833_v20 }
 0x9d0   :  { %v3904_v22 = vpop.f32.mrf.mxu1  ;;  %v3969_v61 = vpop.f32.mrf.mxu0 }
 0x9d1   :  { %v3976_v19 = vadd.f32 %v3969_v61, %v3907_v3 }
 0x9d2   :  { %v3905_v44 = vpop.f32.mrf.mxu1  ;;  %v3971_v45 = vpop.f32.mrf.mxu0 }
 0x9d3   :  { %v3977_v58 = vadd.f32 %v3971_v45, %v3908_v13 }
 0x9d4   :  { %v3973_v0 = vpop.f32.mrf.mxu0  ;;  %v4044_v41 = vpop.f32.mrf.mxu1 }
 0x9d5   :  { %v4051_v14 = vadd.f32 %v4044_v41, %v3976_v19 }
 0x9d6   :  { %v3974_v10 = vpop.f32.mrf.mxu0  ;;  %v4046_v15 = vpop.f32.mrf.mxu1 }
 0x9d7   :  { %v4052_v55 = vadd.f32 %v4046_v15, %v3977_v58 }
 0x9d8   :  { %v4048_v11 = vpop.f32.mrf.mxu1  ;;  %v4119_v28 = vpop.f32.mrf.mxu0 }
 0x9d9   :  { %v4126_v25 = vadd.f32 %v4119_v28, %v4051_v14 }
 0x9da   :  { %v4049_v8 = vpop.f32.mrf.mxu1  ;;  %v4121_v53 = vpop.f32.mrf.mxu0 }
 0x9db   :  { %v4127_v4 = vadd.f32 %v4121_v53, %v4052_v55 }
 0x9dc   :  { %v4123_v21 = vpop.f32.mrf.mxu0  ;;  %v4194_v51 = vpop.f32.mrf.mxu1 }
 0x9dd   :  { %v4201_v56 = vadd.f32 %v4194_v51, %v4126_v25 }
 0x9de   :  { %v4124_v60 = vpop.f32.mrf.mxu0  ;;  %v4196_v26 = vpop.f32.mrf.mxu1 }
 0x9df   :  { %v4202_v38 = vadd.f32 %v4196_v26, %v4127_v4 }
 0x9e0   :  { %v4198_v27 = vpop.f32.mrf.mxu1  ;;  %v4269_v37 = vpop.f32.mrf.mxu0 }
 0x9e1   :  { %v4276_v47 = vadd.f32 %v4269_v37, %v4201_v56 }
 0x9e2   :  { %v4199_v34 = vpop.f32.mrf.mxu1  ;;  %v4271_v23 = vpop.f32.mrf.mxu0 }
 0x9e3   :  { %v4277_v49 = vadd.f32 %v4271_v23, %v4202_v38  ;;  %v4335_v30 = vadd.f32 %v4333_v36, %v4276_v47 }
 0x9e4   :  { %v4273_v35 = vpop.f32.mrf.mxu0  ;;  %v4322_v17 = vpop.f32.mrf.mxu1 }
 0x9e5   :  { %v4337_v1 = vadd.f32 %v4335_v30, %v4322_v17  ;;  %v4336_v63 = vadd.f32 %v4333_v36, %v4277_v49 }
 0x9e6   :  { %v4274_v6 = vpop.f32.mrf.mxu0  ;;  %v4324_v7 = vpop.f32.mrf.mxu1 }
 0x9e7   :  { %v4345_v12 = vadd.f32 %v4343_v5, %v4337_v1  ;;  %v4338_v18 = vadd.f32 %v4336_v63, %v4324_v7 }
 0x9e8   :  { %v4326_v46 = vpop.f32.mrf.mxu1 }
 0x9e9   :  { %4608 = vst [vmem:[%s6535_s17 + $0x10] sm:$0xff] %v4345_v12  ;;  %v4346_v29 = vadd.f32 %v4343_v5, %v4338_v18 }
 0x9ea   :  { %v4327_v39 = vpop.f32.mrf.mxu1 }
 0x9eb   :  { %4609 = vst [vmem:[%s6535_s17 + $0x18] sm:$0xff] %v4346_v29 }

</bundles_post_ra>
